<compile_context>
chip_gen: v7x
topology: tpu7x:2x2x1
jax: 0.10.0
libtpu: 0.0.40
codegen_flags: <defaults>
</compile_context>

<pallas_src>
import functools

import jax
import jax.numpy as jnp
from jax.experimental import pallas as pl
from jax.experimental.pallas import tpu as pltpu

ALPHA = 0.01  # PyTorch LeakyReLU default negative_slope


def _leaky(v):
    return jnp.where(v > 0, v, ALPHA * v)


def _sigmoid(v):
    return 1.0 / (1.0 + jnp.exp(-v))


def _crossconv_kernel(x_ref, mask_l_ref, mask_r_ref,
                      w1_ref, b1_ref, w2_ref, b2_ref,
                      wd_ref, bd_ref,
                      f1w_ref, f1b_ref, f2w_ref, f2b_ref,
                      o_ref, pad_ref, *, H, W, C2, PAD, BP):
    HW = H * W

    # Row-wrap masks arrive pre-broadcast to (HW, C2): no in-kernel
    # broadcast_in_dim is re-emitted at any of the 6 multiply sites.
    mask_l = mask_l_ref[...]
    mask_r = mask_r_ref[...]

    # Zero ONLY the halo rows, once per grid step; the interior is always
    # overwritten before it is read.  Not guarded by pl.when(step == 0) so it
    # stays correct when the "parallel" grid axis is megacore-split (each core
    # owns a private scratch instance).
    zero_halo = jnp.zeros((PAD, C2), jnp.float32)
    pad_ref[pl.ds(0, PAD), :] = zero_halo
    pad_ref[pl.ds(PAD + HW, PAD), :] = zero_halo

    def set_interior(v):
        pad_ref[pl.ds(PAD, HW), :] = v

    def shifted(off):
        # value at flat spatial offset `off` (= dh*W + dw); caller applies the
        # row-wrap mask when dw != 0.
        return pad_ref[pl.ds(PAD + off, HW), :]

    def cross(v, w_ref, b_ref):
        # conv(3,1) pad(1,0) + conv(1,3) pad(0,1), centre taps pre-summed.
        # Five accumulated (HW, C2) x (C2, C2) MXU dots (f32 accumulate); tap
        # order matches the wrapper stacking: [up, down, left, right, centre].
        set_interior(v)
        acc = jnp.dot(v, w_ref[4], preferred_element_type=jnp.float32) + b_ref[...]
        acc = acc + jnp.dot(shifted(-W), w_ref[0], preferred_element_type=jnp.float32)
        acc = acc + jnp.dot(shifted(W), w_ref[1], preferred_element_type=jnp.float32)
        acc = acc + jnp.dot(shifted(-1) * mask_l, w_ref[2],
                            preferred_element_type=jnp.float32)
        acc = acc + jnp.dot(shifted(1) * mask_r, w_ref[3],
                            preferred_element_type=jnp.float32)
        return acc

    def process_pair(p):
        x = x_ref[p]                                     # (HW, C2)
        x1 = _leaky(cross(x, w1_ref, b1_ref))            # stage 1 + LeakyReLU
        x2 = cross(x1, w2_ref, b2_ref)                   # stage 2

        # adafm: depthwise 3x3 (groups = C) + residual.  Each column group
        # (fixed dw) comes from a single wide (HW + 2W) load; its three dh
        # windows are sublane-aligned value slices, so only the dw = +-1 sides
        # need one realignment each.  wd index = (dh+1)*3 + (dw+1).
        set_interior(x2)
        wm = pad_ref[pl.ds(PAD - W, HW + 2 * W), :]              # aligned
        centre = wm[W:W + HW]                                    # == x2 (re-read)
        mid = (wm[0:HW] * wd_ref[1] + centre * wd_ref[4]
               + wm[2 * W:2 * W + HW] * wd_ref[7])
        wl = pad_ref[pl.ds(PAD - W - 1, HW + 2 * W), :]
        left = (wl[0:HW] * wd_ref[0] + wl[W:W + HW] * wd_ref[3]
                + wl[2 * W:2 * W + HW] * wd_ref[6]) * mask_l
        wr = pad_ref[pl.ds(PAD - W + 1, HW + 2 * W), :]
        right = (wr[0:HW] * wd_ref[2] + wr[W:W + HW] * wd_ref[5]
                 + wr[2 * W:2 * W + HW] * wd_ref[8]) * mask_r
        x3 = centre + bd_ref[...] + mid + left + right

        # SE block: global avg pool -> fc -> LeakyReLU -> fc -> sigmoid.
        # Block-diagonal FC weights keep the two lane-packed samples separate.
        s = jnp.sum(x3, axis=0, keepdims=True) * (1.0 / HW)      # (1, C2)
        h1 = _leaky(jnp.dot(s, f1w_ref[...],
                            preferred_element_type=jnp.float32) + f1b_ref[...])
        gate = _sigmoid(jnp.dot(h1, f2w_ref[...],
                                preferred_element_type=jnp.float32) + f2b_ref[...])

        # final residual with the block input: re-read x (still VMEM-resident)
        # instead of keeping it live across the whole body.
        o_ref[p] = x_ref[p] + x3 * gate

    if BP == 1:
        process_pair(0)
    else:
        pl.loop(0, BP)(process_pair)


def _full(a):
    nd = a.ndim
    return pl.BlockSpec(a.shape, lambda i, _nd=nd: (0,) * _nd)


def _block_diag2(w):
    """(K, N) -> (2K, 2N) block-diagonal [[w, 0], [0, w]] (shared weights for
    the two lane-packed samples)."""
    return jnp.kron(jnp.eye(2, dtype=w.dtype), w)


def _stack_cross_weights(wa, ba, wb, bb):
    # Tap order must match the kernel: [up, down, left, right, centre].
    taps = [wa[0], wa[2], wb[0], wb[2], wa[1] + wb[1]]
    w = jnp.stack([_block_diag2(t) for t in taps], axis=0)      # (5, 2C, 2C)
    b = jnp.tile(ba + bb, (1, 2))                               # (1, 2C)
    return w.astype(jnp.float32), b.astype(jnp.float32)


def _pairs_per_block(num_pairs):
    # Largest block in {8, 4, 2} dividing num_pairs while keeping the grid
    # length >= 2 (so the "parallel" axis can split across v7x's two TCs).
    for cand in (8, 4, 2):
        if num_pairs % cand == 0 and num_pairs // cand >= 2:
            return cand
    return 1


def cross_conv(x_nchw, params):
    B, C, H, W = x_nchw.shape
    HW, C2 = H * W, 2 * C
    PAD = ((W + 1 + 7) // 8) * 8   # sublane-aligned zero-halo rows (>= W+1)

    # NHWC, flatten spatial, then pack PAIRS of samples along the channel/lane
    # axis: (NP, HW, 2C).  With C = 64 every vreg / load / store is 128-lane
    # dense throughout the kernel.
    x2d = jnp.transpose(x_nchw, (0, 2, 3, 1)).reshape(B, HW, C).astype(jnp.float32)
    NP = (B + 1) // 2
    if B % 2:
        x2d = jnp.concatenate([x2d, jnp.zeros((1, HW, C), jnp.float32)], axis=0)
    x_packed = x2d.reshape(NP, 2, HW, C).transpose(0, 2, 1, 3).reshape(NP, HW, C2)

    # Row-wrap masks, pre-broadcast to the full lane-dense tile.
    col = jnp.arange(HW, dtype=jnp.int32) % W
    mask_l = jnp.broadcast_to((col != 0).astype(jnp.float32)[:, None], (HW, C2))
    mask_r = jnp.broadcast_to((col != W - 1).astype(jnp.float32)[:, None], (HW, C2))

    w1, b1 = _stack_cross_weights(params["w1a"], params["b1a"],
                                  params["w1b"], params["b1b"])
    w2, b2 = _stack_cross_weights(params["w2a"], params["b2a"],
                                  params["w2b"], params["b2b"])
    ordered = [w1, b1, w2, b2,
               jnp.tile(params["wd"].astype(jnp.float32), (1, 1, 2)),  # (9,1,2C)
               jnp.tile(params["bd"].astype(jnp.float32), (1, 2)),     # (1,2C)
               _block_diag2(params["f1w"].astype(jnp.float32)),        # (2C,2C/16)
               jnp.tile(params["f1b"].astype(jnp.float32), (1, 2)),
               _block_diag2(params["f2w"].astype(jnp.float32)),        # (2C/16,2C)
               jnp.tile(params["f2b"].astype(jnp.float32), (1, 2))]

    BP = _pairs_per_block(NP)          # pairs per grid step
    grid = (NP // BP,)

    kernel = functools.partial(_crossconv_kernel, H=H, W=W, C2=C2, PAD=PAD, BP=BP)

    in_specs = ([pl.BlockSpec((BP, HW, C2), lambda i: (i, 0, 0)),
                 _full(mask_l), _full(mask_r)] + [_full(a) for a in ordered])

    # VMEM budget from the actual buffers (double-buffered blocks / masks /
    # params + scratch) with headroom for in-kernel temporaries; capped well
    # below v7x's 64 MiB per-TC VMEM.
    blk_bytes = BP * HW * C2 * 4
    mask_bytes = 2 * HW * C2 * 4
    param_bytes = sum(int(a.size) * a.dtype.itemsize for a in ordered)
    scratch_bytes = (HW + 2 * PAD) * C2 * 4
    need = 2 * (2 * blk_bytes + mask_bytes + param_bytes) + scratch_bytes
    vmem_limit = int(min(max(4 * need, 8 * 2 ** 20), 48 * 2 ** 20))

    out_packed = pl.pallas_call(
        kernel,
        out_shape=jax.ShapeDtypeStruct((NP, HW, C2), jnp.float32),
        grid_spec=pltpu.PrefetchScalarGridSpec(
            num_scalar_prefetch=0,
            grid=grid,
            in_specs=in_specs,
            out_specs=pl.BlockSpec((BP, HW, C2), lambda i: (i, 0, 0)),
            scratch_shapes=[pltpu.VMEM((HW + 2 * PAD, C2), jnp.float32)]),
        compiler_params=pltpu.CompilerParams(
            dimension_semantics=("parallel",),
            vmem_limit_bytes=vmem_limit),
    )(x_packed, mask_l, mask_r, *ordered)

    out2d = (out_packed.reshape(NP, HW, 2, C).transpose(0, 2, 1, 3)
             .reshape(2 * NP, HW, C)[:B])
    return jnp.transpose(out2d.reshape(B, H, W, C), (0, 3, 1, 2))


def reference_crossconv(x_nchw, p):
    """Pure-JAX all-f32 (HIGHEST precision) reference with module semantics."""
    B, C, H, W = x_nchw.shape
    x = jnp.transpose(x_nchw, (0, 2, 3, 1))  # NHWC
    dn = ("NHWC", "HWIO", "NHWC")
    hi = jax.lax.Precision.HIGHEST

    def conv(v, k, b, pad, groups=1):
        o = jax.lax.conv_general_dilated(v, k, (1, 1), pad,
                                         dimension_numbers=dn,
                                         feature_group_count=groups,
                                         precision=hi)
        return o + b.reshape(1, 1, 1, -1)

    k1a = p["w1a"].reshape(3, 1, C, C)
    k1b = p["w1b"].reshape(1, 3, C, C)
    k2a = p["w2a"].reshape(3, 1, C, C)
    k2b = p["w2b"].reshape(1, 3, C, C)
    kd = p["wd"].reshape(3, 3, 1, C)

    x1 = _leaky(conv(x, k1a, p["b1a"], ((1, 1), (0, 0))) +
                conv(x, k1b, p["b1b"], ((0, 0), (1, 1))))
    x2 = (conv(x1, k2a, p["b2a"], ((1, 1), (0, 0))) +
          conv(x1, k2b, p["b2b"], ((0, 0), (1, 1))))
    x3 = conv(x2, kd, p["bd"], ((1, 1), (1, 1)), groups=C) + x2

    s = jnp.mean(x3, axis=(1, 2))                                  # (B, C)
    h1 = _leaky(jnp.dot(s, p["f1w"], precision=hi) + p["f1b"])     # (B, C//16)
    g = _sigmoid(jnp.dot(h1, p["f2w"], precision=hi) + p["f2b"])   # (B, C)
    out = x + x3 * g[:, None, None, :]
    return jnp.transpose(out, (0, 3, 1, 2))


if __name__ == "__main__":
    # B = 8 exercises the multi-pair-per-step loop (BP = 2) and a 2-long
    # "parallel" grid; C = 64 is the module default (needed for C // 16 >= 1).
    B, C, H, W = 8, 64, 16, 16
    C16 = C // 16

    key = jax.random.PRNGKey(0)
    ks = jax.random.split(key, 16)

    def n(k, shape, scale):
        return jax.random.normal(k, shape, jnp.float32) * scale

    params = {
        "w1a": n(ks[0], (3, C, C), 0.05), "b1a": n(ks[1], (1, C), 0.02),
        "w1b": n(ks[2], (3, C, C), 0.05), "b1b": n(ks[3], (1, C), 0.02),
        "w2a": n(ks[4], (3, C, C), 0.05), "b2a": n(ks[5], (1, C), 0.02),
        "w2b": n(ks[6], (3, C, C), 0.05), "b2b": n(ks[7], (1, C), 0.02),
        "wd":  n(ks[8], (9, 1, C), 0.10), "bd":  n(ks[9], (1, C), 0.02),
        "f1w": n(ks[10], (C, C16), 0.20), "f1b": n(ks[11], (1, C16), 0.02),
        "f2w": n(ks[12], (C16, C), 0.20), "f2b": n(ks[13], (1, C), 0.02),
    }
    x = jax.random.normal(ks[14], (B, C, H, W), jnp.float32)

    out = jax.block_until_ready(cross_conv(x, params))
    ref = jax.block_until_ready(reference_crossconv(x, params))

    assert out.shape == x.shape and out.dtype == jnp.float32
    # All-f32 kernel vs. all-f32 (HIGHEST precision) XLA reference; tolerance
    # (tightened from the previous bf16 build's 5e-2) still covers any internal
    # bf16 pass the MXU may use for f32 matmul operands.
    if not bool(jnp.allclose(out, ref, rtol=2e-2, atol=2e-2)):
        max_err = float(jnp.max(jnp.abs(out - ref)))
        raise AssertionError(f"kernel/reference mismatch, max abs err = {max_err}")
    print("KERNEL_OK")
</pallas_src>

<mosaic_0001>
module attributes {stable_mosaic.version = 11 : i64} {
  func.func @_crossconv_kernel(%arg0: i32, %arg1: memref<2x256x128xf32, #tpu.memory_space<vmem>>, %arg2: memref<256x128xf32, #tpu.memory_space<vmem>>, %arg3: memref<256x128xf32, #tpu.memory_space<vmem>>, %arg4: memref<5x128x128xf32, #tpu.memory_space<vmem>>, %arg5: memref<1x128xf32, #tpu.memory_space<vmem>>, %arg6: memref<5x128x128xf32, #tpu.memory_space<vmem>>, %arg7: memref<1x128xf32, #tpu.memory_space<vmem>>, %arg8: memref<9x1x128xf32, #tpu.memory_space<vmem>>, %arg9: memref<1x128xf32, #tpu.memory_space<vmem>>, %arg10: memref<128x8xf32, #tpu.memory_space<vmem>>, %arg11: memref<1x8xf32, #tpu.memory_space<vmem>>, %arg12: memref<8x128xf32, #tpu.memory_space<vmem>>, %arg13: memref<1x128xf32, #tpu.memory_space<vmem>>, %arg14: memref<2x256x128xf32, #tpu.memory_space<vmem>>, %arg15: memref<304x128xf32, #tpu.memory_space<vmem>>) attributes {dimension_semantics = [#tpu.dimension_semantics<parallel>], iteration_bounds = array<i64: 2>, scalar_prefetch = 0 : i64, scratch_operands = 1 : i64, tpu.core_type = #tpu.core_type<tc>, window_params = [{transform_indices = @transform_0, window_bounds = array<i64: 2, 256, 128>}, {pipeline_mode = #tpu.pipeline_mode<synchronous>, transform_indices = @transform_1, window_bounds = array<i64: 256, 128>}, {pipeline_mode = #tpu.pipeline_mode<synchronous>, transform_indices = @transform_2, window_bounds = array<i64: 256, 128>}, {pipeline_mode = #tpu.pipeline_mode<synchronous>, transform_indices = @transform_3, window_bounds = array<i64: 5, 128, 128>}, {pipeline_mode = #tpu.pipeline_mode<synchronous>, transform_indices = @transform_4, window_bounds = array<i64: 1, 128>}, {pipeline_mode = #tpu.pipeline_mode<synchronous>, transform_indices = @transform_5, window_bounds = array<i64: 5, 128, 128>}, {pipeline_mode = #tpu.pipeline_mode<synchronous>, transform_indices = @transform_6, window_bounds = array<i64: 1, 128>}, {pipeline_mode = #tpu.pipeline_mode<synchronous>, transform_indices = @transform_7, window_bounds = array<i64: 9, 1, 128>}, {pipeline_mode = #tpu.pipeline_mode<synchronous>, transform_indices = @transform_8, window_bounds = array<i64: 1, 128>}, {pipeline_mode = #tpu.pipeline_mode<synchronous>, transform_indices = @transform_9, window_bounds = array<i64: 128, 8>}, {pipeline_mode = #tpu.pipeline_mode<synchronous>, transform_indices = @transform_10, window_bounds = array<i64: 1, 8>}, {pipeline_mode = #tpu.pipeline_mode<synchronous>, transform_indices = @transform_11, window_bounds = array<i64: 8, 128>}, {pipeline_mode = #tpu.pipeline_mode<synchronous>, transform_indices = @transform_12, window_bounds = array<i64: 1, 128>}, {transform_indices = @transform_13, window_bounds = array<i64: 2, 256, 128>}]} {
    %c0 = arith.constant 0 : index
    %c0_0 = arith.constant 0 : index
    %0 = vector.load %arg2[%c0, %c0_0] : memref<256x128xf32, #tpu.memory_space<vmem>>, vector<256x128xf32>
    %c0_1 = arith.constant 0 : index
    %c0_2 = arith.constant 0 : index
    %1 = vector.load %arg3[%c0_1, %c0_2] : memref<256x128xf32, #tpu.memory_space<vmem>>, vector<256x128xf32>
    %cst = arith.constant 0.000000e+00 : f32
    %2 = vector.broadcast %cst : f32 to vector<24x128xf32>
    %c0_3 = arith.constant 0 : index
    %c0_4 = arith.constant 0 : index
    %3 = vector.load %arg15[%c0_3, %c0_4] : memref<304x128xf32, #tpu.memory_space<vmem>>, vector<24x128xf32>
    tpu.vector_store %arg15[%c0_3, %c0_4], %2 {strides = array<i32>} : memref<304x128xf32, #tpu.memory_space<vmem>>, vector<24x128xf32>,
    %c280 = arith.constant 280 : index
    %c0_5 = arith.constant 0 : index
    %4 = vector.load %arg15[%c280, %c0_5] : memref<304x128xf32, #tpu.memory_space<vmem>>, vector<24x128xf32>
    tpu.vector_store %arg15[%c280, %c0_5], %2 {strides = array<i32>} : memref<304x128xf32, #tpu.memory_space<vmem>>, vector<24x128xf32>,
    %c0_i32 = arith.constant 0 : i32
    %c2_i32 = arith.constant 2 : i32
    %5 = arith.addi %c0_i32, %c2_i32 : i32
    %c1_i32 = arith.constant 1 : i32
    scf.for %arg16 = %c0_i32 to %5 step %c1_i32  : i32 {
      %c1_i32_7 = arith.constant 1 : i32
      %6 = arith.muli %arg16, %c1_i32_7 : i32
      %c0_i32_8 = arith.constant 0 : i32
      %7 = arith.addi %c0_i32_8, %6 : i32
      %8 = arith.index_cast %7 : i32 to index
      %c0_9 = arith.constant 0 : index
      %c0_10 = arith.constant 0 : index
      %9 = vector.load %arg1[%8, %c0_9, %c0_10] : memref<2x256x128xf32, #tpu.memory_space<vmem>>, vector<1x256x128xf32>
      %10 = vector.shape_cast %9 : vector<1x256x128xf32> to vector<256x128xf32>
      %c24 = arith.constant 24 : index
      %c0_11 = arith.constant 0 : index
      %11 = vector.load %arg15[%c24, %c0_11] : memref<304x128xf32, #tpu.memory_space<vmem>>, vector<256x128xf32>
      tpu.vector_store %arg15[%c24, %c0_11], %10 {strides = array<i32>} : memref<304x128xf32, #tpu.memory_space<vmem>>, vector<256x128xf32>,
      %c4 = arith.constant 4 : index
      %c0_12 = arith.constant 0 : index
      %c0_13 = arith.constant 0 : index
      %12 = vector.load %arg4[%c4, %c0_12, %c0_13] : memref<5x128x128xf32, #tpu.memory_space<vmem>>, vector<1x128x128xf32>
      %13 = vector.shape_cast %12 : vector<1x128x128xf32> to vector<128x128xf32>
      %cst_14 = arith.constant dense<0.000000e+00> : vector<256x128xf32>
      %14 = tpu.matmul %10, %13, %cst_14 {dimension_numbers = #tpu.dot_dimension_numbers<[1], [0], [0], [1], [0, 0, 1, 1], [], []>} : vector<256x128xf32>, vector<128x128xf32>, vector<256x128xf32> -> vector<256x128xf32>
      %c0_15 = arith.constant 0 : index
      %c0_16 = arith.constant 0 : index
      %15 = vector.load %arg5[%c0_15, %c0_16] : memref<1x128xf32, #tpu.memory_space<vmem>>, vector<1x128xf32>
      %16 = vector.broadcast %15 : vector<1x128xf32> to vector<256x128xf32>
      %17 = arith.addf %14, %16 : vector<256x128xf32>
      %c8 = arith.constant 8 : index
      %c0_17 = arith.constant 0 : index
      %18 = vector.load %arg15[%c8, %c0_17] : memref<304x128xf32, #tpu.memory_space<vmem>>, vector<256x128xf32>
      %c0_18 = arith.constant 0 : index
      %c0_19 = arith.constant 0 : index
      %c0_20 = arith.constant 0 : index
      %19 = vector.load %arg4[%c0_18, %c0_19, %c0_20] : memref<5x128x128xf32, #tpu.memory_space<vmem>>, vector<1x128x128xf32>
      %20 = vector.shape_cast %19 : vector<1x128x128xf32> to vector<128x128xf32>
      %cst_21 = arith.constant dense<0.000000e+00> : vector<256x128xf32>
      %21 = tpu.matmul %18, %20, %cst_21 {dimension_numbers = #tpu.dot_dimension_numbers<[1], [0], [0], [1], [0, 0, 1, 1], [], []>} : vector<256x128xf32>, vector<128x128xf32>, vector<256x128xf32> -> vector<256x128xf32>
      %22 = arith.addf %17, %21 : vector<256x128xf32>
      %c40 = arith.constant 40 : index
      %c0_22 = arith.constant 0 : index
      %23 = vector.load %arg15[%c40, %c0_22] : memref<304x128xf32, #tpu.memory_space<vmem>>, vector<256x128xf32>
      %c1 = arith.constant 1 : index
      %c0_23 = arith.constant 0 : index
      %c0_24 = arith.constant 0 : index
      %24 = vector.load %arg4[%c1, %c0_23, %c0_24] : memref<5x128x128xf32, #tpu.memory_space<vmem>>, vector<1x128x128xf32>
      %25 = vector.shape_cast %24 : vector<1x128x128xf32> to vector<128x128xf32>
      %cst_25 = arith.constant dense<0.000000e+00> : vector<256x128xf32>
      %26 = tpu.matmul %23, %25, %cst_25 {dimension_numbers = #tpu.dot_dimension_numbers<[1], [0], [0], [1], [0, 0, 1, 1], [], []>} : vector<256x128xf32>, vector<128x128xf32>, vector<256x128xf32> -> vector<256x128xf32>
      %27 = arith.addf %22, %26 : vector<256x128xf32>
      %c23 = arith.constant 23 : index
      %c0_26 = arith.constant 0 : index
      %28 = vector.load %arg15[%c23, %c0_26] : memref<304x128xf32, #tpu.memory_space<vmem>>, vector<256x128xf32>
      %29 = arith.mulf %28, %0 : vector<256x128xf32>
      %c2 = arith.constant 2 : index
      %c0_27 = arith.constant 0 : index
      %c0_28 = arith.constant 0 : index
      %30 = vector.load %arg4[%c2, %c0_27, %c0_28] : memref<5x128x128xf32, #tpu.memory_space<vmem>>, vector<1x128x128xf32>
      %31 = vector.shape_cast %30 : vector<1x128x128xf32> to vector<128x128xf32>
      %cst_29 = arith.constant dense<0.000000e+00> : vector<256x128xf32>
      %32 = tpu.matmul %29, %31, %cst_29 {dimension_numbers = #tpu.dot_dimension_numbers<[1], [0], [0], [1], [0, 0, 1, 1], [], []>} : vector<256x128xf32>, vector<128x128xf32>, vector<256x128xf32> -> vector<256x128xf32>
      %33 = arith.addf %27, %32 : vector<256x128xf32>
      %c25 = arith.constant 25 : index
      %c0_30 = arith.constant 0 : index
      %34 = vector.load %arg15[%c25, %c0_30] : memref<304x128xf32, #tpu.memory_space<vmem>>, vector<256x128xf32>
      %35 = arith.mulf %34, %1 : vector<256x128xf32>
      %c3 = arith.constant 3 : index
      %c0_31 = arith.constant 0 : index
      %c0_32 = arith.constant 0 : index
      %36 = vector.load %arg4[%c3, %c0_31, %c0_32] : memref<5x128x128xf32, #tpu.memory_space<vmem>>, vector<1x128x128xf32>
      %37 = vector.shape_cast %36 : vector<1x128x128xf32> to vector<128x128xf32>
      %cst_33 = arith.constant dense<0.000000e+00> : vector<256x128xf32>
      %38 = tpu.matmul %35, %37, %cst_33 {dimension_numbers = #tpu.dot_dimension_numbers<[1], [0], [0], [1], [0, 0, 1, 1], [], []>} : vector<256x128xf32>, vector<128x128xf32>, vector<256x128xf32> -> vector<256x128xf32>
      %39 = arith.addf %33, %38 : vector<256x128xf32>
      %cst_34 = arith.constant 0.000000e+00 : f32
      %40 = vector.broadcast %cst_34 : f32 to vector<256x128xf32>
      %41 = arith.cmpf ogt, %39, %40 : vector<256x128xf32>
      %cst_35 = arith.constant 0.00999999977 : f32
      %42 = vector.broadcast %cst_35 : f32 to vector<256x128xf32>
      %43 = arith.mulf %42, %39 : vector<256x128xf32>
      %44 = arith.select %41, %39, %43 : vector<256x128xi1>, vector<256x128xf32>
      %c24_36 = arith.constant 24 : index
      %c0_37 = arith.constant 0 : index
      %45 = vector.load %arg15[%c24_36, %c0_37] : memref<304x128xf32, #tpu.memory_space<vmem>>, vector<256x128xf32>
      tpu.vector_store %arg15[%c24_36, %c0_37], %44 {strides = array<i32>} : memref<304x128xf32, #tpu.memory_space<vmem>>, vector<256x128xf32>,
      %c4_38 = arith.constant 4 : index
      %c0_39 = arith.constant 0 : index
      %c0_40 = arith.constant 0 : index
      %46 = vector.load %arg6[%c4_38, %c0_39, %c0_40] : memref<5x128x128xf32, #tpu.memory_space<vmem>>, vector<1x128x128xf32>
      %47 = vector.shape_cast %46 : vector<1x128x128xf32> to vector<128x128xf32>
      %cst_41 = arith.constant dense<0.000000e+00> : vector<256x128xf32>
      %48 = tpu.matmul %44, %47, %cst_41 {dimension_numbers = #tpu.dot_dimension_numbers<[1], [0], [0], [1], [0, 0, 1, 1], [], []>} : vector<256x128xf32>, vector<128x128xf32>, vector<256x128xf32> -> vector<256x128xf32>
      %c0_42 = arith.constant 0 : index
      %c0_43 = arith.constant 0 : index
      %49 = vector.load %arg7[%c0_42, %c0_43] : memref<1x128xf32, #tpu.memory_space<vmem>>, vector<1x128xf32>
      %50 = vector.broadcast %49 : vector<1x128xf32> to vector<256x128xf32>
      %51 = arith.addf %48, %50 : vector<256x128xf32>
      %c8_44 = arith.constant 8 : index
      %c0_45 = arith.constant 0 : index
      %52 = vector.load %arg15[%c8_44, %c0_45] : memref<304x128xf32, #tpu.memory_space<vmem>>, vector<256x128xf32>
      %c0_46 = arith.constant 0 : index
      %c0_47 = arith.constant 0 : index
      %c0_48 = arith.constant 0 : index
      %53 = vector.load %arg6[%c0_46, %c0_47, %c0_48] : memref<5x128x128xf32, #tpu.memory_space<vmem>>, vector<1x128x128xf32>
      %54 = vector.shape_cast %53 : vector<1x128x128xf32> to vector<128x128xf32>
      %cst_49 = arith.constant dense<0.000000e+00> : vector<256x128xf32>
      %55 = tpu.matmul %52, %54, %cst_49 {dimension_numbers = #tpu.dot_dimension_numbers<[1], [0], [0], [1], [0, 0, 1, 1], [], []>} : vector<256x128xf32>, vector<128x128xf32>, vector<256x128xf32> -> vector<256x128xf32>
      %56 = arith.addf %51, %55 : vector<256x128xf32>
      %c40_50 = arith.constant 40 : index
      %c0_51 = arith.constant 0 : index
      %57 = vector.load %arg15[%c40_50, %c0_51] : memref<304x128xf32, #tpu.memory_space<vmem>>, vector<256x128xf32>
      %c1_52 = arith.constant 1 : index
      %c0_53 = arith.constant 0 : index
      %c0_54 = arith.constant 0 : index
      %58 = vector.load %arg6[%c1_52, %c0_53, %c0_54] : memref<5x128x128xf32, #tpu.memory_space<vmem>>, vector<1x128x128xf32>
      %59 = vector.shape_cast %58 : vector<1x128x128xf32> to vector<128x128xf32>
      %cst_55 = arith.constant dense<0.000000e+00> : vector<256x128xf32>
      %60 = tpu.matmul %57, %59, %cst_55 {dimension_numbers = #tpu.dot_dimension_numbers<[1], [0], [0], [1], [0, 0, 1, 1], [], []>} : vector<256x128xf32>, vector<128x128xf32>, vector<256x128xf32> -> vector<256x128xf32>
      %61 = arith.addf %56, %60 : vector<256x128xf32>
      %c23_56 = arith.constant 23 : index
      %c0_57 = arith.constant 0 : index
      %62 = vector.load %arg15[%c23_56, %c0_57] : memref<304x128xf32, #tpu.memory_space<vmem>>, vector<256x128xf32>
      %63 = arith.mulf %62, %0 : vector<256x128xf32>
      %c2_58 = arith.constant 2 : index
      %c0_59 = arith.constant 0 : index
      %c0_60 = arith.constant 0 : index
      %64 = vector.load %arg6[%c2_58, %c0_59, %c0_60] : memref<5x128x128xf32, #tpu.memory_space<vmem>>, vector<1x128x128xf32>
      %65 = vector.shape_cast %64 : vector<1x128x128xf32> to vector<128x128xf32>
      %cst_61 = arith.constant dense<0.000000e+00> : vector<256x128xf32>
      %66 = tpu.matmul %63, %65, %cst_61 {dimension_numbers = #tpu.dot_dimension_numbers<[1], [0], [0], [1], [0, 0, 1, 1], [], []>} : vector<256x128xf32>, vector<128x128xf32>, vector<256x128xf32> -> vector<256x128xf32>
      %67 = arith.addf %61, %66 : vector<256x128xf32>
      %c25_62 = arith.constant 25 : index
      %c0_63 = arith.constant 0 : index
      %68 = vector.load %arg15[%c25_62, %c0_63] : memref<304x128xf32, #tpu.memory_space<vmem>>, vector<256x128xf32>
      %69 = arith.mulf %68, %1 : vector<256x128xf32>
      %c3_64 = arith.constant 3 : index
      %c0_65 = arith.constant 0 : index
      %c0_66 = arith.constant 0 : index
      %70 = vector.load %arg6[%c3_64, %c0_65, %c0_66] : memref<5x128x128xf32, #tpu.memory_space<vmem>>, vector<1x128x128xf32>
      %71 = vector.shape_cast %70 : vector<1x128x128xf32> to vector<128x128xf32>
      %cst_67 = arith.constant dense<0.000000e+00> : vector<256x128xf32>
      %72 = tpu.matmul %69, %71, %cst_67 {dimension_numbers = #tpu.dot_dimension_numbers<[1], [0], [0], [1], [0, 0, 1, 1], [], []>} : vector<256x128xf32>, vector<128x128xf32>, vector<256x128xf32> -> vector<256x128xf32>
      %73 = arith.addf %67, %72 : vector<256x128xf32>
      %c24_68 = arith.constant 24 : index
      %c0_69 = arith.constant 0 : index
      %74 = vector.load %arg15[%c24_68, %c0_69] : memref<304x128xf32, #tpu.memory_space<vmem>>, vector<256x128xf32>
      tpu.vector_store %arg15[%c24_68, %c0_69], %73 {strides = array<i32>} : memref<304x128xf32, #tpu.memory_space<vmem>>, vector<256x128xf32>,
      %c8_70 = arith.constant 8 : index
      %c0_71 = arith.constant 0 : index
      %75 = vector.load %arg15[%c8_70, %c0_71] : memref<304x128xf32, #tpu.memory_space<vmem>>, vector<288x128xf32>
      %76 = vector.extract_strided_slice %75 {offsets = [16, 0], sizes = [256, 128], strides = [1, 1]} : vector<288x128xf32> to vector<256x128xf32>
      %77 = vector.extract_strided_slice %75 {offsets = [0, 0], sizes = [256, 128], strides = [1, 1]} : vector<288x128xf32> to vector<256x128xf32>
      %c1_72 = arith.constant 1 : index
      %c0_73 = arith.constant 0 : index
      %c0_74 = arith.constant 0 : index
      %78 = vector.load %arg8[%c1_72, %c0_73, %c0_74] : memref<9x1x128xf32, #tpu.memory_space<vmem>>, vector<1x1x128xf32>
      %79 = vector.shape_cast %78 : vector<1x1x128xf32> to vector<1x128xf32>
      %80 = vector.broadcast %79 : vector<1x128xf32> to vector<256x128xf32>
      %81 = arith.mulf %77, %80 : vector<256x128xf32>
      %c4_75 = arith.constant 4 : index
      %c0_76 = arith.constant 0 : index
      %c0_77 = arith.constant 0 : index
      %82 = vector.load %arg8[%c4_75, %c0_76, %c0_77] : memref<9x1x128xf32, #tpu.memory_space<vmem>>, vector<1x1x128xf32>
      %83 = vector.shape_cast %82 : vector<1x1x128xf32> to vector<1x128xf32>
      %84 = vector.broadcast %83 : vector<1x128xf32> to vector<256x128xf32>
      %85 = arith.mulf %76, %84 : vector<256x128xf32>
      %86 = arith.addf %81, %85 : vector<256x128xf32>
      %87 = vector.extract_strided_slice %75 {offsets = [32, 0], sizes = [256, 128], strides = [1, 1]} : vector<288x128xf32> to vector<256x128xf32>
      %c7 = arith.constant 7 : index
      %c0_78 = arith.constant 0 : index
      %c0_79 = arith.constant 0 : index
      %88 = vector.load %arg8[%c7, %c0_78, %c0_79] : memref<9x1x128xf32, #tpu.memory_space<vmem>>, vector<1x1x128xf32>
      %89 = vector.shape_cast %88 : vector<1x1x128xf32> to vector<1x128xf32>
      %90 = vector.broadcast %89 : vector<1x128xf32> to vector<256x128xf32>
      %91 = arith.mulf %87, %90 : vector<256x128xf32>
      %92 = arith.addf %86, %91 : vector<256x128xf32>
      %c7_80 = arith.constant 7 : index
      %c0_81 = arith.constant 0 : index
      %93 = vector.load %arg15[%c7_80, %c0_81] : memref<304x128xf32, #tpu.memory_space<vmem>>, vector<288x128xf32>
      %94 = vector.extract_strided_slice %93 {offsets = [0, 0], sizes = [256, 128], strides = [1, 1]} : vector<288x128xf32> to vector<256x128xf32>
      %c0_82 = arith.constant 0 : index
      %c0_83 = arith.constant 0 : index
      %c0_84 = arith.constant 0 : index
      %95 = vector.load %arg8[%c0_82, %c0_83, %c0_84] : memref<9x1x128xf32, #tpu.memory_space<vmem>>, vector<1x1x128xf32>
      %96 = vector.shape_cast %95 : vector<1x1x128xf32> to vector<1x128xf32>
      %97 = vector.broadcast %96 : vector<1x128xf32> to vector<256x128xf32>
      %98 = arith.mulf %94, %97 : vector<256x128xf32>
      %99 = vector.extract_strided_slice %93 {offsets = [16, 0], sizes = [256, 128], strides = [1, 1]} : vector<288x128xf32> to vector<256x128xf32>
      %c3_85 = arith.constant 3 : index
      %c0_86 = arith.constant 0 : index
      %c0_87 = arith.constant 0 : index
      %100 = vector.load %arg8[%c3_85, %c0_86, %c0_87] : memref<9x1x128xf32, #tpu.memory_space<vmem>>, vector<1x1x128xf32>
      %101 = vector.shape_cast %100 : vector<1x1x128xf32> to vector<1x128xf32>
      %102 = vector.broadcast %101 : vector<1x128xf32> to vector<256x128xf32>
      %103 = arith.mulf %99, %102 : vector<256x128xf32>
      %104 = arith.addf %98, %103 : vector<256x128xf32>
      %105 = vector.extract_strided_slice %93 {offsets = [32, 0], sizes = [256, 128], strides = [1, 1]} : vector<288x128xf32> to vector<256x128xf32>
      %c6 = arith.constant 6 : index
      %c0_88 = arith.constant 0 : index
      %c0_89 = arith.constant 0 : index
      %106 = vector.load %arg8[%c6, %c0_88, %c0_89] : memref<9x1x128xf32, #tpu.memory_space<vmem>>, vector<1x1x128xf32>
      %107 = vector.shape_cast %106 : vector<1x1x128xf32> to vector<1x128xf32>
      %108 = vector.broadcast %107 : vector<1x128xf32> to vector<256x128xf32>
      %109 = arith.mulf %105, %108 : vector<256x128xf32>
      %110 = arith.addf %104, %109 : vector<256x128xf32>
      %111 = arith.mulf %110, %0 : vector<256x128xf32>
      %c9 = arith.constant 9 : index
      %c0_90 = arith.constant 0 : index
      %112 = vector.load %arg15[%c9, %c0_90] : memref<304x128xf32, #tpu.memory_space<vmem>>, vector<288x128xf32>
      %113 = vector.extract_strided_slice %112 {offsets = [0, 0], sizes = [256, 128], strides = [1, 1]} : vector<288x128xf32> to vector<256x128xf32>
      %c2_91 = arith.constant 2 : index
      %c0_92 = arith.constant 0 : index
      %c0_93 = arith.constant 0 : index
      %114 = vector.load %arg8[%c2_91, %c0_92, %c0_93] : memref<9x1x128xf32, #tpu.memory_space<vmem>>, vector<1x1x128xf32>
      %115 = vector.shape_cast %114 : vector<1x1x128xf32> to vector<1x128xf32>
      %116 = vector.broadcast %115 : vector<1x128xf32> to vector<256x128xf32>
      %117 = arith.mulf %113, %116 : vector<256x128xf32>
      %118 = vector.extract_strided_slice %112 {offsets = [16, 0], sizes = [256, 128], strides = [1, 1]} : vector<288x128xf32> to vector<256x128xf32>
      %c5 = arith.constant 5 : index
      %c0_94 = arith.constant 0 : index
      %c0_95 = arith.constant 0 : index
      %119 = vector.load %arg8[%c5, %c0_94, %c0_95] : memref<9x1x128xf32, #tpu.memory_space<vmem>>, vector<1x1x128xf32>
      %120 = vector.shape_cast %119 : vector<1x1x128xf32> to vector<1x128xf32>
      %121 = vector.broadcast %120 : vector<1x128xf32> to vector<256x128xf32>
      %122 = arith.mulf %118, %121 : vector<256x128xf32>
      %123 = arith.addf %117, %122 : vector<256x128xf32>
      %124 = vector.extract_strided_slice %112 {offsets = [32, 0], sizes = [256, 128], strides = [1, 1]} : vector<288x128xf32> to vector<256x128xf32>
      %c8_96 = arith.constant 8 : index
      %c0_97 = arith.constant 0 : index
      %c0_98 = arith.constant 0 : index
      %125 = vector.load %arg8[%c8_96, %c0_97, %c0_98] : memref<9x1x128xf32, #tpu.memory_space<vmem>>, vector<1x1x128xf32>
      %126 = vector.shape_cast %125 : vector<1x1x128xf32> to vector<1x128xf32>
      %127 = vector.broadcast %126 : vector<1x128xf32> to vector<256x128xf32>
      %128 = arith.mulf %124, %127 : vector<256x128xf32>
      %129 = arith.addf %123, %128 : vector<256x128xf32>
      %130 = arith.mulf %129, %1 : vector<256x128xf32>
      %c0_99 = arith.constant 0 : index
      %c0_100 = arith.constant 0 : index
      %131 = vector.load %arg9[%c0_99, %c0_100] : memref<1x128xf32, #tpu.memory_space<vmem>>, vector<1x128xf32>
      %132 = vector.broadcast %131 : vector<1x128xf32> to vector<256x128xf32>
      %133 = arith.addf %76, %132 : vector<256x128xf32>
      %134 = arith.addf %133, %92 : vector<256x128xf32>
      %135 = arith.addf %134, %111 : vector<256x128xf32>
      %136 = arith.addf %135, %130 : vector<256x128xf32>
      %cst_101 = arith.constant dense<0.000000e+00> : vector<128xf32>
      %137 = vector.multi_reduction <add>, %136, %cst_101 [0] : vector<256x128xf32> to vector<128xf32>
      %138 = vector.shape_cast %137 : vector<128xf32> to vector<1x128xf32>
      %cst_102 = arith.constant 3.906250e-03 : f32
      %139 = vector.broadcast %cst_102 : f32 to vector<1x128xf32>
      %140 = arith.mulf %138, %139 : vector<1x128xf32>
      %c0_103 = arith.constant 0 : index
      %c0_104 = arith.constant 0 : index
      %141 = vector.load %arg10[%c0_103, %c0_104] : memref<128x8xf32, #tpu.memory_space<vmem>>, vector<128x8xf32>
      %cst_105 = arith.constant dense<0.000000e+00> : vector<1x8xf32>
      %142 = tpu.matmul %140, %141, %cst_105 {dimension_numbers = #tpu.dot_dimension_numbers<[1], [0], [0], [1], [0, 0, 1, 1], [], []>} : vector<1x128xf32>, vector<128x8xf32>, vector<1x8xf32> -> vector<1x8xf32>
      %c0_106 = arith.constant 0 : index
      %c0_107 = arith.constant 0 : index
      %143 = vector.load %arg11[%c0_106, %c0_107] : memref<1x8xf32, #tpu.memory_space<vmem>>, vector<1x8xf32>
      %144 = arith.addf %142, %143 : vector<1x8xf32>
      %cst_108 = arith.constant 0.000000e+00 : f32
      %145 = vector.broadcast %cst_108 : f32 to vector<1x8xf32>
      %146 = arith.cmpf ogt, %144, %145 : vector<1x8xf32>
      %cst_109 = arith.constant 0.00999999977 : f32
      %147 = vector.broadcast %cst_109 : f32 to vector<1x8xf32>
      %148 = arith.mulf %147, %144 : vector<1x8xf32>
      %149 = arith.select %146, %144, %148 : vector<1x8xi1>, vector<1x8xf32>
      %c0_110 = arith.constant 0 : index
      %c0_111 = arith.constant 0 : index
      %150 = vector.load %arg12[%c0_110, %c0_111] : memref<8x128xf32, #tpu.memory_space<vmem>>, vector<8x128xf32>
      %cst_112 = arith.constant dense<0.000000e+00> : vector<1x128xf32>
      %151 = tpu.matmul %149, %150, %cst_112 {dimension_numbers = #tpu.dot_dimension_numbers<[1], [0], [0], [1], [0, 0, 1, 1], [], []>} : vector<1x8xf32>, vector<8x128xf32>, vector<1x128xf32> -> vector<1x128xf32>
      %c0_113 = arith.constant 0 : index
      %c0_114 = arith.constant 0 : index
      %152 = vector.load %arg13[%c0_113, %c0_114] : memref<1x128xf32, #tpu.memory_space<vmem>>, vector<1x128xf32>
      %153 = arith.addf %151, %152 : vector<1x128xf32>
      %cst_115 = arith.constant 0.000000e+00 : f32
      %154 = vector.broadcast %cst_115 : f32 to vector<1x128xf32>
      %155 = arith.subf %154, %153 : vector<1x128xf32>
      %156 = math.exp %155 : vector<1x128xf32>
      %cst_116 = arith.constant 1.000000e+00 : f32
      %157 = vector.broadcast %cst_116 : f32 to vector<1x128xf32>
      %158 = arith.addf %157, %156 : vector<1x128xf32>
      %cst_117 = arith.constant 1.000000e+00 : f32
      %159 = vector.broadcast %cst_117 : f32 to vector<1x128xf32>
      %160 = arith.divf %159, %158 : vector<1x128xf32>
      %161 = arith.index_cast %7 : i32 to index
      %c0_118 = arith.constant 0 : index
      %c0_119 = arith.constant 0 : index
      %162 = vector.load %arg1[%161, %c0_118, %c0_119] : memref<2x256x128xf32, #tpu.memory_space<vmem>>, vector<1x256x128xf32>
      %163 = vector.shape_cast %162 : vector<1x256x128xf32> to vector<256x128xf32>
      %164 = vector.broadcast %160 : vector<1x128xf32> to vector<256x128xf32>
      %165 = arith.mulf %136, %164 : vector<256x128xf32>
      %166 = arith.addf %163, %165 : vector<256x128xf32>
      %167 = arith.index_cast %7 : i32 to index
      %c0_120 = arith.constant 0 : index
      %c0_121 = arith.constant 0 : index
      %168 = vector.load %arg14[%167, %c0_120, %c0_121] : memref<2x256x128xf32, #tpu.memory_space<vmem>>, vector<1x256x128xf32>
      %169 = vector.shape_cast %168 : vector<1x256x128xf32> to vector<256x128xf32>
      %170 = vector.shape_cast %166 : vector<256x128xf32> to vector<1x256x128xf32>
      tpu.vector_store %arg14[%167, %c0_120, %c0_121], %170 {strides = array<i32>} : memref<2x256x128xf32, #tpu.memory_space<vmem>>, vector<1x256x128xf32>,
    }
    %c2_i32_6 = arith.constant 2 : i32
    return
  }
  func.func @transform_0(%arg0: i32) -> (i32, i32, i32) {
    %c0_i32 = arith.constant 0 : i32
    %c0_i32_0 = arith.constant 0 : i32
    %c0_i32_1 = arith.constant 0 : i32
    return %arg0, %c0_i32, %c0_i32_0 : i32, i32, i32
  }
  func.func @transform_1(%arg0: i32) -> (i32, i32) {
    %c0_i32 = arith.constant 0 : i32
    %c0_i32_0 = arith.constant 0 : i32
    %c0_i32_1 = arith.constant 0 : i32
    return %c0_i32, %c0_i32_0 : i32, i32
  }
  func.func @transform_2(%arg0: i32) -> (i32, i32) {
    %c0_i32 = arith.constant 0 : i32
    %c0_i32_0 = arith.constant 0 : i32
    %c0_i32_1 = arith.constant 0 : i32
    return %c0_i32, %c0_i32_0 : i32, i32
  }
  func.func @transform_3(%arg0: i32) -> (i32, i32, i32) {
    %c0_i32 = arith.constant 0 : i32
    %c0_i32_0 = arith.constant 0 : i32
    %c0_i32_1 = arith.constant 0 : i32
    %c0_i32_2 = arith.constant 0 : i32
    return %c0_i32, %c0_i32_0, %c0_i32_1 : i32, i32, i32
  }
  func.func @transform_4(%arg0: i32) -> (i32, i32) {
    %c0_i32 = arith.constant 0 : i32
    %c0_i32_0 = arith.constant 0 : i32
    %c0_i32_1 = arith.constant 0 : i32
    return %c0_i32, %c0_i32_0 : i32, i32
  }
  func.func @transform_5(%arg0: i32) -> (i32, i32, i32) {
    %c0_i32 = arith.constant 0 : i32
    %c0_i32_0 = arith.constant 0 : i32
    %c0_i32_1 = arith.constant 0 : i32
    %c0_i32_2 = arith.constant 0 : i32
    return %c0_i32, %c0_i32_0, %c0_i32_1 : i32, i32, i32
  }
  func.func @transform_6(%arg0: i32) -> (i32, i32) {
    %c0_i32 = arith.constant 0 : i32
    %c0_i32_0 = arith.constant 0 : i32
    %c0_i32_1 = arith.constant 0 : i32
    return %c0_i32, %c0_i32_0 : i32, i32
  }
  func.func @transform_7(%arg0: i32) -> (i32, i32, i32) {
    %c0_i32 = arith.constant 0 : i32
    %c0_i32_0 = arith.constant 0 : i32
    %c0_i32_1 = arith.constant 0 : i32
    %c0_i32_2 = arith.constant 0 : i32
    return %c0_i32, %c0_i32_0, %c0_i32_1 : i32, i32, i32
  }
  func.func @transform_8(%arg0: i32) -> (i32, i32) {
    %c0_i32 = arith.constant 0 : i32
    %c0_i32_0 = arith.constant 0 : i32
    %c0_i32_1 = arith.constant 0 : i32
    return %c0_i32, %c0_i32_0 : i32, i32
  }
  func.func @transform_9(%arg0: i32) -> (i32, i32) {
    %c0_i32 = arith.constant 0 : i32
    %c0_i32_0 = arith.constant 0 : i32
    %c0_i32_1 = arith.constant 0 : i32
    return %c0_i32, %c0_i32_0 : i32, i32
  }
  func.func @transform_10(%arg0: i32) -> (i32, i32) {
    %c0_i32 = arith.constant 0 : i32
    %c0_i32_0 = arith.constant 0 : i32
    %c0_i32_1 = arith.constant 0 : i32
    return %c0_i32, %c0_i32_0 : i32, i32
  }
  func.func @transform_11(%arg0: i32) -> (i32, i32) {
    %c0_i32 = arith.constant 0 : i32
    %c0_i32_0 = arith.constant 0 : i32
    %c0_i32_1 = arith.constant 0 : i32
    return %c0_i32, %c0_i32_0 : i32, i32
  }
  func.func @transform_12(%arg0: i32) -> (i32, i32) {
    %c0_i32 = arith.constant 0 : i32
    %c0_i32_0 = arith.constant 0 : i32
    %c0_i32_1 = arith.constant 0 : i32
    return %c0_i32, %c0_i32_0 : i32, i32
  }
  func.func @transform_13(%arg0: i32) -> (i32, i32, i32) {
    %c0_i32 = arith.constant 0 : i32
    %c0_i32_0 = arith.constant 0 : i32
    %c0_i32_1 = arith.constant 0 : i32
    return %arg0, %c0_i32, %c0_i32_0 : i32, i32, i32
  }
}

</mosaic_0001>

<bundles_post_ra>
// kernel: tpu_custom_call.1
= control target key start
LH: loop header
LB: loop body
LE: loop exit
PB: predicated region body
PF: predicated region fallthrough
CT: control target
= control target key end

     0   :  { %s10646_s0 = inlined_call_operand.hbm [shape: f32[4,256,128], index: 0, kind: input, shape index: {}]   ;;  %s10647_s1 = inlined_call_operand.hbm [shape: f32[256,128], index: 1, kind: input, shape index: {}]   ;;  %s10648_s2 = inlined_call_operand.hbm [shape: f32[256,128], index: 2, kind: input, shape index: {}]   ;;  %s10649_s3 = inlined_call_operand.hbm [shape: f32[5,128,128], index: 3, kind: input, shape index: {}]   ;;  %s10650_s4 = inlined_call_operand.vmem [shape: f32[1,128], index: 4, kind: input, shape index: {}]   ;;  %s10651_s5 = inlined_call_operand.hbm [shape: f32[5,128,128], index: 5, kind: input, shape index: {}]   ;;  %s10652_s6 = inlined_call_operand.vmem [shape: f32[1,128], index: 6, kind: input, shape index: {}]   ;;  %s10653_s7 = inlined_call_operand.vmem [shape: f32[9,1,128], index: 7, kind: input, shape index: {}]   ;;  %s10654_s8 = inlined_call_operand.vmem [shape: f32[1,128], index: 8, kind: input, shape index: {}]   ;;  %s10655_s9 = inlined_call_operand.vmem [shape: f32[128,8], index: 9, kind: input, shape index: {}]   ;;  %s10656_s10 = inlined_call_operand.vmem [shape: f32[1,8], index: 10, kind: input, shape index: {}]   ;;  %s10657_s11 = inlined_call_operand.vmem [shape: f32[8,128], index: 11, kind: input, shape index: {}]   ;;  %s10658_s12 = inlined_call_operand.vmem [shape: f32[1,128], index: 12, kind: input, shape index: {}]   ;;  %s10659_s13 = inlined_call_operand.hbm [shape: f32[4,256,128], index: 13, kind: output, shape index: {}]  }
   0x1   :  { %10783 = sst [smem:[#allocation192_spill]] %s10654_s8 }
   0x2   :  { %10784 = sst [smem:[#allocation193_spill]] %s10656_s10 }
   0x3   :  { %10785 = sst [smem:[#allocation194_spill]] %s10657_s11 }
   0x4   :  { %10786 = sst [smem:[#allocation195_spill]] %s10658_s12 }
   0x5   :  { %10787 = sst [smem:[#allocation196_spill]] %s10659_s13 }
   0x6   :  { %18 = vsyncpa [#allocation4], 0 }
   0x7   :  { %20 = vsyncpa [#allocation4 + $0x1], 0 }
   0x8   :  { %21 = vsyncpa [#allocation7], 0 }
   0x9   :  { %22 = vsyncpa [#allocation10], 0 }
   0xa   :  { %23 = vsyncpa [#allocation5], 0 }
   0xb   :  { %25 = vsyncpa [#allocation5 + $0x1], 0  ;;  %s7730_s25 = smov 0   ;;  %s7732_s26 = smov 0  }
   0xc   :  { %s7734_s27 = smov 0   ;;  %s7736_s28 = smov 0  }
   0xd LB: > { %10788 = sst [smem:[#allocation17_spill]] %s7628_s25  ;;  %s7751_s29 = sadd.s32 4294967295, %s7640_s28   ;;  %s7640_s28 = sphi %s7736_s28, %s11384_s28   ;;  %s7636_s27 = sphi %s7734_s27, %s11383_s27   ;;  %s7632_s26 = sphi %s7732_s26, %s11382_s26   ;;  %s7628_s25 = sphi %s7730_s25, %s11381_s25  }
   0xe   : > { %s5230_s30 = sadd.s32 4294967294, %s7640_s28   ;;  %p51_p0 = scmp.ne.s32.totalorder %s7632_s26, %s7628_s25 }
   0xf   : > { %p10663_p1 = scmp.eq.s32.totalorder %s7751_s29, 0  ;;  %p333_p3 = scmp.eq.s32.totalorder %s5230_s30, 1 }
  0x10   : > { %p5231_p5 = scmp.ge.s32.totalorder %s7640_s28, 1  ;;  %p340_p7 = scmp.lt.s32.totalorder %s7640_s28, 3 }
  0x11   : > { %p7760_p4 = por %p10663_p1, %p51_p0  ;;  %p7765_p6 = por %p333_p3, %p51_p0 }
  0x12   : > { %p7770_p8 = pnand %p5231_p5, %p340_p7  ;;  %s7646_s17 = smov [#allocation6]  }
  0x13   : > { %s10789_s14 = scalar_select %p7760_p4, 1, 0 }
  0x14   : > { %s10790_s15 = scalar_select %p7765_p6, 1, 0 }
  0x15   : > { %s10792_s16 = scalar_select %p7770_p8, 1, 0 }
  0x16   : > { %10791 = sst [smem:[#allocation18_spill]] %s10790_s15  ;;  %s352_s18 = sshll.u32 %s7646_s17, 4  ;;  %s7774_s18 = int_to_ptr.vmem [resolvable:$true] %s352_s18 }
  0x17   : > { %p7303_p9 = pneg %p7770_p8  ;;  %s7647_s20 = smov [#allocation9]  }
  0x18   : > { %s378_s21 = sshll.u32 %s7647_s20, 4  ;;  %s7648_s22 = smov [#allocation8]   ;;  %s7785_s21 = int_to_ptr.vmem [resolvable:$true] %s378_s21 }
  0x19   : > { %p7781_p11 = pnand %p7303_p9, %p10663_p1  ;;  %s7787_s23 = sshll.u32 %s7648_s22, 4  ;;  %s366_s23 = int_to_ptr.vmem [resolvable:$true] %s7787_s23 }
  0x1a   : > { %s7420_s17 = scalar_lea.hbm %s10647_s1, 4096 }
  0x1b   : > { %p7421_p12 = scmp.ne.s32.totalorder %s10647_s1, %s7420_s17  ;;  %p7797_p13 = pneg %p7781_p11 }
  0x1c   : > { %p7427_p5 = scmp.lt.u32.totalorder %s7420_s17, %s10647_s1 }
  0x1d   : > { %p7423_p0 = pnand %p7797_p13, %p7421_p12 }
  0x1f   : > { %p7424_p3 = pneg %p7423_p0 }
  0x21   : > { %p7429_p7 = pnand %p7427_p5, %p7424_p3 }
  0x23   : > { %7432 = shalt.err (!%p7429_p7)
}
  0x24   : > { %s7433_s25 = scalar_lea.vmem %s7774_s18, 4096  ;;  %p7441_p2 = scmp.lt.s32.totalorder %s7774_s18, %s7774_s18 }
  0x25   : > { %p7434_p9 = scmp.ne.s32.totalorder %s7774_s18, %s7433_s25  ;;  %p7442_p6 = scmp.lt.s32.totalorder %s7433_s25, %s7433_s25 }
  0x27   : > { %p7436_p10 = pnand %p7434_p9, %p7797_p13  ;;  %p7443_p12 = por %p7442_p6, %p7441_p2 }
  0x29   : > { %p7437_p1 = pneg %p7436_p10 }
  0x2b   : > { %p7444_p0 = pnand %p7443_p12, %p7437_p1 }
  0x2d   : > { %7447 = shalt.err (!%p7444_p0)
}
  0x2e   : > { %s7649_s15 = smov 128   ;;  %s7650_s24 = smov 8  }
  0x2f   : > { %7306 = dma.hbm_to_vmem [thread:$0]  (!%p7781_p11), %s10647_s1, 4096, %s7774_s18, [#allocation7], %s7649_s15, %s7649_s15, %s7650_s24  }
  0x30   : > { %s7448_s25 = scalar_lea.hbm %s10649_s3, 10240 }
  0x31   : > { %p7449_p1 = scmp.ne.s32.totalorder %s10649_s3, %s7448_s25  ;;  %p7455_p10 = scmp.lt.u32.totalorder %s7448_s25, %s10649_s3 }
  0x33   : > { %p7451_p2 = pnand %p7449_p1, %p7797_p13 }
  0x35   : > { %p7452_p6 = pneg %p7451_p2 }
  0x37   : > { %p7457_p3 = pnand %p7455_p10, %p7452_p6 }
  0x39   : > { %7460 = shalt.err (!%p7457_p3)
}
  0x3a   : > { %s7461_s18 = scalar_lea.vmem %s7785_s21, 10240  ;;  %p7469_p12 = scmp.lt.s32.totalorder %s7785_s21, %s7785_s21 }
  0x3b   : > { %p7462_p5 = scmp.ne.s32.totalorder %s7785_s21, %s7461_s18  ;;  %p7470_p0 = scmp.lt.s32.totalorder %s7461_s18, %s7461_s18 }
  0x3d   : > { %p7464_p7 = pnand %p7462_p5, %p7797_p13  ;;  %p7471_p1 = por %p7470_p0, %p7469_p12 }
  0x3f   : > { %p7465_p9 = pneg %p7464_p7 }
  0x41   : > { %p7472_p2 = pnand %p7471_p1, %p7465_p9 }
  0x43   : > { %7475 = shalt.err (!%p7472_p2)
}
  0x44   : > { %7312 = dma.hbm_to_vmem [thread:$0]  (!%p7781_p11), %s10649_s3, 10240, %s7785_s21, [#allocation10], %s7649_s15, %s7649_s15, %s7650_s24  }
  0x45   : > { %s7476_s30 = scalar_lea.hbm %s10648_s2, 4096 }
  0x46   : > { %p7477_p6 = scmp.ne.s32.totalorder %s10648_s2, %s7476_s30  ;;  %p7483_p5 = scmp.lt.u32.totalorder %s7476_s30, %s10648_s2 }
  0x48   : > { %p7479_p10 = pnand %p7477_p6, %p7797_p13 }
  0x4a   : > { %p7480_p3 = pneg %p7479_p10 }
  0x4c   : > { %p7485_p7 = pnand %p7483_p5, %p7480_p3 }
  0x4e   : > { %7488 = shalt.err (!%p7485_p7)
}
  0x4f   : > { %s7489_s18 = scalar_lea.vmem %s366_s23, 4096  ;;  %p7497_p1 = scmp.lt.s32.totalorder %s366_s23, %s366_s23 }
  0x50   : > { %p7490_p9 = scmp.ne.s32.totalorder %s366_s23, %s7489_s18  ;;  %p7498_p2 = scmp.lt.s32.totalorder %s7489_s18, %s7489_s18 }
  0x52   : > { %p7492_p12 = pnand %p7490_p9, %p7797_p13  ;;  %p7499_p4 = por %p7498_p2, %p7497_p1 }
  0x54   : > { %p7493_p0 = pneg %p7492_p12 }
  0x56   : > { %p7500_p8 = pnand %p7499_p4, %p7493_p0 }
  0x58   : > { %7503 = shalt.err (!%p7500_p8)
}
  0x59   : > { %7309 = dma.hbm_to_vmem [thread:$0]  (!%p7781_p11), %s10648_s2, 4096, %s366_s23, [#allocation7], %s7649_s15, %s7649_s15, %s7650_s24  }
  0x5a   : > { %s7651_s10 = smov [#allocation11]   ;;  %s7504_s17 = scalar_lea.hbm %s10651_s5, 10240 }
  0x5b   : > { %s394_s11 = sshll.u32 %s7651_s10, 4  ;;  %p7505_p4 = scmp.ne.s32.totalorder %s10651_s5, %s7504_s17  ;;  %s395_s11 = int_to_ptr.vmem [resolvable:$true] %s394_s11 }
  0x5c   : > { %p7511_p10 = scmp.lt.u32.totalorder %s7504_s17, %s10651_s5 }
  0x5d   : > { %p7507_p8 = pnand %p7505_p4, %p7797_p13 }
  0x5f   : > { %p7508_p6 = pneg %p7507_p8 }
  0x61   : > { %p7513_p3 = pnand %p7511_p10, %p7508_p6 }
  0x63   : > { %7516 = shalt.err (!%p7513_p3)
}
  0x64   : > { %s7517_s23 = scalar_lea.vmem %s395_s11, 10240  ;;  %p7525_p12 = scmp.lt.s32.totalorder %s395_s11, %s395_s11 }
  0x65   : > { %p7518_p5 = scmp.ne.s32.totalorder %s395_s11, %s7517_s23  ;;  %p7526_p0 = scmp.lt.s32.totalorder %s7517_s23, %s7517_s23 }
  0x67   : > { %p7520_p7 = pnand %p7518_p5, %p7797_p13  ;;  %p7527_p1 = por %p7526_p0, %p7525_p12 }
  0x69   : > { %p7521_p9 = pneg %p7520_p7 }
  0x6b   : > { %p7528_p2 = pnand %p7527_p1, %p7521_p9 }
  0x6d   : > { %7531 = shalt.err (!%p7528_p2)
}
  0x6e   : > { %7315 = dma.hbm_to_vmem [thread:$0]  (!%p7781_p11), %s10651_s5, 10240, %s395_s11, [#allocation10], %s7649_s15, %s7649_s15, %s7650_s24  }
  0x6f   : > { %s7891_s13 = sadd.s32 1, %s7640_s28   ;;  %s38_s19 = sadd.s32 1, %s7636_s27 }
  0x70   : > { %s35_s10 = ssub.s32 %s7640_s28, %s7891_s13  ;;  %p45_p13 = scmp.ne.s32.totalorder %s7636_s27, %s7632_s26 }
  0x71   : > { %p36_p4 = scmp.eq.s32.totalorder %s35_s10, 0  ;;  %p46_p8 = scmp.eq.s32.totalorder %s7640_s28, 0 }
  0x72   : > { %p10795_p6 = scmp.eq.s32.totalorder %s7751_s29, 1  ;;  %p7328_p3 = scmp.lt.s32.totalorder %s7640_s28, 2 }
  0x73   : > { %s7907_s30 = scalar_select %p36_p4, %s7636_s27, %s38_s19  }
  0x74   : > { %p7901_p10 = por %p10795_p6, %p45_p13  ;;  %p47_p5 = por %p46_p8, %p45_p13 }
  0x75   : > { %s429_s17 = sand.u32 1, %s7636_s27   ;;  %s5277_s11 = sshll.u32 %s7640_s28, 13 }
  0x76   : > { %s5237_s20 = sshll.u32 %s429_s17, 9  ;;  %s7914_s18 = scalar_lea.hbm %s10646_s0, %s5277_s11 }
  0x77   : > { %s433_s23 = scalar_lea.vmem [#allocation3], %s5237_s20  ;;  %p7918_p11 = pnand %p7328_p3, %p47_p5 }
  0x78   : > { %s441_s21 = sshll.u32 %s433_s23, 4  ;;  %s7922_s19 = scalar_lea.sflag [#allocation4], %s429_s17  ;;  %s7916_s21 = int_to_ptr.vmem [resolvable:$true] %s441_s21 }
  0x79   : > { %s7532_s10 = scalar_lea.hbm %s7914_s18, 8192  ;;  %p7534_p9 = pneg %p7918_p11 }
  0x7a   : > { %p7533_p7 = scmp.ne.s32.totalorder %s7914_s18, %s7532_s10  ;;  %s7537_s22 = scalar_lea.hbm %s10646_s0, 16384 }
  0x7b   : > { %p7538_p1 = scmp.lt.u32.totalorder %s7914_s18, %s10646_s0  ;;  %p7539_p2 = scmp.lt.u32.totalorder %s7537_s22, %s7532_s10 }
  0x7c   : > { %p7535_p12 = pnand %p7534_p9, %p7533_p7  ;;  %p7541_p4 = scmp.lt.u32.totalorder %s7532_s10, %s7914_s18 }
  0x7d   : > { %p7540_p13 = por %p7539_p2, %p7538_p1 }
  0x7e   : > { %p7536_p0 = pneg %p7535_p12 }
  0x7f   : > { %p7542_p8 = por %p7541_p4, %p7540_p13 }
  0x81   : > { %p7543_p6 = pnand %p7542_p8, %p7536_p0 }
  0x83   : > { %7546 = shalt.err (!%p7543_p6)
}
  0x84   : > { %s7547_s17 = scalar_lea.vmem %s7916_s21, 8192  ;;  %s7652_s20 = smov [#allocation3]  }
  0x85   : > { %p7548_p3 = scmp.ne.s32.totalorder %s7916_s21, %s7547_s17  ;;  %s7552_s11 = sshll.u32 %s7652_s20, 4  ;;  %s7553_s11 = int_to_ptr.vmem [resolvable:$false] %s7552_s11 }
  0x86   : > { %s7554_s25 = scalar_lea.vmem %s7553_s11, 16384  ;;  %p7555_p12 = scmp.lt.s32.totalorder %s7916_s21, %s7553_s11 }
  0x87   : > { %p7550_p5 = pnand %p7548_p3, %p7534_p9  ;;  %p7556_p1 = scmp.lt.s32.totalorder %s7554_s25, %s7547_s17 }
  0x89   : > { %p7551_p7 = pneg %p7550_p5  ;;  %p7557_p2 = por %p7556_p1, %p7555_p12 }
  0x8b   : > { %p7558_p13 = pnand %p7557_p2, %p7551_p7 }
  0x8d   : > { %7561 = shalt.err (!%p7558_p13)
}
  0x8e   : > { %7319 = dma.hbm_to_vmem [thread:$0]  (!%p7918_p11), %s7914_s18, 8192, %s7916_s21, %s7922_s19, %s7649_s15, %s7649_s15, %s7650_s24  }
  0x8f   : > { %p10798_p9 = scmp.ne.s32.totalorder %s10792_s16, 0 }
  0x91   : > { %453 = sbr.rel (%p10798_p9) target bundleno = 1958 (0x7a6), region = 72 }
  0x98   : > { %s7956_s10 = sand.u32 1, %s7632_s26   ;;  %p10799_p0 = scmp.ne.s32.totalorder %s10789_s14, 0 }
  0x99   : > { %s5242_s22 = sshll.u32 %s7956_s10, 9  ;;  %s456_s23 = scalar_lea.sflag [#allocation4], %s7956_s10 }
  0x9a   : > { %s7962_s8 = scalar_lea.vmem [#allocation3], %s5242_s22 }
  0x9b   : > { %7611 = dma.done.wait (%p10799_p0), %s456_s23, 8192  }
  0x9c   : > { %7613 = vsyncadd (%p10799_p0), %s456_s23, 4294959104  ;;  %p10800_p11 = scmp.eq.s32.totalorder %s7751_s29, 0 }
  0x9e   : > { %7615 = dma.done.wait (%p10800_p11), [#allocation7], 8192   ;;  %p10801_p4 = pmov %p10800_p11 }
  0xa0   : > { %7617 = vsyncadd (%p10801_p4), [#allocation7], 4294959104  ;;  %p10802_p8 = pmov %p10801_p4 }
  0xa1   : > { %p10803_p6 = pmov %p10801_p4 }
  0xa2   : > { %7619 = dma.done.wait (%p10802_p8), [#allocation10], 20480  }
  0xa3   : > { %7621 = vsyncadd (%p10803_p6), [#allocation10], 4294946816  ;;  %v7653_v0 = vmov 0.0   ;;  %v7976_v1 = vld [vmem:[#allocation6] sm:$0xff]  ;;  %v7978_v2 = vld [vmem:[#allocation6 + $0x8] sm:$0xff]  ;;  %s8106_s14 = scalar_lea.vmem [#allocation12], %s5242_s22 }
  0xa4   : > { %584 = vst [vmem:[#allocation2] sm:$0xff] %v7653_v0  ;;  %585 = vst [vmem:[#allocation2 + $0x8] sm:$0xff] %v7653_v0  ;;  %v7980_v3 = vld [vmem:[#allocation6 + $0x10] sm:$0xff]  ;;  %v7982_v4 = vld [vmem:[#allocation6 + $0x18] sm:$0xff]  ;;  %s8108_s16 = smov 0  }
  0xa5   : > { %586 = vst [vmem:[#allocation2 + $0x10] sm:$0xff] %v7653_v0  ;;  %587 = vst [vmem:[#allocation2 + $0x118] sm:$0xff] %v7653_v0  ;;  %v7984_v5 = vld [vmem:[#allocation6 + $0x20] sm:$0xff]  ;;  %v7986_v6 = vld [vmem:[#allocation6 + $0x28] sm:$0xff] }
  0xa6   : > { %588 = vst [vmem:[#allocation2 + $0x120] sm:$0xff] %v7653_v0  ;;  %589 = vst [vmem:[#allocation2 + $0x128] sm:$0xff] %v7653_v0  ;;  %v7988_v7 = vld [vmem:[#allocation6 + $0x30] sm:$0xff]  ;;  %v7990_v8 = vld [vmem:[#allocation6 + $0x38] sm:$0xff] }
  0xa7   : > { %10804 = vst [vmem:[#allocation19_spill] sm:$0xff] %v7976_v1  ;;  %10805 = vst [vmem:[#allocation20_spill] sm:$0xff] %v7978_v2  ;;  %v7992_v9 = vld [vmem:[#allocation6 + $0x40] sm:$0xff]  ;;  %v7994_v10 = vld [vmem:[#allocation6 + $0x48] sm:$0xff] }
  0xa8   : > { %10806 = vst [vmem:[#allocation21_spill] sm:$0xff] %v7980_v3  ;;  %10807 = vst [vmem:[#allocation22_spill] sm:$0xff] %v7982_v4  ;;  %v7996_v11 = vld [vmem:[#allocation6 + $0x50] sm:$0xff]  ;;  %v7998_v12 = vld [vmem:[#allocation6 + $0x58] sm:$0xff] }
  0xa9   : > { %10808 = vst [vmem:[#allocation23_spill] sm:$0xff] %v7984_v5  ;;  %10809 = vst [vmem:[#allocation24_spill] sm:$0xff] %v7986_v6  ;;  %v8000_v13 = vld [vmem:[#allocation6 + $0x60] sm:$0xff]  ;;  %v8002_v14 = vld [vmem:[#allocation6 + $0x68] sm:$0xff] }
  0xaa   : > { %10810 = vst [vmem:[#allocation25_spill] sm:$0xff] %v7988_v7  ;;  %10811 = vst [vmem:[#allocation26_spill] sm:$0xff] %v7990_v8  ;;  %v8004_v15 = vld [vmem:[#allocation6 + $0x70] sm:$0xff]  ;;  %v8006_v16 = vld [vmem:[#allocation6 + $0x78] sm:$0xff] }
  0xab   : > { %10812 = vst [vmem:[#allocation27_spill] sm:$0xff] %v7992_v9  ;;  %10813 = vst [vmem:[#allocation28_spill] sm:$0xff] %v7994_v10  ;;  %v8008_v17 = vld [vmem:[#allocation6 + $0x80] sm:$0xff]  ;;  %v8010_v18 = vld [vmem:[#allocation6 + $0x88] sm:$0xff] }
  0xac   : > { %10814 = vst [vmem:[#allocation29_spill] sm:$0xff] %v7996_v11  ;;  %10815 = vst [vmem:[#allocation30_spill] sm:$0xff] %v7998_v12  ;;  %v8012_v19 = vld [vmem:[#allocation6 + $0x90] sm:$0xff]  ;;  %v8014_v20 = vld [vmem:[#allocation6 + $0x98] sm:$0xff] }
  0xad   : > { %10816 = vst [vmem:[#allocation31_spill] sm:$0xff] %v8000_v13  ;;  %10817 = vst [vmem:[#allocation32_spill] sm:$0xff] %v8002_v14  ;;  %v8016_v21 = vld [vmem:[#allocation6 + $0xa0] sm:$0xff]  ;;  %v8018_v22 = vld [vmem:[#allocation6 + $0xa8] sm:$0xff] }
  0xae   : > { %10818 = vst [vmem:[#allocation33_spill] sm:$0xff] %v8004_v15  ;;  %10819 = vst [vmem:[#allocation34_spill] sm:$0xff] %v8006_v16  ;;  %v8020_v23 = vld [vmem:[#allocation6 + $0xb0] sm:$0xff]  ;;  %v8022_v24 = vld [vmem:[#allocation6 + $0xb8] sm:$0xff] }
  0xaf   : > { %10820 = vst [vmem:[#allocation35_spill] sm:$0xff] %v8008_v17  ;;  %10821 = vst [vmem:[#allocation36_spill] sm:$0xff] %v8010_v18  ;;  %v8024_v25 = vld [vmem:[#allocation6 + $0xc0] sm:$0xff]  ;;  %v8026_v26 = vld [vmem:[#allocation6 + $0xc8] sm:$0xff] }
  0xb0   : > { %10822 = vst [vmem:[#allocation37_spill] sm:$0xff] %v8012_v19  ;;  %10823 = vst [vmem:[#allocation38_spill] sm:$0xff] %v8014_v20  ;;  %v8028_v27 = vld [vmem:[#allocation6 + $0xd0] sm:$0xff]  ;;  %v8030_v28 = vld [vmem:[#allocation6 + $0xd8] sm:$0xff] }
  0xb1   : > { %10824 = vst [vmem:[#allocation39_spill] sm:$0xff] %v8016_v21  ;;  %10825 = vst [vmem:[#allocation40_spill] sm:$0xff] %v8018_v22  ;;  %v8032_v29 = vld [vmem:[#allocation6 + $0xe0] sm:$0xff]  ;;  %v8034_v30 = vld [vmem:[#allocation6 + $0xe8] sm:$0xff] }
  0xb2   : > { %10826 = vst [vmem:[#allocation41_spill] sm:$0xff] %v8020_v23  ;;  %10827 = vst [vmem:[#allocation42_spill] sm:$0xff] %v8022_v24  ;;  %v8036_v31 = vld [vmem:[#allocation6 + $0xf0] sm:$0xff]  ;;  %v8038_v32 = vld [vmem:[#allocation6 + $0xf8] sm:$0xff] }
  0xb3   : > { %10828 = vst [vmem:[#allocation43_spill] sm:$0xff] %v8024_v25  ;;  %10829 = vst [vmem:[#allocation44_spill] sm:$0xff] %v8026_v26  ;;  %v8040_v33 = vld [vmem:[#allocation8] sm:$0xff]  ;;  %v8042_v34 = vld [vmem:[#allocation8 + $0x8] sm:$0xff] }
  0xb4   : > { %10830 = vst [vmem:[#allocation45_spill] sm:$0xff] %v8028_v27  ;;  %10831 = vst [vmem:[#allocation46_spill] sm:$0xff] %v8030_v28  ;;  %v8044_v35 = vld [vmem:[#allocation8 + $0x10] sm:$0xff]  ;;  %v8046_v36 = vld [vmem:[#allocation8 + $0x18] sm:$0xff] }
  0xb5   : > { %10832 = vst [vmem:[#allocation47_spill] sm:$0xff] %v8032_v29  ;;  %10833 = vst [vmem:[#allocation48_spill] sm:$0xff] %v8034_v30  ;;  %v8048_v37 = vld [vmem:[#allocation8 + $0x20] sm:$0xff]  ;;  %v8050_v38 = vld [vmem:[#allocation8 + $0x28] sm:$0xff] }
  0xb6   : > { %10834 = vst [vmem:[#allocation49_spill] sm:$0xff] %v8036_v31  ;;  %10835 = vst [vmem:[#allocation50_spill] sm:$0xff] %v8038_v32  ;;  %v8052_v39 = vld [vmem:[#allocation8 + $0x30] sm:$0xff]  ;;  %v8054_v40 = vld [vmem:[#allocation8 + $0x38] sm:$0xff] }
  0xb7   : > { %10836 = vst [vmem:[#allocation51_spill] sm:$0xff] %v8040_v33  ;;  %10837 = vst [vmem:[#allocation52_spill] sm:$0xff] %v8042_v34  ;;  %v8056_v41 = vld [vmem:[#allocation8 + $0x40] sm:$0xff]  ;;  %v8058_v42 = vld [vmem:[#allocation8 + $0x48] sm:$0xff] }
  0xb8   : > { %10838 = vst [vmem:[#allocation53_spill] sm:$0xff] %v8044_v35  ;;  %10839 = vst [vmem:[#allocation54_spill] sm:$0xff] %v8046_v36  ;;  %v8060_v43 = vld [vmem:[#allocation8 + $0x50] sm:$0xff]  ;;  %v8062_v44 = vld [vmem:[#allocation8 + $0x58] sm:$0xff] }
  0xb9   : > { %10840 = vst [vmem:[#allocation55_spill] sm:$0xff] %v8048_v37  ;;  %10841 = vst [vmem:[#allocation56_spill] sm:$0xff] %v8050_v38  ;;  %v8064_v45 = vld [vmem:[#allocation8 + $0x60] sm:$0xff]  ;;  %v8066_v46 = vld [vmem:[#allocation8 + $0x68] sm:$0xff] }
  0xba   : > { %10842 = vst [vmem:[#allocation57_spill] sm:$0xff] %v8052_v39  ;;  %10843 = vst [vmem:[#allocation58_spill] sm:$0xff] %v8054_v40  ;;  %v8068_v47 = vld [vmem:[#allocation8 + $0x70] sm:$0xff]  ;;  %v8070_v48 = vld [vmem:[#allocation8 + $0x78] sm:$0xff] }
  0xbb   : > { %10844 = vst [vmem:[#allocation59_spill] sm:$0xff] %v8056_v41  ;;  %10845 = vst [vmem:[#allocation60_spill] sm:$0xff] %v8058_v42  ;;  %v8072_v49 = vld [vmem:[#allocation8 + $0x80] sm:$0xff]  ;;  %v8074_v50 = vld [vmem:[#allocation8 + $0x88] sm:$0xff] }
  0xbc   : > { %10846 = vst [vmem:[#allocation61_spill] sm:$0xff] %v8060_v43  ;;  %10847 = vst [vmem:[#allocation62_spill] sm:$0xff] %v8062_v44  ;;  %v8076_v51 = vld [vmem:[#allocation8 + $0x90] sm:$0xff]  ;;  %v8078_v52 = vld [vmem:[#allocation8 + $0x98] sm:$0xff] }
  0xbd   : > { %10848 = vst [vmem:[#allocation63_spill] sm:$0xff] %v8064_v45  ;;  %10849 = vst [vmem:[#allocation64_spill] sm:$0xff] %v8066_v46  ;;  %v8080_v53 = vld [vmem:[#allocation8 + $0xa0] sm:$0xff]  ;;  %v8082_v54 = vld [vmem:[#allocation8 + $0xa8] sm:$0xff] }
  0xbe   : > { %10850 = vst [vmem:[#allocation65_spill] sm:$0xff] %v8068_v47  ;;  %10851 = vst [vmem:[#allocation66_spill] sm:$0xff] %v8070_v48  ;;  %v8084_v55 = vld [vmem:[#allocation8 + $0xb0] sm:$0xff]  ;;  %v8086_v56 = vld [vmem:[#allocation8 + $0xb8] sm:$0xff] }
  0xbf   : > { %10852 = vst [vmem:[#allocation67_spill] sm:$0xff] %v8072_v49  ;;  %10853 = vst [vmem:[#allocation68_spill] sm:$0xff] %v8074_v50  ;;  %v8088_v57 = vld [vmem:[#allocation8 + $0xc0] sm:$0xff]  ;;  %v8090_v58 = vld [vmem:[#allocation8 + $0xc8] sm:$0xff] }
  0xc0   : > { %10854 = vst [vmem:[#allocation69_spill] sm:$0xff] %v8076_v51  ;;  %10855 = vst [vmem:[#allocation70_spill] sm:$0xff] %v8078_v52  ;;  %v8092_v59 = vld [vmem:[#allocation8 + $0xd0] sm:$0xff]  ;;  %v8094_v60 = vld [vmem:[#allocation8 + $0xd8] sm:$0xff] }
  0xc1   : > { %10856 = vst [vmem:[#allocation71_spill] sm:$0xff] %v8080_v53  ;;  %10857 = vst [vmem:[#allocation72_spill] sm:$0xff] %v8082_v54  ;;  %v8096_v61 = vld [vmem:[#allocation8 + $0xe0] sm:$0xff]  ;;  %v8098_v62 = vld [vmem:[#allocation8 + $0xe8] sm:$0xff] }
  0xc2   : > { %10858 = vst [vmem:[#allocation73_spill] sm:$0xff] %v8084_v55  ;;  %10859 = vst [vmem:[#allocation74_spill] sm:$0xff] %v8086_v56  ;;  %v8100_v63 = vld [vmem:[#allocation8 + $0xf0] sm:$0xff]  ;;  %v8102_v0 = vld [vmem:[#allocation8 + $0xf8] sm:$0xff] }
  0xc3   : > { %10860 = vst [vmem:[#allocation75_spill] sm:$0xff] %v8088_v57  ;;  %10861 = vst [vmem:[#allocation76_spill] sm:$0xff] %v8090_v58 }
  0xc4   : > { %10862 = vst [vmem:[#allocation77_spill] sm:$0xff] %v8092_v59  ;;  %10863 = vst [vmem:[#allocation78_spill] sm:$0xff] %v8094_v60 }
  0xc5   : > { %10864 = vst [vmem:[#allocation79_spill] sm:$0xff] %v8096_v61  ;;  %10865 = vst [vmem:[#allocation80_spill] sm:$0xff] %v8098_v62 }
  0xc6   : > { %10866 = vst [vmem:[#allocation81_spill] sm:$0xff] %v8100_v63  ;;  %10867 = vst [vmem:[#allocation82_spill] sm:$0xff] %v8102_v0 }
  0xc7 LB: >> { %v10868_v1 = vld [vmem:[#allocation19_spill] sm:$0xff]  ;;  %v10869_v2 = vld [vmem:[#allocation20_spill] sm:$0xff]  ;;  %v10870_v3 = vld [vmem:[#allocation21_spill] sm:$0xff]  ;;  %s10713_s15 = sshll.u32 %s7644_s16, 8  ;;  %s10981_s23 = sld [smem:[#allocation192_spill]]  ;;  %s7644_s16 = sphi %s8108_s16, %s595_s16  }
  0xc8   : >> { %v10871_v4 = vld [vmem:[#allocation22_spill] sm:$0xff]  ;;  %v10872_v5 = vld [vmem:[#allocation23_spill] sm:$0xff]  ;;  %v10873_v6 = vld [vmem:[#allocation24_spill] sm:$0xff]  ;;  %s8117_s24 = scalar_lea.vmem %s7962_s8, %s10713_s15 [#allocation3]  ;;  %s11097_s21 = sld [smem:[#allocation194_spill]] }
  0xc9   : >> { %v10874_v7 = vld [vmem:[#allocation25_spill] sm:$0xff]  ;;  %v10875_v8 = vld [vmem:[#allocation26_spill] sm:$0xff]  ;;  %v10876_v9 = vld [vmem:[#allocation27_spill] sm:$0xff]  ;;  %s11370_s22 = sld [smem:[#allocation193_spill]]  ;;  %s11371_s19 = sld [smem:[#allocation195_spill]] }
  0xca   : >> { %v10877_v10 = vld [vmem:[#allocation28_spill] sm:$0xff]  ;;  %v10878_v11 = vld [vmem:[#allocation29_spill] sm:$0xff]  ;;  %v10879_v12 = vld [vmem:[#allocation30_spill] sm:$0xff]  ;;  %s11373_s17 = sshll.u32 %s7644_s16, 8  ;;  %s595_s16 = sadd.s32 1, %s7644_s16  }
  0xcb   : >> { %v10880_v13 = vld [vmem:[#allocation31_spill] sm:$0xff]  ;;  %v10881_v14 = vld [vmem:[#allocation32_spill] sm:$0xff]  ;;  %v10882_v15 = vld [vmem:[#allocation33_spill] sm:$0xff]  ;;  %s10527_s20 = scalar_lea.vmem %s8106_s14, %s11373_s17 [#allocation12]  ;;  %p592_p3 = scmp.ge.s32.totalorder %s595_s16, 2  }
  0xcc   : >> { %v10883_v16 = vld [vmem:[#allocation34_spill] sm:$0xff]  ;;  %v10884_v17 = vld [vmem:[#allocation35_spill] sm:$0xff]  ;;  %v10885_v18 = vld [vmem:[#allocation36_spill] sm:$0xff]  ;;  %s11375_s25 = sld [smem:[#allocation196_spill]] (%p592_p3)  ;;  %s7657_s8 = smov (%p592_p3), [#allocation12]  }
  0xcd   : >> { %v10886_v19 = vld [vmem:[#allocation37_spill] sm:$0xff]  ;;  %v663_v61 = vld [vmem:[#allocation9 + $0x200] sm:$0xff]  ;;  %v664_v60 = vld [vmem:[#allocation9 + $0x208] sm:$0xff]  ;;  %s7566_s16 = sshll.u32 (%p592_p3), %s7657_s8, 4  ;;  %s7567_s16 = int_to_ptr.vmem [resolvable:$false] %s7566_s16 }
  0xce   : >> { %v665_v62 = vld [vmem:[#allocation9 + $0x210] sm:$0xff]  ;;  %v6619_v59 = vpack.c.bf16 %v664_v60, %v663_v61  ;;  %v666_v63 = vld [vmem:[#allocation9 + $0x218] sm:$0xff]  ;;  %v667_v0 = vld [vmem:[#allocation9 + $0x220] sm:$0xff] }
  0xcf   : >> { %v6623_v58 = vpack.c.bf16 %v666_v63, %v665_v62  ;;  %v668_v57 = vld [vmem:[#allocation9 + $0x228] sm:$0xff]  ;;  %v8120_v55 = vld [vmem:[%s8117_s24] sm:$0xff]  ;;  %v8123_v60 = vld [vmem:[%s8117_s24 + $0x8] sm:$0xff] }
  0xd0   : >> { %6620 = vmatprep.subr.bf16.mxu0 %v6619_v59  ;;  %v6627_v56 = vpack.c.bf16 %v668_v57, %v667_v0  ;;  %v669_v61 = vld [vmem:[#allocation9 + $0x230] sm:$0xff]  ;;  %v670_v62 = vld [vmem:[#allocation9 + $0x238] sm:$0xff]  ;;  %630 = vst [vmem:[#allocation2 + $0x18] sm:$0xff] %v8120_v55  ;;  %5811 = vmatprep.mubr.f32.mxu0 %v8120_v55  ;;  %631 = vst [vmem:[#allocation2 + $0x20] sm:$0xff] %v8123_v60 }
  0xd1   : >> { %6622 = vmatpush3.bf16.msra.mxu0 %v6619_v59  ;;  %v8129_v63 = vld [vmem:[%s8117_s24 + $0x10] sm:$0xff]  ;;  %v8133_v57 = vld [vmem:[%s8117_s24 + $0x18] sm:$0xff]  ;;  %v8136_v59 = vld [vmem:[%s8117_s24 + $0x20] sm:$0xff]  ;;  %v6631_v53 = vpack.c.bf16 %v670_v62, %v669_v61 }
  0xd2   : >> { %6624 = vmatprep.subr.bf16.mxu0 %v6623_v58  ;;  %632 = vst [vmem:[#allocation2 + $0x28] sm:$0xff] %v8129_v63  ;;  %v8139_v0 = vld [vmem:[%s8117_s24 + $0x28] sm:$0xff]  ;;  %633 = vst [vmem:[#allocation2 + $0x30] sm:$0xff] %v8133_v57  ;;  %v8145_v54 = vld [vmem:[%s8117_s24 + $0x30] sm:$0xff] }
  0xd3   : >> { %634 = vst [vmem:[#allocation2 + $0x38] sm:$0xff] %v8136_v59  ;;  %635 = vst [vmem:[#allocation2 + $0x40] sm:$0xff] %v8139_v0  ;;  %v8149_v52 = vld [vmem:[%s8117_s24 + $0x38] sm:$0xff]  ;;  %v8152_v51 = vld [vmem:[%s8117_s24 + $0x40] sm:$0xff] }
  0xd4   : >> { %636 = vst [vmem:[#allocation2 + $0x48] sm:$0xff] %v8145_v54  ;;  %v671_v50 = vld [vmem:[#allocation9 + $0x240] sm:$0xff]  ;;  %v672_v49 = vld [vmem:[#allocation9 + $0x248] sm:$0xff]  ;;  %637 = vst [vmem:[#allocation2 + $0x50] sm:$0xff] %v8149_v52 }
  0xd5   : >> { %6626 = vmatpush3.bf16.msra.mxu0 %v6623_v58  ;;  %v8155_v58 = vld [vmem:[%s8117_s24 + $0x48] sm:$0xff]  ;;  %638 = vst [vmem:[#allocation2 + $0x58] sm:$0xff] %v8152_v51  ;;  %v8161_v61 = vld [vmem:[%s8117_s24 + $0x50] sm:$0xff]  ;;  %v8165_v62 = vld [vmem:[%s8117_s24 + $0x58] sm:$0xff]  ;;  %v6635_v45 = vpack.c.bf16 %v672_v49, %v671_v50 }
  0xd6   : >> { %6628 = vmatprep.subr.bf16.mxu0 %v6627_v56  ;;  %639 = vst [vmem:[#allocation2 + $0x60] sm:$0xff] %v8155_v58  ;;  %640 = vst [vmem:[#allocation2 + $0x68] sm:$0xff] %v8161_v61  ;;  %v8168_v48 = vld [vmem:[%s8117_s24 + $0x60] sm:$0xff]  ;;  %v8171_v47 = vld [vmem:[%s8117_s24 + $0x68] sm:$0xff] }
  0xd7   : >> { %641 = vst [vmem:[#allocation2 + $0x70] sm:$0xff] %v8165_v62  ;;  %642 = vst [vmem:[#allocation2 + $0x78] sm:$0xff] %v8168_v48  ;;  %v8177_v46 = vld [vmem:[%s8117_s24 + $0x70] sm:$0xff]  ;;  %v8181_v44 = vld [vmem:[%s8117_s24 + $0x78] sm:$0xff] }
  0xd8   : >> { %643 = vst [vmem:[#allocation2 + $0x80] sm:$0xff] %v8171_v47  ;;  %644 = vst [vmem:[#allocation2 + $0x88] sm:$0xff] %v8177_v46  ;;  %v8184_v43 = vld [vmem:[%s8117_s24 + $0x80] sm:$0xff]  ;;  %v674_v41 = vld [vmem:[#allocation9 + $0x258] sm:$0xff] }
  0xd9   : >> { %6630 = vmatpush3.bf16.msra.mxu0 %v6627_v56  ;;  %v8187_v56 = vld [vmem:[%s8117_s24 + $0x88] sm:$0xff]  ;;  %v673_v42 = vld [vmem:[#allocation9 + $0x250] sm:$0xff]  ;;  %645 = vst [vmem:[#allocation2 + $0x90] sm:$0xff] %v8181_v44  ;;  %646 = vst [vmem:[#allocation2 + $0x98] sm:$0xff] %v8184_v43 }
  0xda   : >> { %6632 = vmatprep.subr.bf16.mxu0 %v6631_v53  ;;  %647 = vst [vmem:[#allocation2 + $0xa0] sm:$0xff] %v8187_v56  ;;  %v8193_v49 = vld [vmem:[%s8117_s24 + $0x90] sm:$0xff]  ;;  %v8197_v50 = vld [vmem:[%s8117_s24 + $0x98] sm:$0xff]  ;;  %v8200_v40 = vld [vmem:[%s8117_s24 + $0xa0] sm:$0xff]  ;;  %v6639_v37 = vpack.c.bf16 %v674_v41, %v673_v42 }
  0xdb   : >> { %648 = vst [vmem:[#allocation2 + $0xa8] sm:$0xff] %v8193_v49  ;;  %v8203_v39 = vld [vmem:[%s8117_s24 + $0xa8] sm:$0xff]  ;;  %649 = vst [vmem:[#allocation2 + $0xb0] sm:$0xff] %v8197_v50  ;;  %v8209_v38 = vld [vmem:[%s8117_s24 + $0xb0] sm:$0xff] }
  0xdc   : >> { %650 = vst [vmem:[#allocation2 + $0xb8] sm:$0xff] %v8200_v40  ;;  %651 = vst [vmem:[#allocation2 + $0xc0] sm:$0xff] %v8203_v39  ;;  %v8213_v36 = vld [vmem:[%s8117_s24 + $0xb8] sm:$0xff]  ;;  %v8216_v35 = vld [vmem:[%s8117_s24 + $0xc0] sm:$0xff] }
  0xdd   : >> { %6634 = vmatpush3.bf16.msra.mxu0 %v6631_v53  ;;  %652 = vst [vmem:[#allocation2 + $0xc8] sm:$0xff] %v8209_v38  ;;  %v8219_v53 = vld [vmem:[%s8117_s24 + $0xc8] sm:$0xff]  ;;  %v675_v34 = vld [vmem:[#allocation9 + $0x260] sm:$0xff]  ;;  %v676_v33 = vld [vmem:[#allocation9 + $0x268] sm:$0xff] }
  0xde   : >> { %6636 = vmatprep.subr.bf16.mxu0 %v6635_v45  ;;  %653 = vst [vmem:[#allocation2 + $0xd0] sm:$0xff] %v8213_v36  ;;  %654 = vst [vmem:[#allocation2 + $0xd8] sm:$0xff] %v8216_v35  ;;  %v8225_v32 = vld [vmem:[%s8117_s24 + $0xd0] sm:$0xff]  ;;  %v8229_v41 = vld [vmem:[%s8117_s24 + $0xd8] sm:$0xff]  ;;  %v6643_v29 = vpack.c.bf16 %v676_v33, %v675_v34 }
  0xdf   : >> { %655 = vst [vmem:[#allocation2 + $0xe0] sm:$0xff] %v8219_v53  ;;  %656 = vst [vmem:[#allocation2 + $0xe8] sm:$0xff] %v8225_v32  ;;  %v8232_v42 = vld [vmem:[%s8117_s24 + $0xe0] sm:$0xff]  ;;  %v8235_v31 = vld [vmem:[%s8117_s24 + $0xe8] sm:$0xff] }
  0xe0   : >> { %657 = vst [vmem:[#allocation2 + $0xf0] sm:$0xff] %v8229_v41  ;;  %658 = vst [vmem:[#allocation2 + $0xf8] sm:$0xff] %v8232_v42  ;;  %v8241_v30 = vld [vmem:[%s8117_s24 + $0xf0] sm:$0xff]  ;;  %v8245_v28 = vld [vmem:[%s8117_s24 + $0xf8] sm:$0xff] }
  0xe1   : >> { %6638 = vmatpush3.bf16.msra.mxu0 %v6635_v45  ;;  %659 = vst [vmem:[#allocation2 + $0x100] sm:$0xff] %v8235_v31  ;;  %660 = vst [vmem:[#allocation2 + $0x108] sm:$0xff] %v8241_v30  ;;  %v677_v27 = vld [vmem:[#allocation9 + $0x270] sm:$0xff]  ;;  %v678_v26 = vld [vmem:[#allocation9 + $0x278] sm:$0xff] }
  0xe2   : >> { %6640 = vmatprep.subr.bf16.mxu0 %v6639_v37  ;;  %661 = vst [vmem:[#allocation2 + $0x110] sm:$0xff] %v8245_v28  ;;  %v6647_v45 = vpack.c.bf16 %v678_v26, %v677_v27  ;;  %v943_v25 = vld [vmem:[#allocation9] sm:$0xff]  ;;  %v944_v24 = vld [vmem:[#allocation9 + $0x8] sm:$0xff]  ;;  %v945_v22 = vld [vmem:[#allocation9 + $0x10] sm:$0xff] }
  0xe3   : >> { %v6651_v23 = vpack.c.bf16 %v944_v24, %v943_v25  ;;  %v946_v21 = vld [vmem:[#allocation9 + $0x18] sm:$0xff]  ;;  %v947_v34 = vld [vmem:[#allocation9 + $0x20] sm:$0xff]  ;;  %v948_v20 = vld [vmem:[#allocation9 + $0x28] sm:$0xff] }
  0xe4   : >> { %v6655_v33 = vpack.c.bf16 %v946_v21, %v945_v22  ;;  %v949_v26 = vld [vmem:[#allocation9 + $0x30] sm:$0xff]  ;;  %v950_v27 = vld [vmem:[#allocation9 + $0x38] sm:$0xff]  ;;  %v951_v25 = vld [vmem:[#allocation9 + $0x40] sm:$0xff] }
  0xe5   : >> { %6642 = vmatpush3.bf16.msra.mxu0 %v6639_v37  ;;  %v6659_v37 = vpack.c.bf16 %v948_v20, %v947_v34  ;;  %v6663_v24 = vpack.c.bf16 %v950_v27, %v949_v26  ;;  %v952_v21 = vld [vmem:[#allocation9 + $0x48] sm:$0xff]  ;;  %v954_v20 = vld [vmem:[#allocation9 + $0x58] sm:$0xff] }
  0xe6   : >> { %6644 = vmatprep.subr.bf16.mxu0 %v6643_v29  ;;  %v6667_v22 = vpack.c.bf16 %v952_v21, %v951_v25  ;;  %v958_v26 = vld [vmem:[#allocation9 + $0x78] sm:$0xff]  ;;  %v1250_v25 = vld [vmem:[#allocation9 + $0x88] sm:$0xff] }
  0xe9   : >> { %6646 = vmatpush3.bf16.msra.mxu0 %v6643_v29 }
  0xea   : >> { %6648 = vmatprep.subr.bf16.mxu0 %v6647_v45 }
  0xed   : >> { %6650 = vmatpush3.bf16.msra.mxu0 %v6647_v45  ;;  %v955_v45 = vld [vmem:[#allocation9 + $0x60] sm:$0xff] }
  0xee   : >> { %6652 = vmatprep.subr.bf16.mxu0 %v6651_v23 }
  0xf0   : >> { %5812 = vmatmul.mubr.f32.vlgmr.msra.gmra.mrb[0].mxu0 %v8123_v60 }
  0xf1   : >> { %6654 = vmatpush3.bf16.msra.mxu0 %v6651_v23  ;;  %5814 = vmatprep.mubr.f32.mxu0 %v8129_v63  ;;  %v953_v23 = vld [vmem:[#allocation9 + $0x50] sm:$0xff] }
  0xf2   : >> { %6656 = vmatprep.subr.bf16.mxu0 %v6655_v33  ;;  %v6671_v29 = vpack.c.bf16 %v954_v20, %v953_v23  ;;  %v1251_v23 = vld [vmem:[#allocation9 + $0x90] sm:$0xff]  ;;  %v1252_v20 = vld [vmem:[#allocation9 + $0x98] sm:$0xff] }
  0xf4   : >> { %5815 = vmatmul.mubr.f32.gmra.mrb[2].mxu0 %v8133_v57 }
  0xf5   : >> { %5817 = vmatprep.mubr.f32.mxu0 %v8136_v59  ;;  %6658 = vmatpush3.bf16.msra.mxu0 %v6655_v33  ;;  %v956_v33 = vld [vmem:[#allocation9 + $0x68] sm:$0xff] }
  0xf6   : >> { %6660 = vmatprep.subr.bf16.mxu0 %v6659_v37  ;;  %v6675_v34 = vpack.c.bf16 %v956_v33, %v955_v45  ;;  %v6687_v45 = vpack.c.bf16 %v1252_v20, %v1251_v23  ;;  %v1253_v33 = vld [vmem:[#allocation9 + $0xa0] sm:$0xff]  ;;  %v1260_v23 = vld [vmem:[#allocation9 + $0xd8] sm:$0xff] }
  0xf7   : >> { %v1261_v20 = vld [vmem:[#allocation9 + $0xe0] sm:$0xff] }
  0xf8   : >> { %5818 = vmatmul.mubr.f32.gmra.mrb[4].mxu0 %v8139_v0 }
  0xf9   : >> { %5820 = vmatprep.mubr.f32.mxu0 %v8145_v54  ;;  %6662 = vmatpush3.bf16.msra.mxu0 %v6659_v37  ;;  %v957_v37 = vld [vmem:[#allocation9 + $0x70] sm:$0xff] }
  0xfa   : >> { %6664 = vmatprep.subr.bf16.mxu0 %v6663_v24  ;;  %v6679_v27 = vpack.c.bf16 %v958_v26, %v957_v37  ;;  %v1255_v26 = vld [vmem:[#allocation9 + $0xb0] sm:$0xff] }
  0xfc   : >> { %5821 = vmatmul.mubr.f32.gmra.mrb[6].mxu0 %v8149_v52 }
  0xfd   : >> { %5823 = vmatprep.mubr.f32.mxu0 %v8152_v51  ;;  %6666 = vmatpush3.bf16.msra.mxu0 %v6663_v24  ;;  %v1249_v24 = vld [vmem:[#allocation9 + $0x80] sm:$0xff] }
  0xfe   : >> { %6668 = vmatprep.subr.bf16.mxu0 %v6667_v22  ;;  %v6683_v21 = vpack.c.bf16 %v1250_v25, %v1249_v24  ;;  %v1257_v25 = vld [vmem:[#allocation9 + $0xc0] sm:$0xff] }
 0x100   : >> { %5824 = vmatmul.mubr.f32.gmra.mrb[8].mxu0 %v8155_v58 }
 0x101   : >> { %5826 = vmatprep.mubr.f32.mxu0 %v8161_v61  ;;  %6670 = vmatpush3.bf16.msra.mxu0 %v6667_v22  ;;  %v911_v22 = vld [vmem:[#allocation2 + $0x8] sm:$0xff] }
 0x102   : >> { %6672 = vmatprep.subr.bf16.mxu0 %v6671_v29 }
 0x104   : >> { %5827 = vmatmul.mubr.f32.gmra.mrb[10].mxu0 %v8165_v62 }
 0x105   : >> { %5829 = vmatprep.mubr.f32.mxu0 %v8168_v48  ;;  %6674 = vmatpush3.bf16.msra.mxu0 %v6671_v29  ;;  %v912_v29 = vld [vmem:[#allocation2 + $0x10] sm:$0xff] }
 0x106   : >> { %6676 = vmatprep.subr.bf16.mxu0 %v6675_v34 }
 0x108   : >> { %5830 = vmatmul.mubr.f32.gmra.mrb[12].mxu0 %v8171_v47 }
 0x109   : >> { %5832 = vmatprep.mubr.f32.mxu0 %v8177_v46  ;;  %6678 = vmatpush3.bf16.msra.mxu0 %v6675_v34  ;;  %v1254_v34 = vld [vmem:[#allocation9 + $0xa8] sm:$0xff] }
 0x10a   : >> { %6680 = vmatprep.subr.bf16.mxu0 %v6679_v27  ;;  %v6691_v37 = vpack.c.bf16 %v1254_v34, %v1253_v33  ;;  %v1263_v33 = vld [vmem:[#allocation9 + $0xf0] sm:$0xff]  ;;  %v1264_v34 = vld [vmem:[#allocation9 + $0xf8] sm:$0xff] }
 0x10c   : >> { %5833 = vmatmul.mubr.f32.gmra.mrb[14].mxu0 %v8181_v44 }
 0x10d   : >> { %5835 = vmatprep.mubr.f32.mxu0 %v8184_v43  ;;  %6682 = vmatpush3.bf16.msra.mxu0 %v6679_v27  ;;  %v1256_v27 = vld [vmem:[#allocation9 + $0xb8] sm:$0xff] }
 0x10e   : >> { %6684 = vmatprep.subr.bf16.mxu0 %v6683_v21  ;;  %v6695_v24 = vpack.c.bf16 %v1256_v27, %v1255_v26  ;;  %v1587_v26 = vld [vmem:[#allocation9 + $0x100] sm:$0xff]  ;;  %v1588_v27 = vld [vmem:[#allocation9 + $0x108] sm:$0xff] }
 0x110   : >> { %5836 = vmatmul.mubr.f32.gmra.mrb[16].mxu0 %v8187_v56 }
 0x111   : >> { %5838 = vmatprep.mubr.f32.mxu0 %v8193_v49 }
 0x114   : >> { %5839 = vmatmul.mubr.f32.gmra.mrb[18].mxu0 %v8197_v50 }
 0x115   : >> { %5841 = vmatprep.mubr.f32.mxu0 %v8200_v40 }
 0x118   : >> { %5842 = vmatmul.mubr.f32.gmra.mrb[20].mxu0 %v8203_v39 }
 0x119   : >> { %5844 = vmatprep.mubr.f32.mxu0 %v8209_v38 }
 0x11c   : >> { %5845 = vmatmul.mubr.f32.gmra.mrb[22].mxu0 %v8213_v36 }
 0x11d   : >> { %5847 = vmatprep.mubr.f32.mxu0 %v8216_v35 }
 0x120   : >> { %5848 = vmatmul.mubr.f32.gmra.mrb[24].mxu0 %v8219_v53 }
 0x121   : >> { %5850 = vmatprep.mubr.f32.mxu0 %v8225_v32 }
 0x124   : >> { %5851 = vmatmul.mubr.f32.gmra.mrb[26].mxu0 %v8229_v41 }
 0x125   : >> { %5853 = vmatprep.mubr.f32.mxu0 %v8232_v42 }
 0x128   : >> { %5854 = vmatmul.mubr.f32.gmra.mrb[28].mxu0 %v8235_v31 }
 0x129   : >> { %5856 = vmatprep.mubr.f32.mxu0 %v8241_v30 }
 0x12c   : >> { %5857 = vmatmul.mubr.f32.gmra.mrb[30].mxu0 %v8245_v28 }
 0x12d   : >> { %5891 = vmatprep.mubr.f32.mxu0 %v911_v22  ;;  %v1258_v22 = vld [vmem:[#allocation9 + $0xc8] sm:$0xff] }
 0x130   : >> { %5892 = vmatmul.mubr.f32.vlgmr.msra.gmra.mrb[0].mxu0 %v912_v29  ;;  %v1262_v29 = vld [vmem:[#allocation9 + $0xe8] sm:$0xff] }
 0x131   : >> { %6686 = vmatpush3.bf16.msra.mxu0 %v6683_v21  ;;  %5894 = vmatprep.mubr.f32.mxu0 %v8120_v55  ;;  %v6699_v55 = vpack.c.bf16 %v1258_v22, %v1257_v25  ;;  %v1259_v21 = vld [vmem:[#allocation9 + $0xd0] sm:$0xff]  ;;  %v1590_v22 = vld [vmem:[#allocation9 + $0x118] sm:$0xff] }
 0x132   : >> { %6688 = vmatprep.subr.bf16.mxu0 %v6687_v45  ;;  %v1589_v25 = vld [vmem:[#allocation9 + $0x110] sm:$0xff] }
 0x134   : >> { %5895 = vmatmul.mubr.f32.gmra.mrb[2].mxu0 %v8123_v60  ;;  %v6703_v60 = vpack.c.bf16 %v1260_v23, %v1259_v21  ;;  %v1591_v21 = vld [vmem:[#allocation9 + $0x120] sm:$0xff]  ;;  %v1592_v23 = vld [vmem:[#allocation9 + $0x128] sm:$0xff] }
 0x135   : >> { %5897 = vmatprep.mubr.f32.mxu0 %v8129_v63  ;;  %6690 = vmatpush3.bf16.msra.mxu0 %v6687_v45  ;;  %v6707_v45 = vpack.c.bf16 %v1262_v29, %v1261_v20  ;;  %v1593_v20 = vld [vmem:[#allocation9 + $0x130] sm:$0xff]  ;;  %v1594_v29 = vld [vmem:[#allocation9 + $0x138] sm:$0xff] }
 0x136   : >> { %6692 = vmatprep.subr.bf16.mxu0 %v6691_v37 }
 0x138   : >> { %5898 = vmatmul.mubr.f32.gmra.mrb[4].mxu0 %v8133_v57 }
 0x139   : >> { %5900 = vmatprep.mubr.f32.mxu0 %v8136_v59  ;;  %6694 = vmatpush3.bf16.msra.mxu0 %v6691_v37  ;;  %v6711_v37 = vpack.c.bf16 %v1264_v34, %v1263_v33  ;;  %v1596_v33 = vld [vmem:[#allocation9 + $0x148] sm:$0xff]  ;;  %v1598_v34 = vld [vmem:[#allocation9 + $0x158] sm:$0xff] }
 0x13a   : >> { %6696 = vmatprep.subr.bf16.mxu0 %v6695_v24 }
 0x13c   : >> { %5901 = vmatmul.mubr.f32.gmra.mrb[6].mxu0 %v8139_v0 }
 0x13d   : >> { %5903 = vmatprep.mubr.f32.mxu0 %v8145_v54  ;;  %6698 = vmatpush3.bf16.msra.mxu0 %v6695_v24  ;;  %v6715_v24 = vpack.c.bf16 %v1588_v27, %v1587_v26  ;;  %v1602_v26 = vld [vmem:[#allocation9 + $0x178] sm:$0xff]  ;;  %v1926_v27 = vld [vmem:[#allocation9 + $0x188] sm:$0xff] }
 0x13e   : >> { %6700 = vmatprep.subr.bf16.mxu0 %v6699_v55 }
 0x140   : >> { %5904 = vmatmul.mubr.f32.gmra.mrb[8].mxu0 %v8149_v52 }
 0x141   : >> { %5906 = vmatprep.mubr.f32.mxu0 %v8152_v51  ;;  %6702 = vmatpush3.bf16.msra.mxu0 %v6699_v55  ;;  %v6719_v55 = vpack.c.bf16 %v1590_v22, %v1589_v25  ;;  %v2331_v25 = vld [vmem:[#allocation11 + $0x220] sm:$0xff]  ;;  %v2332_v22 = vld [vmem:[#allocation11 + $0x228] sm:$0xff] }
 0x142   : >> { %6704 = vmatprep.subr.bf16.mxu0 %v6703_v60 }
 0x144   : >> { %5907 = vmatmul.mubr.f32.gmra.mrb[10].mxu0 %v8155_v58 }
 0x145   : >> { %5909 = vmatprep.mubr.f32.mxu0 %v8161_v61  ;;  %6706 = vmatpush3.bf16.msra.mxu0 %v6703_v60  ;;  %v6723_v60 = vpack.c.bf16 %v1592_v23, %v1591_v21  ;;  %v1527_v23 = vld [vmem:[#allocation2 + $0x3f] sm:$0xff] }
 0x146   : >> { %6708 = vmatprep.subr.bf16.mxu0 %v6707_v45 }
 0x148   : >> { %5910 = vmatmul.mubr.f32.gmra.mrb[12].mxu0 %v8165_v62 }
 0x149   : >> { %5912 = vmatprep.mubr.f32.mxu0 %v8168_v48  ;;  %6710 = vmatpush3.bf16.msra.mxu0 %v6707_v45  ;;  %v6727_v45 = vpack.c.bf16 %v1594_v29, %v1593_v20  ;;  %v1931_v29 = vld [vmem:[#allocation9 + $0x1b0] sm:$0xff] }
 0x14a   : >> { %6712 = vmatprep.subr.bf16.mxu0 %v6711_v37 }
 0x14c   : >> { %5913 = vmatmul.mubr.f32.gmra.mrb[14].mxu0 %v8171_v47 }
 0x14d   : >> { %5915 = vmatprep.mubr.f32.mxu0 %v8177_v46  ;;  %6714 = vmatpush3.bf16.msra.mxu0 %v6711_v37  ;;  %v1600_v37 = vld [vmem:[#allocation9 + $0x168] sm:$0xff] }
 0x14e   : >> { %6716 = vmatprep.subr.bf16.mxu0 %v6715_v24 }
 0x150   : >> { %5916 = vmatmul.mubr.f32.gmra.mrb[16].mxu0 %v8181_v44 }
 0x151   : >> { %5918 = vmatprep.mubr.f32.mxu0 %v8184_v43 }
 0x154   : >> { %5919 = vmatmul.mubr.f32.gmra.mrb[18].mxu0 %v8187_v56 }
 0x155   : >> { %5921 = vmatprep.mubr.f32.mxu0 %v8193_v49 }
 0x158   : >> { %5922 = vmatmul.mubr.f32.gmra.mrb[20].mxu0 %v8197_v50 }
 0x159   : >> { %5924 = vmatprep.mubr.f32.mxu0 %v8200_v40 }
 0x15c   : >> { %5925 = vmatmul.mubr.f32.gmra.mrb[22].mxu0 %v8203_v39 }
 0x15d   : >> { %5927 = vmatprep.mubr.f32.mxu0 %v8209_v38 }
 0x160   : >> { %5928 = vmatmul.mubr.f32.gmra.mrb[24].mxu0 %v8213_v36 }
 0x161   : >> { %5930 = vmatprep.mubr.f32.mxu0 %v8216_v35 }
 0x164   : >> { %5931 = vmatmul.mubr.f32.gmra.mrb[26].mxu0 %v8219_v53 }
 0x165   : >> { %5933 = vmatprep.mubr.f32.mxu0 %v8225_v32 }
 0x168   : >> { %5934 = vmatmul.mubr.f32.gmra.mrb[28].mxu0 %v8229_v41 }
 0x169   : >> { %5936 = vmatprep.mubr.f32.mxu0 %v8232_v42 }
 0x16c   : >> { %5937 = vmatmul.mubr.f32.gmra.mrb[30].mxu0 %v8235_v31 }
 0x16d   : >> { %5971 = vmatprep.mubr.f32.mxu0 %v8129_v63  ;;  %v1595_v63 = vld [vmem:[#allocation9 + $0x140] sm:$0xff] }
 0x170   : >> { %5972 = vmatmul.mubr.f32.vlgmr.msra.gmra.mrb[0].mxu0 %v8133_v57  ;;  %v6731_v57 = vpack.c.bf16 %v1596_v33, %v1595_v63  ;;  %v1932_v63 = vld [vmem:[#allocation9 + $0x1b8] sm:$0xff]  ;;  %v2333_v33 = vld [vmem:[#allocation11 + $0x230] sm:$0xff] }
 0x171   : >> { %6718 = vmatpush3.bf16.msra.mxu0 %v6715_v24  ;;  %5974 = vmatprep.mubr.f32.mxu0 %v8136_v59  ;;  %v1597_v59 = vld [vmem:[#allocation9 + $0x150] sm:$0xff]  ;;  %v1930_v24 = vld [vmem:[#allocation9 + $0x1a8] sm:$0xff] }
 0x172   : >> { %6720 = vmatprep.subr.bf16.mxu0 %v6719_v55 }
 0x174   : >> { %5975 = vmatmul.mubr.f32.gmra.mrb[2].mxu0 %v8139_v0  ;;  %v1599_v0 = vld [vmem:[#allocation9 + $0x160] sm:$0xff] }
 0x175   : >> { %5977 = vmatprep.mubr.f32.mxu0 %v8145_v54  ;;  %6722 = vmatpush3.bf16.msra.mxu0 %v6719_v55  ;;  %v6735_v54 = vpack.c.bf16 %v1598_v34, %v1597_v59  ;;  %v1559_v59 = vmul.f32 %v1527_v23, %v10873_v6  ;;  %v1537_v23 = vld [vmem:[#allocation2 + $0x8f] sm:$0xff] }
 0x176   : >> { %6724 = vmatprep.subr.bf16.mxu0 %v6723_v60 }
 0x178   : >> { %5978 = vmatmul.mubr.f32.gmra.mrb[4].mxu0 %v8149_v52  ;;  %v1601_v52 = vld [vmem:[#allocation9 + $0x170] sm:$0xff] }
 0x179   : >> { %5980 = vmatprep.mubr.f32.mxu0 %v8152_v51  ;;  %6726 = vmatpush3.bf16.msra.mxu0 %v6723_v60  ;;  %v6739_v51 = vpack.c.bf16 %v1600_v37, %v1599_v0  ;;  %v1528_v60 = vld [vmem:[#allocation2 + $0x47] sm:$0xff]  ;;  %v1530_v0 = vld [vmem:[#allocation2 + $0x57] sm:$0xff]  ;;  %v6759_v37 = vpack.c.bf16 %v1932_v63, %v1931_v29  ;;  %v1569_v29 = vmul.f32 %v1537_v23, %v10883_v16  ;;  %v1539_v63 = vld [vmem:[#allocation2 + $0x9f] sm:$0xff] }
 0x17a   : >> { %6728 = vmatprep.subr.bf16.mxu0 %v6727_v45  ;;  %v1560_v34 = vmul.f32 %v1528_v60, %v10874_v7  ;;  %v1538_v60 = vld [vmem:[#allocation2 + $0x97] sm:$0xff]  ;;  %v1553_v23 = vld [vmem:[#allocation2 + $0x10f] sm:$0xff] }
 0x17c   : >> { %5981 = vmatmul.mubr.f32.gmra.mrb[6].mxu0 %v8155_v58  ;;  %v6743_v58 = vpack.c.bf16 %v1602_v26, %v1601_v52  ;;  %v1934_v26 = vld [vmem:[#allocation9 + $0x1c8] sm:$0xff] }
 0x17d   : >> { %5983 = vmatprep.mubr.f32.mxu0 %v8161_v61  ;;  %6730 = vmatpush3.bf16.msra.mxu0 %v6727_v45  ;;  %v1925_v61 = vld [vmem:[#allocation9 + $0x180] sm:$0xff]  ;;  %v6787_v45 = vpack.c.bf16 %v2332_v22, %v2331_v25  ;;  %v1939_v25 = vld [vmem:[#allocation9 + $0x1f0] sm:$0xff]  ;;  %v1940_v22 = vld [vmem:[#allocation9 + $0x1f8] sm:$0xff] }
 0x17e   : >> { %6732 = vmatprep.subr.bf16.mxu0 %v6731_v57 }
 0x180   : >> { %5984 = vmatmul.mubr.f32.gmra.mrb[8].mxu0 %v8165_v62  ;;  %v2328_v62 = vld [vmem:[#allocation11 + $0x208] sm:$0xff] }
 0x181   : >> { %5986 = vmatprep.mubr.f32.mxu0 %v8168_v48  ;;  %6734 = vmatpush3.bf16.msra.mxu0 %v6731_v57  ;;  %v6747_v48 = vpack.c.bf16 %v1926_v27, %v1925_v61  ;;  %v2334_v57 = vld [vmem:[#allocation11 + $0x238] sm:$0xff]  ;;  %v2336_v61 = vld [vmem:[#allocation11 + $0x248] sm:$0xff] }
 0x182   : >> { %6736 = vmatprep.subr.bf16.mxu0 %v6735_v54  ;;  %v6791_v52 = vpack.c.bf16 %v2334_v57, %v2333_v33  ;;  %v1540_v33 = vld [vmem:[#allocation2 + $0xa7] sm:$0xff]  ;;  %v1571_v57 = vmul.f32 %v1539_v63, %v10885_v18 }
 0x184   : >> { %5987 = vmatmul.mubr.f32.gmra.mrb[10].mxu0 %v8171_v47  ;;  %v2327_v47 = vld [vmem:[#allocation11 + $0x200] sm:$0xff] }
 0x185   : >> { %5989 = vmatprep.mubr.f32.mxu0 %v8177_v46  ;;  %6738 = vmatpush3.bf16.msra.mxu0 %v6735_v54  ;;  %v1529_v54 = vld [vmem:[#allocation2 + $0x4f] sm:$0xff] }
 0x186   : >> { %6740 = vmatprep.subr.bf16.mxu0 %v6739_v51  ;;  %v1561_v27 = vmul.f32 %v1529_v54, %v10875_v8  ;;  %v1542_v54 = vld [vmem:[#allocation2 + $0xb7] sm:$0xff] }
 0x188   : >> { %5990 = vmatmul.mubr.f32.gmra.mrb[12].mxu0 %v8181_v44  ;;  %v1927_v44 = vld [vmem:[#allocation9 + $0x190] sm:$0xff] }
 0x189   : >> { %5992 = vmatprep.mubr.f32.mxu0 %v8184_v43  ;;  %6742 = vmatpush3.bf16.msra.mxu0 %v6739_v51  ;;  %v1524_v43 = vld [vmem:[#allocation2 + $0x27] sm:$0xff]  ;;  %v1933_v51 = vld [vmem:[#allocation9 + $0x1c0] sm:$0xff] }
 0x18a   : >> { %6744 = vmatprep.subr.bf16.mxu0 %v6743_v58 }
 0x18c   : >> { %5993 = vmatmul.mubr.f32.gmra.mrb[14].mxu0 %v8187_v56  ;;  %v1525_v56 = vld [vmem:[#allocation2 + $0x2f] sm:$0xff] }
 0x18d   : >> { %5995 = vmatprep.mubr.f32.mxu0 %v8193_v49  ;;  %6746 = vmatpush3.bf16.msra.mxu0 %v6743_v58  ;;  %v6779_v49 = vpack.c.bf16 %v2328_v62, %v2327_v47  ;;  %v1557_v55 = vmul.f32 %v1525_v56, %v10871_v4  ;;  %v2335_v58 = vld [vmem:[#allocation11 + $0x240] sm:$0xff] }
 0x18e   : >> { %6748 = vmatprep.subr.bf16.mxu0 %v6747_v48  ;;  %v1533_v62 = vld [vmem:[#allocation2 + $0x6f] sm:$0xff] }
 0x18f   : >> { %6780 = vmatprep.subr.bf16.mxu1 %v6779_v49 }
 0x190   : >> { %5996 = vmatmul.mubr.f32.gmra.mrb[16].mxu0 %v8197_v50  ;;  %v1526_v50 = vld [vmem:[#allocation2 + $0x37] sm:$0xff]  ;;  %6782 = vmatpush3.bf16.msra.mxu1 %v6779_v49 }
 0x191   : >> { %5998 = vmatprep.mubr.f32.mxu0 %v8200_v40  ;;  %v1246_v40 = vld [vmem:[#allocation2 + $0x118] sm:$0xff]  ;;  %v1558_v21 = vmul.f32 %v1526_v50, %v10872_v5  ;;  %v1937_v49 = vld [vmem:[#allocation9 + $0x1e0] sm:$0xff]  ;;  %v1565_v50 = vmul.f32 %v1533_v62, %v10879_v12 }
 0x194   : >> { %5999 = vmatmul.mubr.f32.gmra.mrb[18].mxu0 %v8203_v39  ;;  %v1522_v39 = vld [vmem:[#allocation2 + $0x17] sm:$0xff] }
 0x195   : >> { %6001 = vmatprep.mubr.f32.mxu0 %v8209_v38  ;;  %v1523_v38 = vld [vmem:[#allocation2 + $0x1f] sm:$0xff] }
 0x196   : >> { %v1555_v46 = vmul.f32 %v1523_v38, %v10869_v2  ;;  %v6795_v38 = vpack.c.bf16 %v2336_v61, %v2335_v58  ;;  %v1544_v58 = vld [vmem:[#allocation2 + $0xc7] sm:$0xff]  ;;  %v10889_v61 = vld [vmem:[#allocation40_spill] sm:$0xff] }
 0x198   : >> { %6002 = vmatmul.mubr.f32.gmra.mrb[20].mxu0 %v8213_v36  ;;  %v1247_v36 = vld [vmem:[#allocation2 + $0x120] sm:$0xff] }
 0x199   : >> { %6004 = vmatprep.mubr.f32.mxu0 %v8216_v35  ;;  %v1554_v35 = vmul.f32 %v1522_v39, %v10868_v1  ;;  %v1532_v39 = vld [vmem:[#allocation2 + $0x67] sm:$0xff] }
 0x19a   : >> { %v1564_v47 = vmul.f32 %v1532_v39, %v10878_v11  ;;  %v1545_v39 = vld [vmem:[#allocation2 + $0xcf] sm:$0xff] }
 0x19c   : >> { %6005 = vmatmul.mubr.f32.gmra.mrb[22].mxu0 %v8219_v53 }
 0x19d   : >> { %6007 = vmatprep.mubr.f32.mxu0 %v8225_v32  ;;  %v1928_v32 = vld [vmem:[#allocation9 + $0x198] sm:$0xff] }
 0x19e   : >> { %v6751_v53 = vpack.c.bf16 %v1928_v32, %v1927_v44  ;;  %v2337_v44 = vld [vmem:[#allocation11 + $0x250] sm:$0xff]  ;;  %v2338_v32 = vld [vmem:[#allocation11 + $0x258] sm:$0xff] }
 0x19f   : >> { %v6799_v56 = vpack.c.bf16 %v2338_v32, %v2337_v44  ;;  %v1547_v32 = vld [vmem:[#allocation2 + $0xdf] sm:$0xff] }
 0x1a0   : >> { %6008 = vmatmul.mubr.f32.gmra.mrb[24].mxu0 %v8229_v41  ;;  %v1929_v41 = vld [vmem:[#allocation9 + $0x1a0] sm:$0xff] }
 0x1a1   : >> { %6010 = vmatprep.mubr.f32.mxu0 %v8232_v42  ;;  %v6755_v20 = vpack.c.bf16 %v1930_v24, %v1929_v41  ;;  %v1535_v41 = vld [vmem:[#allocation2 + $0x7f] sm:$0xff] }
 0x1a4   : >> { %6011 = vmatmul.mubr.f32.gmra.mrb[26].mxu0 %v8235_v31  ;;  %v2329_v31 = vld [vmem:[#allocation11 + $0x210] sm:$0xff] }
 0x1a5   : >> { %6013 = vmatprep.mubr.f32.mxu0 %v8241_v30  ;;  %v1556_v30 = vmul.f32 %v1524_v43, %v10870_v3  ;;  %v1936_v43 = vld [vmem:[#allocation9 + $0x1d8] sm:$0xff] }
 0x1a8   : >> { %6014 = vmatmul.mubr.f32.gmra.mrb[28].mxu0 %v8245_v28  ;;  %v2330_v28 = vld [vmem:[#allocation11 + $0x218] sm:$0xff] }
 0x1a9   : >> { %6016 = vmatprep.mubr.f32.mxu0 %v1246_v40  ;;  %v6783_v42 = vpack.c.bf16 %v2330_v28, %v2329_v31  ;;  %v1531_v40 = vld [vmem:[#allocation2 + $0x5f] sm:$0xff]  ;;  %v1534_v31 = vld [vmem:[#allocation2 + $0x77] sm:$0xff] }
 0x1aa   : >> { %v1938_v28 = vld [vmem:[#allocation9 + $0x1e8] sm:$0xff] }
 0x1ab   : >> { %6784 = vmatprep.subr.bf16.mxu1 %v6783_v42  ;;  %v6771_v24 = vpack.c.bf16 %v1938_v28, %v1937_v49  ;;  %v1550_v49 = vld [vmem:[#allocation2 + $0xf7] sm:$0xff]  ;;  %v10895_v28 = vld [vmem:[#allocation46_spill] sm:$0xff] }
 0x1ac   : >> { %6017 = vmatmul.mubr.f32.gmra.mrb[30].mxu0 %v1247_v36  ;;  %6786 = vmatpush3.bf16.msra.mxu1 %v6783_v42  ;;  %v6763_v36 = vpack.c.bf16 %v1934_v26, %v1933_v51  ;;  %v1536_v42 = vld [vmem:[#allocation2 + $0x87] sm:$0xff]  ;;  %v10888_v51 = vld [vmem:[#allocation39_spill] sm:$0xff]  ;;  %v1543_v26 = vld [vmem:[#allocation2 + $0xbf] sm:$0xff] }
 0x1ad   : >> { %6051 = vmatprep.mubr.f32.mxu0 %v1554_v35  ;;  %6788 = vmatprep.subr.bf16.mxu1 %v6787_v45  ;;  %v1935_v35 = vld [vmem:[#allocation9 + $0x1d0] sm:$0xff] }
 0x1b0   : >> { %6052 = vmatmul.mubr.f32.vlgmr.msra.gmra.mrb[0].mxu0 %v1555_v46  ;;  %6790 = vmatpush3.bf16.msra.mxu1 %v6787_v45  ;;  %v1563_v46 = vmul.f32 %v1531_v40, %v10877_v10  ;;  %v1570_v45 = vmul.f32 %v1538_v60, %v10884_v17  ;;  %v1860_v60 = vld [vmem:[#allocation2 + $0x19] sm:$0xff] }
 0x1b1   : >> { %6750 = vmatpush3.bf16.msra.mxu0 %v6747_v48  ;;  %6054 = vmatprep.mubr.f32.mxu0 %v1556_v30  ;;  %v1562_v48 = vmul.f32 %v1530_v0, %v10876_v9  ;;  %v6767_v30 = vpack.c.bf16 %v1936_v43, %v1935_v35  ;;  %v10887_v0 = vld [vmem:[#allocation38_spill] sm:$0xff]  ;;  %v10892_v43 = vld [vmem:[#allocation43_spill] sm:$0xff] }
 0x1b2   : >> { %6752 = vmatprep.subr.bf16.mxu0 %v6751_v53  ;;  %6792 = vmatprep.subr.bf16.mxu1 %v6791_v52  ;;  %v10891_v35 = vld [vmem:[#allocation42_spill] sm:$0xff] }
 0x1b4   : >> { %6055 = vmatmul.mubr.f32.gmra.mrb[2].mxu0 %v1557_v55  ;;  %6794 = vmatpush3.bf16.msra.mxu1 %v6791_v52  ;;  %v1567_v55 = vmul.f32 %v1535_v41, %v10881_v14  ;;  %v1574_v52 = vmul.f32 %v1542_v54, %v10888_v51  ;;  %v10902_v54 = vld [vmem:[#allocation53_spill] sm:$0xff]  ;;  %v2921_v51 = vld [vmem:[#allocation11 + $0xc0] sm:$0xff] }
 0x1b5   : >> { %6057 = vmatprep.mubr.f32.mxu0 %v1558_v21  ;;  %6754 = vmatpush3.bf16.msra.mxu0 %v6751_v53  ;;  %v1566_v53 = vmul.f32 %v1534_v31, %v10880_v13  ;;  %v1568_v21 = vmul.f32 %v1536_v42, %v10882_v15  ;;  %v10894_v31 = vld [vmem:[#allocation45_spill] sm:$0xff] }
 0x1b6   : >> { %6756 = vmatprep.subr.bf16.mxu0 %v6755_v20  ;;  %6796 = vmatprep.subr.bf16.mxu1 %v6795_v38  ;;  %v1551_v42 = vld [vmem:[#allocation2 + $0xff] sm:$0xff] }
 0x1b8   : >> { %6058 = vmatmul.mubr.f32.gmra.mrb[4].mxu0 %v1559_v59  ;;  %6798 = vmatpush3.bf16.msra.mxu1 %v6795_v38  ;;  %v1572_v59 = vmul.f32 %v1540_v33, %v10886_v19  ;;  %v1577_v38 = vmul.f32 %v1545_v39, %v10891_v35  ;;  %v1861_v33 = vld [vmem:[#allocation2 + $0x21] sm:$0xff] }
 0x1b9   : >> { %6060 = vmatprep.mubr.f32.mxu0 %v1560_v34  ;;  %6758 = vmatpush3.bf16.msra.mxu0 %v6755_v20  ;;  %v6775_v20 = vpack.c.bf16 %v1940_v22, %v1939_v25  ;;  %v1541_v34 = vld [vmem:[#allocation2 + $0xaf] sm:$0xff]  ;;  %v10897_v25 = vld [vmem:[#allocation48_spill] sm:$0xff] }
 0x1ba   : >> { %6760 = vmatprep.subr.bf16.mxu0 %v6759_v37  ;;  %6800 = vmatprep.subr.bf16.mxu1 %v6799_v56  ;;  %v1583_v22 = vmul.f32 %v1551_v42, %v10897_v25 }
 0x1bc   : >> { %6061 = vmatmul.mubr.f32.gmra.mrb[6].mxu0 %v1561_v27  ;;  %6802 = vmatpush3.bf16.msra.mxu1 %v6799_v56  ;;  %v1575_v27 = vmul.f32 %v1543_v26, %v10889_v61  ;;  %v1549_v56 = vld [vmem:[#allocation2 + $0xef] sm:$0xff]  ;;  %v1864_v26 = vld [vmem:[#allocation2 + $0x39] sm:$0xff] }
 0x1bd   : >> { %6063 = vmatprep.mubr.f32.mxu0 %v1562_v48  ;;  %6762 = vmatpush3.bf16.msra.mxu0 %v6759_v37  ;;  %v1573_v37 = vmul.f32 %v1541_v34, %v10887_v0  ;;  %v10890_v48 = vld [vmem:[#allocation41_spill] sm:$0xff]  ;;  %v2920_v61 = vld [vmem:[#allocation11 + $0xb8] sm:$0xff] }
 0x1be   : >> { %6764 = vmatprep.subr.bf16.mxu0 %v6763_v36  ;;  %v1576_v40 = vmul.f32 %v1544_v58, %v10890_v48  ;;  %v10903_v58 = vld [vmem:[#allocation54_spill] sm:$0xff] }
 0x1c0   : >> { %6064 = vmatmul.mubr.f32.gmra.mrb[8].mxu0 %v1563_v46  ;;  %v1548_v46 = vld [vmem:[#allocation2 + $0xe7] sm:$0xff] }
 0x1c1   : >> { %6066 = vmatprep.mubr.f32.mxu0 %v1564_v47  ;;  %6766 = vmatpush3.bf16.msra.mxu0 %v6763_v36  ;;  %v1546_v36 = vld [vmem:[#allocation2 + $0xd7] sm:$0xff] }
 0x1c2   : >> { %6768 = vmatprep.subr.bf16.mxu0 %v6767_v30  ;;  %v1578_v44 = vmul.f32 %v1546_v36, %v10892_v43  ;;  %v10893_v47 = vld [vmem:[#allocation44_spill] sm:$0xff]  ;;  %v1865_v36 = vld [vmem:[#allocation2 + $0x41] sm:$0xff] }
 0x1c3   : >> { %v1579_v62 = vmul.f32 %v1547_v32, %v10893_v47 }
 0x1c4   : >> { %6067 = vmatmul.mubr.f32.gmra.mrb[10].mxu0 %v1565_v50  ;;  %v1581_v50 = vmul.f32 %v1549_v56, %v10895_v28  ;;  %v1868_v56 = vld [vmem:[#allocation2 + $0x59] sm:$0xff] }
 0x1c5   : >> { %6069 = vmatprep.mubr.f32.mxu0 %v1566_v53  ;;  %6770 = vmatpush3.bf16.msra.mxu0 %v6767_v30  ;;  %v1580_v30 = vmul.f32 %v1548_v46, %v10894_v31  ;;  %v10896_v53 = vld [vmem:[#allocation47_spill] sm:$0xff]  ;;  %v10906_v46 = vld [vmem:[#allocation57_spill] sm:$0xff] }
 0x1c6   : >> { %6772 = vmatprep.subr.bf16.mxu0 %v6771_v24  ;;  %v1582_v41 = vmul.f32 %v1550_v49, %v10896_v53  ;;  %v10907_v49 = vld [vmem:[#allocation58_spill] sm:$0xff] }
 0x1c8   : >> { %6070 = vmatmul.mubr.f32.gmra.mrb[12].mxu0 %v1567_v55  ;;  %v10898_v55 = vld [vmem:[#allocation49_spill] sm:$0xff] }
 0x1c9   : >> { %6072 = vmatprep.mubr.f32.mxu0 %v1568_v21  ;;  %6774 = vmatpush3.bf16.msra.mxu0 %v6771_v24  ;;  %v1552_v24 = vld [vmem:[#allocation2 + $0x107] sm:$0xff] }
 0x1ca   : >> { %6776 = vmatprep.subr.bf16.mxu0 %v6775_v20  ;;  %v1584_v21 = vmul.f32 %v1552_v24, %v10898_v55  ;;  %v1869_v24 = vld [vmem:[#allocation2 + $0x61] sm:$0xff] }
 0x1cc   : >> { %6073 = vmatmul.mubr.f32.gmra.mrb[14].mxu0 %v1569_v29 }
 0x1cd   : >> { %6075 = vmatprep.mubr.f32.mxu0 %v1570_v45  ;;  %6778 = vmatpush3.bf16.msra.mxu0 %v6775_v20  ;;  %v10899_v20 = vld [vmem:[#allocation50_spill] sm:$0xff]  ;;  %v10900_v45 = vld [vmem:[#allocation51_spill] sm:$0xff] }
 0x1ce   : >> { %v1585_v29 = vmul.f32 %v1553_v23, %v10899_v20  ;;  %v1892_v63 = vmul.f32 %v1860_v60, %v10900_v45  ;;  %v10910_v60 = vld [vmem:[#allocation61_spill] sm:$0xff] }
 0x1d0   : >> { %6076 = vmatmul.mubr.f32.gmra.mrb[16].mxu0 %v1571_v57  ;;  %v1862_v57 = vld [vmem:[#allocation2 + $0x29] sm:$0xff] }
 0x1d1   : >> { %6078 = vmatprep.mubr.f32.mxu0 %v1572_v59  ;;  %v10901_v59 = vld [vmem:[#allocation52_spill] sm:$0xff] }
 0x1d2   : >> { %v1893_v34 = vmul.f32 %v1861_v33, %v10901_v59  ;;  %v1872_v33 = vld [vmem:[#allocation2 + $0x79] sm:$0xff] }
 0x1d4   : >> { %6079 = vmatmul.mubr.f32.gmra.mrb[18].mxu0 %v1573_v37  ;;  %v1894_v37 = vmul.f32 %v1862_v57, %v10902_v54  ;;  %v10911_v57 = vld [vmem:[#allocation62_spill] sm:$0xff]  ;;  %v2913_v54 = vld [vmem:[#allocation11 + $0x80] sm:$0xff] }
 0x1d5   : >> { %6081 = vmatprep.mubr.f32.mxu0 %v1574_v52  ;;  %v1863_v52 = vld [vmem:[#allocation2 + $0x31] sm:$0xff] }
 0x1d8   : >> { %6082 = vmatmul.mubr.f32.gmra.mrb[20].mxu0 %v1575_v27  ;;  %v1895_v27 = vmul.f32 %v1863_v52, %v10903_v58 }
 0x1d9   : >> { %6084 = vmatprep.mubr.f32.mxu0 %v1576_v40  ;;  %v10904_v40 = vld [vmem:[#allocation55_spill] sm:$0xff] }
 0x1da   : >> { %v1896_v39 = vmul.f32 %v1864_v26, %v10904_v40  ;;  %v1873_v26 = vld [vmem:[#allocation2 + $0x81] sm:$0xff] }
 0x1db   : >> { %v2621_v40 = vld [vmem:[#allocation11 + $0x70] sm:$0xff] }
 0x1dc   : >> { %6085 = vmatmul.mubr.f32.gmra.mrb[22].mxu0 %v1577_v38  ;;  %v1866_v38 = vld [vmem:[#allocation2 + $0x49] sm:$0xff] }
 0x1dd   : >> { %6087 = vmatprep.mubr.f32.mxu0 %v1578_v44  ;;  %v10905_v44 = vld [vmem:[#allocation56_spill] sm:$0xff] }
 0x1de   : >> { %v1897_v32 = vmul.f32 %v1865_v36, %v10905_v44 }
 0x1e0   : >> { %6088 = vmatmul.mubr.f32.gmra.mrb[24].mxu0 %v1579_v62  ;;  %v1898_v62 = vmul.f32 %v1866_v38, %v10906_v46  ;;  %v10914_v38 = vld [vmem:[#allocation65_spill] sm:$0xff]  ;;  %v2619_v46 = vld [vmem:[#allocation11 + $0x60] sm:$0xff] }
 0x1e1   : >> { %6090 = vmatprep.mubr.f32.mxu0 %v1580_v30  ;;  %v1867_v30 = vld [vmem:[#allocation2 + $0x51] sm:$0xff] }
 0x1e4   : >> { %6091 = vmatmul.mubr.f32.gmra.mrb[26].mxu0 %v1581_v50  ;;  %v1899_v50 = vmul.f32 %v1867_v30, %v10907_v49  ;;  %v1876_v30 = vld [vmem:[#allocation2 + $0x99] sm:$0xff] }
 0x1e5   : >> { %6093 = vmatprep.mubr.f32.mxu0 %v1582_v41  ;;  %v10908_v41 = vld [vmem:[#allocation59_spill] sm:$0xff] }
 0x1e6   : >> { %v1900_v42 = vmul.f32 %v1868_v56, %v10908_v41  ;;  %v10915_v56 = vld [vmem:[#allocation66_spill] sm:$0xff]  ;;  %v2617_v41 = vld [vmem:[#allocation11 + $0x50] sm:$0xff] }
 0x1e8   : >> { %6094 = vmatmul.mubr.f32.gmra.mrb[28].mxu0 %v1583_v22  ;;  %v1870_v22 = vld [vmem:[#allocation2 + $0x69] sm:$0xff] }
 0x1e9   : >> { %6096 = vmatprep.mubr.f32.mxu0 %v1584_v21  ;;  %v10909_v21 = vld [vmem:[#allocation60_spill] sm:$0xff] }
 0x1ea   : >> { %v1901_v23 = vmul.f32 %v1869_v24, %v10909_v21 }
 0x1ec   : >> { %6097 = vmatmul.mubr.f32.gmra.mrb[30].mxu0 %v1585_v29  ;;  %v1902_v29 = vmul.f32 %v1870_v22, %v10910_v60  ;;  %v1877_v22 = vld [vmem:[#allocation2 + $0xa1] sm:$0xff]  ;;  %v2615_v60 = vld [vmem:[#allocation11 + $0x40] sm:$0xff] }
 0x1ed   : >> { %6131 = vmatprep.mubr.f32.mxu0 %v1892_v63  ;;  %v1871_v63 = vld [vmem:[#allocation2 + $0x71] sm:$0xff] }
 0x1f0   : >> { %6132 = vmatmul.mubr.f32.vlgmr.msra.gmra.mrb[0].mxu0 %v1893_v34  ;;  %v1903_v34 = vmul.f32 %v1871_v63, %v10911_v57 }
 0x1f1   : >> { %6134 = vmatprep.mubr.f32.mxu0 %v1894_v37  ;;  %v10912_v37 = vld [vmem:[#allocation63_spill] sm:$0xff] }
 0x1f2   : >> { %v1904_v52 = vmul.f32 %v1872_v33, %v10912_v37  ;;  %v10918_v33 = vld [vmem:[#allocation69_spill] sm:$0xff] }
 0x1f3   : >> { %v2613_v37 = vld [vmem:[#allocation11 + $0x30] sm:$0xff] }
 0x1f4   : >> { %6135 = vmatmul.mubr.f32.gmra.mrb[2].mxu0 %v1895_v27  ;;  %v1874_v27 = vld [vmem:[#allocation2 + $0x89] sm:$0xff] }
 0x1f5   : >> { %6137 = vmatprep.mubr.f32.mxu0 %v1896_v39  ;;  %v10913_v39 = vld [vmem:[#allocation64_spill] sm:$0xff] }
 0x1f6   : >> { %v1905_v36 = vmul.f32 %v1873_v26, %v10913_v39  ;;  %v1879_v26 = vld [vmem:[#allocation2 + $0xb1] sm:$0xff] }
 0x1f8   : >> { %6138 = vmatmul.mubr.f32.gmra.mrb[4].mxu0 %v1897_v32  ;;  %v1906_v32 = vmul.f32 %v1874_v27, %v10914_v38  ;;  %v10919_v27 = vld [vmem:[#allocation70_spill] sm:$0xff] }
 0x1f9   : >> { %6140 = vmatprep.mubr.f32.mxu0 %v1898_v62  ;;  %v1875_v62 = vld [vmem:[#allocation2 + $0x91] sm:$0xff]  ;;  %v1911_v38 = vmul.f32 %v1879_v26, %v10919_v27  ;;  %v1885_v26 = vld [vmem:[#allocation2 + $0xe1] sm:$0xff] }
 0x1fc   : >> { %6141 = vmatmul.mubr.f32.gmra.mrb[6].mxu0 %v1899_v50  ;;  %v1907_v50 = vmul.f32 %v1875_v62, %v10915_v56  ;;  %v1881_v62 = vld [vmem:[#allocation2 + $0xc1] sm:$0xff] }
 0x1fd   : >> { %6143 = vmatprep.mubr.f32.mxu0 %v1900_v42  ;;  %v10916_v42 = vld [vmem:[#allocation67_spill] sm:$0xff] }
 0x1fe   : >> { %v1908_v24 = vmul.f32 %v1876_v30, %v10916_v42  ;;  %v10921_v30 = vld [vmem:[#allocation72_spill] sm:$0xff] }
 0x1ff   : >> { %v1913_v42 = vmul.f32 %v1881_v62, %v10921_v30  ;;  %v1887_v62 = vld [vmem:[#allocation2 + $0xf1] sm:$0xff] }
 0x200   : >> { %6144 = vmatmul.mubr.f32.gmra.mrb[8].mxu0 %v1901_v23  ;;  %v1878_v23 = vld [vmem:[#allocation2 + $0xa9] sm:$0xff] }
 0x201   : >> { %6146 = vmatprep.mubr.f32.mxu0 %v1902_v29  ;;  %v10917_v29 = vld [vmem:[#allocation68_spill] sm:$0xff] }
 0x202   : >> { %v1909_v63 = vmul.f32 %v1877_v22, %v10917_v29  ;;  %v1883_v22 = vld [vmem:[#allocation2 + $0xd1] sm:$0xff] }
 0x204   : >> { %6147 = vmatmul.mubr.f32.gmra.mrb[10].mxu0 %v1903_v34  ;;  %v1910_v34 = vmul.f32 %v1878_v23, %v10918_v33  ;;  %v10923_v23 = vld [vmem:[#allocation74_spill] sm:$0xff] }
 0x205   : >> { %6149 = vmatprep.mubr.f32.mxu0 %v1904_v52  ;;  %v1880_v52 = vld [vmem:[#allocation2 + $0xb9] sm:$0xff]  ;;  %v1915_v33 = vmul.f32 %v1883_v22, %v10923_v23  ;;  %v1889_v22 = vld [vmem:[#allocation2 + $0x101] sm:$0xff] }
 0x208   : >> { %6150 = vmatmul.mubr.f32.gmra.mrb[12].mxu0 %v1905_v36  ;;  %v10920_v36 = vld [vmem:[#allocation71_spill] sm:$0xff] }
 0x209   : >> { %6152 = vmatprep.mubr.f32.mxu0 %v1906_v32  ;;  %v1912_v39 = vmul.f32 %v1880_v52, %v10920_v36  ;;  %v1882_v32 = vld [vmem:[#allocation2 + $0xc9] sm:$0xff]  ;;  %v10925_v52 = vld [vmem:[#allocation76_spill] sm:$0xff] }
 0x20a   : >> { %v1917_v36 = vmul.f32 %v1885_v26, %v10925_v52  ;;  %v1891_v26 = vld [vmem:[#allocation2 + $0x111] sm:$0xff] }
 0x20c   : >> { %6153 = vmatmul.mubr.f32.gmra.mrb[14].mxu0 %v1907_v50  ;;  %v10922_v50 = vld [vmem:[#allocation73_spill] sm:$0xff] }
 0x20d   : >> { %6155 = vmatprep.mubr.f32.mxu0 %v1908_v24  ;;  %v1914_v56 = vmul.f32 %v1882_v32, %v10922_v50  ;;  %v1884_v24 = vld [vmem:[#allocation2 + $0xd9] sm:$0xff]  ;;  %v10927_v32 = vld [vmem:[#allocation78_spill] sm:$0xff] }
 0x20e   : >> { %v1919_v50 = vmul.f32 %v1887_v62, %v10927_v32  ;;  %v2612_v32 = vld [vmem:[#allocation11 + $0x28] sm:$0xff] }
 0x210   : >> { %6156 = vmatmul.mubr.f32.gmra.mrb[16].mxu0 %v1909_v63  ;;  %v10924_v63 = vld [vmem:[#allocation75_spill] sm:$0xff] }
 0x211   : >> { %6158 = vmatprep.mubr.f32.mxu0 %v1910_v34  ;;  %v1916_v29 = vmul.f32 %v1884_v24, %v10924_v63  ;;  %v1886_v34 = vld [vmem:[#allocation2 + $0xe9] sm:$0xff]  ;;  %v10929_v24 = vld [vmem:[#allocation80_spill] sm:$0xff] }
 0x212   : >> { %v1921_v63 = vmul.f32 %v1889_v22, %v10929_v24  ;;  %v2611_v24 = vld [vmem:[#allocation11 + $0x20] sm:$0xff] }
 0x214   : >> { %6159 = vmatmul.mubr.f32.gmra.mrb[18].mxu0 %v1911_v38  ;;  %v10926_v38 = vld [vmem:[#allocation77_spill] sm:$0xff] }
 0x215   : >> { %6161 = vmatprep.mubr.f32.mxu0 %v1912_v39  ;;  %v1918_v27 = vmul.f32 %v1886_v34, %v10926_v38  ;;  %v1888_v39 = vld [vmem:[#allocation2 + $0xf9] sm:$0xff] }
 0x216   : >> { %v2340_v38 = vld [vmem:[#allocation11 + $0x268] sm:$0xff] }
 0x218   : >> { %6162 = vmatmul.mubr.f32.gmra.mrb[20].mxu0 %v1913_v42  ;;  %v10928_v42 = vld [vmem:[#allocation79_spill] sm:$0xff] }
 0x219   : >> { %6164 = vmatprep.mubr.f32.mxu0 %v1914_v56  ;;  %v1920_v30 = vmul.f32 %v1888_v39, %v10928_v42  ;;  %v1890_v56 = vld [vmem:[#allocation2 + $0x109] sm:$0xff] }
 0x21a   : >> { %v2342_v39 = vld [vmem:[#allocation11 + $0x278] sm:$0xff] }
 0x21c   : >> { %6165 = vmatmul.mubr.f32.gmra.mrb[22].mxu0 %v1915_v33  ;;  %v10930_v33 = vld [vmem:[#allocation81_spill] sm:$0xff] }
 0x21d   : >> { %6167 = vmatprep.mubr.f32.mxu0 %v1916_v29  ;;  %v1922_v23 = vmul.f32 %v1890_v56, %v10930_v33  ;;  %v10931_v29 = vld [vmem:[#allocation82_spill] sm:$0xff] }
 0x21e   : >> { %v1923_v34 = vmul.f32 %v1891_v26, %v10931_v29 }
 0x220   : >> { %6168 = vmatmul.mubr.f32.gmra.mrb[24].mxu0 %v1917_v36  ;;  %v2339_v36 = vld [vmem:[#allocation11 + $0x260] sm:$0xff] }
 0x221   : >> { %6170 = vmatprep.mubr.f32.mxu0 %v1918_v27  ;;  %v6803_v62 = vpack.c.bf16 %v2340_v38, %v2339_v36  ;;  %v2341_v27 = vld [vmem:[#allocation11 + $0x270] sm:$0xff] }
 0x222   : >> { %v6807_v42 = vpack.c.bf16 %v2342_v39, %v2341_v27  ;;  %v2609_v36 = vld [vmem:[#allocation11 + $0x10] sm:$0xff] }
 0x223   : >> { %6804 = vmatprep.subr.bf16.mxu1 %v6803_v62 }
 0x224   : >> { %6171 = vmatmul.mubr.f32.gmra.mrb[26].mxu0 %v1919_v50  ;;  %6806 = vmatpush3.bf16.msra.mxu1 %v6803_v62  ;;  %v2607_v50 = vld [vmem:[#allocation11] sm:$0xff]  ;;  %v2610_v62 = vld [vmem:[#allocation11 + $0x18] sm:$0xff] }
 0x225   : >> { %6173 = vmatprep.mubr.f32.mxu0 %v1920_v30  ;;  %6808 = vmatprep.subr.bf16.mxu1 %v6807_v42  ;;  %v2608_v30 = vld [vmem:[#allocation11 + $0x8] sm:$0xff] }
 0x226   : >> { %v6811_v22 = vpack.c.bf16 %v2608_v30, %v2607_v50 }
 0x228   : >> { %6174 = vmatmul.mubr.f32.gmra.mrb[28].mxu0 %v1921_v63  ;;  %6810 = vmatpush3.bf16.msra.mxu1 %v6807_v42  ;;  %v8406_v63 = vld [vmem:[%s10650_s4] ss:$0 sm:$0xff] }
 0x229   : >> { %6176 = vmatprep.mubr.f32.mxu0 %v1922_v23  ;;  %6812 = vmatprep.subr.bf16.mxu1 %v6811_v22 }
 0x22c   : >> { %6177 = vmatmul.mubr.f32.gmra.mrb[30].mxu0 %v1923_v34 }
 0x2c3   : >> { %v6133_v23 = vpop.f32.mrb[0].mxu0 }
 0x2c4   : >> { %v6963_v56 = vadd.f32 %v6133_v23, %v8406_v63  ;;  %v2007_v38 = vpop.f32.mrb[1].mxu0  ;;  %v6815_v23 = vpack.c.bf16 %v2610_v62, %v2609_v36 }
 0x2c5   : >> { %v6964_v26 = vadd.f32 %v8406_v63, %v2007_v38 }
 0x2c6   : >> { %v2231_v34 = vmul.f32 0.01, %v6963_v56  ;;  %vm2199_vm0 = vcmp.gt.f32.partialorder %v6963_v56, 0.0 }
 0x2c7   : >> { %v6136_v42 = vpop.f32.mrb[2].mxu0  ;;  %vm2198_vm1 = vcmp.gt.f32.partialorder %v6964_v26, 0.0  ;;  %v2230_v27 = vmul.f32 0.01, %v6964_v26 }
 0x2c8   : >> { %v6965_v39 = vadd.f32 %v6136_v42, %v8406_v63  ;;  %v2017_v50 = vpop.f32.mrb[3].mxu0  ;;  %v8411_v30 = vsel %vm2199_vm0, %v6963_v56, %v2231_v34 }
 0x2c9   : >> { %v6966_v29 = vadd.f32 %v8406_v63, %v2017_v50  ;;  %v8414_v33 = vsel %vm2198_vm1, %v6964_v26, %v2230_v27  ;;  %2295 = vst [vmem:[#allocation2 + $0x20] sm:$0xff] %v8411_v30  ;;  %v6819_v27 = vpack.c.bf16 %v2612_v32, %v2611_v24 }
 0x2ca   : >> { %v2233_v38 = vmul.f32 0.01, %v6965_v39  ;;  %2294 = vst [vmem:[#allocation2 + $0x18] sm:$0xff] %v8414_v33  ;;  %6211 = vmatprep.mubr.f32.mxu1 %v8414_v33  ;;  %vm2201_vm2 = vcmp.gt.f32.partialorder %v6965_v39, 0.0 }
 0x2cb   : >> { %v2232_v52 = vmul.f32 0.01, %v6966_v29  ;;  %v6139_v42 = vpop.f32.mrb[4].mxu0  ;;  %6212 = vmatmul.mubr.f32.vlgmr.msra.gmra.mrb[0].mxu1 %v8411_v30  ;;  %vm2200_vm3 = vcmp.gt.f32.partialorder %v6966_v29, 0.0 }
 0x2cc   : >> { %v6967_v56 = vadd.f32 %v6139_v42, %v8406_v63  ;;  %v2027_v26 = vpop.f32.mrb[5].mxu0  ;;  %6814 = vmatpush3.bf16.msra.mxu1 %v6811_v22  ;;  %v8421_v34 = vsel %vm2201_vm2, %v6965_v39, %v2233_v38  ;;  %v2614_v42 = vld [vmem:[#allocation11 + $0x38] sm:$0xff] }
 0x2cd   : >> { %v6968_v36 = vadd.f32 %v8406_v63, %v2027_v26  ;;  %v8424_v62 = vsel %vm2200_vm3, %v6966_v29, %v2232_v52  ;;  %2297 = vst [vmem:[#allocation2 + $0x30] sm:$0xff] %v8421_v34  ;;  %6816 = vmatprep.subr.bf16.mxu1 %v6815_v23  ;;  %v6823_v38 = vpack.c.bf16 %v2614_v42, %v2613_v37 }
 0x2ce   : >> { %v2235_v50 = vmul.f32 0.01, %v6967_v56  ;;  %2296 = vst [vmem:[#allocation2 + $0x28] sm:$0xff] %v8424_v62  ;;  %6214 = vmatprep.mubr.f32.mxu1 %v8424_v62  ;;  %vm2203_vm4 = vcmp.gt.f32.partialorder %v6967_v56, 0.0 }
 0x2cf   : >> { %v2234_v57 = vmul.f32 0.01, %v6968_v36  ;;  %v6142_v22 = vpop.f32.mrb[6].mxu0  ;;  %6215 = vmatmul.mubr.f32.gmra.mrb[2].mxu1 %v8421_v34  ;;  %vm2202_vm5 = vcmp.gt.f32.partialorder %v6968_v36, 0.0 }
 0x2d0   : >> { %v6969_v52 = vadd.f32 %v6142_v22, %v8406_v63  ;;  %v2037_v29 = vpop.f32.mrb[7].mxu0  ;;  %v8431_v39 = vsel %vm2203_vm4, %v6967_v56, %v2235_v50  ;;  %6818 = vmatpush3.bf16.msra.mxu1 %v6815_v23  ;;  %v2616_v22 = vld [vmem:[#allocation11 + $0x48] sm:$0xff] }
 0x2d1   : >> { %v6970_v32 = vadd.f32 %v8406_v63, %v2037_v29  ;;  %v8434_v24 = vsel %vm2202_vm5, %v6968_v36, %v2234_v57  ;;  %2299 = vst [vmem:[#allocation2 + $0x40] sm:$0xff] %v8431_v39  ;;  %6820 = vmatprep.subr.bf16.mxu1 %v6819_v27  ;;  %v6827_v42 = vpack.c.bf16 %v2616_v22, %v2615_v60 }
 0x2d2   : >> { %v2237_v26 = vmul.f32 0.01, %v6969_v52  ;;  %2298 = vst [vmem:[#allocation2 + $0x38] sm:$0xff] %v8434_v24  ;;  %6217 = vmatprep.mubr.f32.mxu1 %v8434_v24  ;;  %vm2205_vm6 = vcmp.gt.f32.partialorder %v6969_v52, 0.0 }
 0x2d3   : >> { %v2236_v21 = vmul.f32 0.01, %v6970_v32  ;;  %v6145_v56 = vpop.f32.mrb[8].mxu0  ;;  %6218 = vmatmul.mubr.f32.gmra.mrb[4].mxu1 %v8431_v39  ;;  %vm2204_vm7 = vcmp.gt.f32.partialorder %v6970_v32, 0.0 }
 0x2d4   : >> { %v6971_v57 = vadd.f32 %v6145_v56, %v8406_v63  ;;  %v2047_v23 = vpop.f32.mrb[9].mxu0  ;;  %v8441_v36 = vsel %vm2205_vm6, %v6969_v52, %v2237_v26  ;;  %6822 = vmatpush3.bf16.msra.mxu1 %v6819_v27  ;;  %v2618_v56 = vld [vmem:[#allocation11 + $0x58] sm:$0xff] }
 0x2d5   : >> { %v6972_v37 = vadd.f32 %v8406_v63, %v2047_v23  ;;  %v8444_v50 = vsel %vm2204_vm7, %v6970_v32, %v2236_v21  ;;  %2301 = vst [vmem:[#allocation2 + $0x50] sm:$0xff] %v8441_v36  ;;  %6824 = vmatprep.subr.bf16.mxu1 %v6823_v38  ;;  %v6831_v22 = vpack.c.bf16 %v2618_v56, %v2617_v41 }
 0x2d6   : >> { %v2239_v29 = vmul.f32 0.01, %v6971_v57  ;;  %2300 = vst [vmem:[#allocation2 + $0x48] sm:$0xff] %v8444_v50  ;;  %6220 = vmatprep.mubr.f32.mxu1 %v8444_v50  ;;  %vm2207_vm8 = vcmp.gt.f32.partialorder %v6971_v57, 0.0 }
 0x2d7   : >> { %v2238_v49 = vmul.f32 0.01, %v6972_v37  ;;  %v6148_v52 = vpop.f32.mrb[10].mxu0  ;;  %6221 = vmatmul.mubr.f32.gmra.mrb[6].mxu1 %v8441_v36  ;;  %vm2206_vm9 = vcmp.gt.f32.partialorder %v6972_v37, 0.0 }
 0x2d8   : >> { %v6973_v21 = vadd.f32 %v6148_v52, %v8406_v63  ;;  %v2057_v27 = vpop.f32.mrb[11].mxu0  ;;  %v8451_v32 = vsel %vm2207_vm8, %v6971_v57, %v2239_v29  ;;  %6826 = vmatpush3.bf16.msra.mxu1 %v6823_v38  ;;  %v2620_v52 = vld [vmem:[#allocation11 + $0x68] sm:$0xff] }
 0x2d9   : >> { %v6974_v60 = vadd.f32 %v8406_v63, %v2057_v27  ;;  %v8454_v26 = vsel %vm2206_vm9, %v6972_v37, %v2238_v49  ;;  %2303 = vst [vmem:[#allocation2 + $0x60] sm:$0xff] %v8451_v32  ;;  %6828 = vmatprep.subr.bf16.mxu1 %v6827_v42  ;;  %v6835_v56 = vpack.c.bf16 %v2620_v52, %v2619_v46 }
 0x2da   : >> { %v2241_v23 = vmul.f32 0.01, %v6973_v21  ;;  %2302 = vst [vmem:[#allocation2 + $0x58] sm:$0xff] %v8454_v26  ;;  %6223 = vmatprep.mubr.f32.mxu1 %v8454_v26  ;;  %vm2209_vm10 = vcmp.gt.f32.partialorder %v6973_v21, 0.0 }
 0x2db   : >> { %v2240_v44 = vmul.f32 0.01, %v6974_v60  ;;  %v6151_v57 = vpop.f32.mrb[12].mxu0  ;;  %6224 = vmatmul.mubr.f32.gmra.mrb[8].mxu1 %v8451_v32  ;;  %vm2208_vm11 = vcmp.gt.f32.partialorder %v6974_v60, 0.0 }
 0x2dc   : >> { %v6975_v49 = vadd.f32 %v6151_v57, %v8406_v63  ;;  %v2067_v38 = vpop.f32.mrb[13].mxu0  ;;  %v8461_v37 = vsel %vm2209_vm10, %v6973_v21, %v2241_v23  ;;  %6830 = vmatpush3.bf16.msra.mxu1 %v6827_v42  ;;  %v2622_v57 = vld [vmem:[#allocation11 + $0x78] sm:$0xff] }
 0x2dd   : >> { %v6976_v41 = vadd.f32 %v8406_v63, %v2067_v38  ;;  %v8464_v29 = vsel %vm2208_vm11, %v6974_v60, %v2240_v44  ;;  %2305 = vst [vmem:[#allocation2 + $0x70] sm:$0xff] %v8461_v37  ;;  %6832 = vmatprep.subr.bf16.mxu1 %v6831_v22  ;;  %v6839_v52 = vpack.c.bf16 %v2622_v57, %v2621_v40 }
 0x2de   : >> { %v2243_v27 = vmul.f32 0.01, %v6975_v49  ;;  %2304 = vst [vmem:[#allocation2 + $0x68] sm:$0xff] %v8464_v29  ;;  %6226 = vmatprep.mubr.f32.mxu1 %v8464_v29  ;;  %vm2211_vm12 = vcmp.gt.f32.partialorder %v6975_v49, 0.0 }
 0x2df   : >> { %v2242_v58 = vmul.f32 0.01, %v6976_v41  ;;  %v6154_v21 = vpop.f32.mrb[14].mxu0  ;;  %6227 = vmatmul.mubr.f32.gmra.mrb[10].mxu1 %v8461_v37  ;;  %vm2210_vm13 = vcmp.gt.f32.partialorder %v6976_v41, 0.0 }
 0x2e0   : >> { %v6977_v44 = vadd.f32 %v6154_v21, %v8406_v63  ;;  %v2077_v42 = vpop.f32.mrb[15].mxu0  ;;  %v8471_v60 = vsel %vm2211_vm12, %v6975_v49, %v2243_v27  ;;  %6834 = vmatpush3.bf16.msra.mxu1 %v6831_v22  ;;  %v2914_v21 = vld [vmem:[#allocation11 + $0x88] sm:$0xff] }
 0x2e1   : >> { %v6978_v46 = vadd.f32 %v8406_v63, %v2077_v42  ;;  %v8474_v23 = vsel %vm2210_vm13, %v6976_v41, %v2242_v58  ;;  %2307 = vst [vmem:[#allocation2 + $0x80] sm:$0xff] %v8471_v60  ;;  %6836 = vmatprep.subr.bf16.mxu1 %v6835_v56  ;;  %v8487_v57 = vpack.c.bf16 %v2914_v21, %v2913_v54 }
 0x2e2   : >> { %v2245_v38 = vmul.f32 0.01, %v6977_v44  ;;  %2306 = vst [vmem:[#allocation2 + $0x78] sm:$0xff] %v8474_v23  ;;  %6229 = vmatprep.mubr.f32.mxu1 %v8474_v23  ;;  %vm2213_vm14 = vcmp.gt.f32.partialorder %v6977_v44, 0.0 }
 0x2e3   : >> { %v2244_v59 = vmul.f32 0.01, %v6978_v46  ;;  %v6157_v49 = vpop.f32.mrb[16].mxu0  ;;  %6230 = vmatmul.mubr.f32.gmra.mrb[12].mxu1 %v8471_v60  ;;  %vm2212_vm15 = vcmp.gt.f32.partialorder %v6978_v46, 0.0 }
 0x2e4   : >> { %v6979_v58 = vadd.f32 %v6157_v49, %v8406_v63  ;;  %v2087_v22 = vpop.f32.mrb[17].mxu0  ;;  %v8481_v41 = vsel %vm2213_vm14, %v6977_v44, %v2245_v38  ;;  %6838 = vmatpush3.bf16.msra.mxu1 %v6835_v56 }
 0x2e5   : >> { %v6980_v40 = vadd.f32 %v8406_v63, %v2087_v22  ;;  %v8484_v27 = vsel %vm2212_vm15, %v6978_v46, %v2244_v59  ;;  %2309 = vst [vmem:[#allocation2 + $0x90] sm:$0xff] %v8481_v41  ;;  %6840 = vmatprep.subr.bf16.mxu1 %v6839_v52 }
 0x2e6   : >> { %v2247_v42 = vmul.f32 0.01, %v6979_v58  ;;  %2308 = vst [vmem:[#allocation2 + $0x88] sm:$0xff] %v8484_v27  ;;  %6232 = vmatprep.mubr.f32.mxu1 %v8484_v27  ;;  %vm2215_vm0 = vcmp.gt.f32.partialorder %v6979_v58, 0.0 }
 0x2e7   : >> { %v2246_v49 = vmul.f32 0.01, %v6980_v40  ;;  %v6160_v45 = vpop.f32.mrb[18].mxu0  ;;  %6233 = vmatmul.mubr.f32.gmra.mrb[14].mxu1 %v8481_v41  ;;  %vm2214_vm1 = vcmp.gt.f32.partialorder %v6980_v40, 0.0 }
 0x2e8   : >> { %v6981_v56 = vadd.f32 %v6160_v45, %v8406_v63  ;;  %v2097_v59 = vpop.f32.mrb[19].mxu0  ;;  %v8493_v44 = vsel %vm2215_vm0, %v6979_v58, %v2247_v42  ;;  %6842 = vmatpush3.bf16.msra.mxu1 %v6839_v52  ;;  %vm7655_vm0 = vmmov 0  }
 0x2e9   : >> { %v6982_v54 = vadd.f32 %v8406_v63, %v2097_v59  ;;  %v8496_v46 = vsel %vm2214_vm1, %v6980_v40, %v2246_v49  ;;  %2311 = vst [vmem:[#allocation2 + $0xa0] sm:$0xff] %v8493_v44  ;;  %6844 = vmatprep.subr.bf16.mxu1 %v8487_v57 }
 0x2ea   : >> { %v2249_v38 = vmul.f32 0.01, %v6981_v56  ;;  %2310 = vst [vmem:[#allocation2 + $0x98] sm:$0xff] %v8496_v46  ;;  %6235 = vmatprep.mubr.f32.mxu1 %v8496_v46  ;;  %vm2217_vm2 = vcmp.gt.f32.partialorder %v6981_v56, 0.0 }
 0x2eb   : >> { %v2248_v21 = vmul.f32 0.01, %v6982_v54  ;;  %v6163_v45 = vpop.f32.mrb[20].mxu0  ;;  %6236 = vmatmul.mubr.f32.gmra.mrb[16].mxu1 %v8493_v44  ;;  %vm2216_vm3 = vcmp.gt.f32.partialorder %v6982_v54, 0.0 }
 0x2ec   : >> { %v6983_v52 = vadd.f32 %v6163_v45, %v8406_v63  ;;  %v2107_v58 = vpop.f32.mrb[21].mxu0  ;;  %v8504_v22 = vsel %vm2217_vm2, %v6981_v56, %v2249_v38  ;;  %vm4882_vm2 = vcmask 64512  }
 0x2ed   : >> { %v6984_v40 = vadd.f32 %v8406_v63, %v2107_v58  ;;  %v8507_v42 = vsel %vm2216_vm3, %v6982_v54, %v2248_v21  ;;  %2313 = vst [vmem:[#allocation2 + $0xb0] sm:$0xff] %v8504_v22 }
 0x2ee   : >> { %v2251_v49 = vmul.f32 0.01, %v6983_v52  ;;  %2312 = vst [vmem:[#allocation2 + $0xa8] sm:$0xff] %v8507_v42  ;;  %6238 = vmatprep.mubr.f32.mxu1 %v8507_v42  ;;  %vm2219_vm4 = vcmp.gt.f32.partialorder %v6983_v52, 0.0 }
 0x2ef   : >> { %v2250_v59 = vmul.f32 0.01, %v6984_v40  ;;  %v6166_v20 = vpop.f32.mrb[22].mxu0  ;;  %6239 = vmatmul.mubr.f32.gmra.mrb[18].mxu1 %v8504_v22  ;;  %vm2218_vm5 = vcmp.gt.f32.partialorder %v6984_v40, 0.0 }
 0x2f0   : >> { %v6985_v56 = vadd.f32 %v6166_v20, %v8406_v63  ;;  %v2117_v38 = vpop.f32.mrb[23].mxu0  ;;  %v8514_v45 = vsel %vm2219_vm4, %v6983_v52, %v2251_v49 }
 0x2f1   : >> { %v6986_v54 = vadd.f32 %v8406_v63, %v2117_v38  ;;  %v8517_v21 = vsel %vm2218_vm5, %v6984_v40, %v2250_v59  ;;  %2315 = vst [vmem:[#allocation2 + $0xc0] sm:$0xff] %v8514_v45 }
 0x2f2   : >> { %v2253_v58 = vmul.f32 0.01, %v6985_v56  ;;  %2314 = vst [vmem:[#allocation2 + $0xb8] sm:$0xff] %v8517_v21  ;;  %6241 = vmatprep.mubr.f32.mxu1 %v8517_v21  ;;  %vm2221_vm6 = vcmp.gt.f32.partialorder %v6985_v56, 0.0 }
 0x2f3   : >> { %v2252_v55 = vmul.f32 0.01, %v6986_v54  ;;  %v6169_v25 = vpop.f32.mrb[24].mxu0  ;;  %6242 = vmatmul.mubr.f32.gmra.mrb[20].mxu1 %v8514_v45  ;;  %vm2220_vm7 = vcmp.gt.f32.partialorder %v6986_v54, 0.0 }
 0x2f4   : >> { %v6987_v20 = vadd.f32 %v6169_v25, %v8406_v63  ;;  %v2127_v52 = vpop.f32.mrb[25].mxu0  ;;  %v8524_v49 = vsel %vm2221_vm6, %v6985_v56, %v2253_v58 }
 0x2f5   : >> { %v6988_v40 = vadd.f32 %v8406_v63, %v2127_v52  ;;  %v8527_v59 = vsel %vm2220_vm7, %v6986_v54, %v2252_v55  ;;  %2317 = vst [vmem:[#allocation2 + $0xd0] sm:$0xff] %v8524_v49 }
 0x2f6   : >> { %v2255_v38 = vmul.f32 0.01, %v6987_v20  ;;  %2316 = vst [vmem:[#allocation2 + $0xc8] sm:$0xff] %v8527_v59  ;;  %6244 = vmatprep.mubr.f32.mxu1 %v8527_v59  ;;  %vm2223_vm8 = vcmp.gt.f32.partialorder %v6987_v20, 0.0 }
 0x2f7   : >> { %v2254_v53 = vmul.f32 0.01, %v6988_v40  ;;  %v6172_v28 = vpop.f32.mrb[26].mxu0  ;;  %6245 = vmatmul.mubr.f32.gmra.mrb[22].mxu1 %v8524_v49  ;;  %vm2222_vm9 = vcmp.gt.f32.partialorder %v6988_v40, 0.0 }
 0x2f8   : >> { %v6989_v25 = vadd.f32 %v6172_v28, %v8406_v63  ;;  %v2137_v56 = vpop.f32.mrb[27].mxu0  ;;  %v8534_v58 = vsel %vm2223_vm8, %v6987_v20, %v2255_v38 }
 0x2f9   : >> { %v6990_v55 = vadd.f32 %v8406_v63, %v2137_v56  ;;  %v8537_v54 = vsel %vm2222_vm9, %v6988_v40, %v2254_v53  ;;  %2319 = vst [vmem:[#allocation2 + $0xe0] sm:$0xff] %v8534_v58 }
 0x2fa   : >> { %v2257_v52 = vmul.f32 0.01, %v6989_v25  ;;  %2318 = vst [vmem:[#allocation2 + $0xd8] sm:$0xff] %v8537_v54  ;;  %6247 = vmatprep.mubr.f32.mxu1 %v8537_v54  ;;  %vm2225_vm10 = vcmp.gt.f32.partialorder %v6989_v25, 0.0 }
 0x2fb   : >> { %v2256_v31 = vmul.f32 0.01, %v6990_v55  ;;  %v6175_v47 = vpop.f32.mrb[28].mxu0  ;;  %6248 = vmatmul.mubr.f32.gmra.mrb[24].mxu1 %v8534_v58  ;;  %vm2224_vm11 = vcmp.gt.f32.partialorder %v6990_v55, 0.0 }
 0x2fc   : >> { %v6991_v28 = vadd.f32 %v6175_v47, %v8406_v63  ;;  %v2147_v20 = vpop.f32.mrb[29].mxu0  ;;  %v8544_v38 = vsel %vm2225_vm10, %v6989_v25, %v2257_v52 }
 0x2fd   : >> { %v6992_v53 = vadd.f32 %v8406_v63, %v2147_v20  ;;  %v8547_v40 = vsel %vm2224_vm11, %v6990_v55, %v2256_v31  ;;  %2321 = vst [vmem:[#allocation2 + $0xf0] sm:$0xff] %v8544_v38 }
 0x2fe   : >> { %v2259_v56 = vmul.f32 0.01, %v6991_v28  ;;  %2320 = vst [vmem:[#allocation2 + $0xe8] sm:$0xff] %v8547_v40  ;;  %6250 = vmatprep.mubr.f32.mxu1 %v8547_v40  ;;  %vm2227_vm12 = vcmp.gt.f32.partialorder %v6991_v28, 0.0 }
 0x2ff   : >> { %v2258_v43 = vmul.f32 0.01, %v6992_v53  ;;  %v6178_v35 = vpop.f32.mrb[30].mxu0  ;;  %6251 = vmatmul.mubr.f32.gmra.mrb[26].mxu1 %v8544_v38  ;;  %vm2226_vm13 = vcmp.gt.f32.partialorder %v6992_v53, 0.0 }
 0x300   : >> { %v6993_v47 = vadd.f32 %v6178_v35, %v8406_v63  ;;  %v2157_v25 = vpop.f32.mrb[31].mxu0  ;;  %v8554_v52 = vsel %vm2227_vm12, %v6991_v28, %v2259_v56  ;;  %v2576_v56 = vld [vmem:[#allocation2 + $0x10] sm:$0xff] }
 0x301   : >> { %v6994_v31 = vadd.f32 %v8406_v63, %v2157_v25  ;;  %v8557_v55 = vsel %vm2226_vm13, %v6992_v53, %v2258_v43  ;;  %2323 = vst [vmem:[#allocation2 + $0x100] sm:$0xff] %v8554_v52  ;;  %v8568_v43 = vld [vmem:[#allocation2 + $0x8] sm:$0xff]  ;;  %v2915_v63 = vld [vmem:[#allocation11 + $0x90] sm:$0xff] }
 0x302   : >> { %v2261_v20 = vmul.f32 0.01, %v6993_v47  ;;  %2322 = vst [vmem:[#allocation2 + $0xf8] sm:$0xff] %v8557_v55  ;;  %6253 = vmatprep.mubr.f32.mxu1 %v8557_v55  ;;  %vm2229_vm14 = vcmp.gt.f32.partialorder %v6993_v47, 0.0  ;;  %10932 = vst [vmem:[#allocation83_spill] sm:$0xff] %v8568_v43  ;;  %v2916_v53 = vld [vmem:[#allocation11 + $0x98] sm:$0xff] }
 0x303   : >> { %v2260_v48 = vmul.f32 0.01, %v6994_v31  ;;  %6254 = vmatmul.mubr.f32.gmra.mrb[28].mxu1 %v8554_v52  ;;  %vm2228_vm15 = vcmp.gt.f32.partialorder %v6994_v31, 0.0  ;;  %v6847_v25 = vpack.c.bf16 %v2916_v53, %v2915_v63  ;;  %v2922_v63 = vld [vmem:[#allocation11 + $0xc8] sm:$0xff]  ;;  %v2924_v53 = vld [vmem:[#allocation11 + $0xd8] sm:$0xff] }
 0x304   : >> { %v8563_v35 = vsel %vm2229_vm14, %v6993_v47, %v2261_v20  ;;  %v2917_v47 = vld [vmem:[#allocation11 + $0xa0] sm:$0xff]  ;;  %v2918_v20 = vld [vmem:[#allocation11 + $0xa8] sm:$0xff] }
 0x305   : >> { %v8565_v28 = vsel %vm2228_vm15, %v6994_v31, %v2260_v48  ;;  %2325 = vst [vmem:[#allocation2 + $0x110] sm:$0xff] %v8563_v35  ;;  %v6851_v48 = vpack.c.bf16 %v2918_v20, %v2917_v47  ;;  %v2919_v31 = vld [vmem:[#allocation11 + $0xb0] sm:$0xff]  ;;  %v3251_v20 = vld [vmem:[#allocation11 + $0x100] sm:$0xff] }
 0x306   : >> { %2324 = vst [vmem:[#allocation2 + $0x108] sm:$0xff] %v8565_v28  ;;  %6256 = vmatprep.mubr.f32.mxu1 %v8565_v28  ;;  %v2927_v47 = vld [vmem:[#allocation11 + $0xf0] sm:$0xff] }
 0x307   : >> { %6257 = vmatmul.mubr.f32.gmra.mrb[30].mxu1 %v8563_v35 }
 0x308   : >> { %6291 = vmatprep.mubr.f32.mxu1 %v8568_v43  ;;  %v6855_v43 = vpack.c.bf16 %v2920_v61, %v2919_v31  ;;  %v2926_v61 = vld [vmem:[#allocation11 + $0xe8] sm:$0xff] }
 0x30b   : >> { %6292 = vmatmul.mubr.f32.vlgmr.msra.gmra.mrb[0].mxu1 %v2576_v56  ;;  %v2925_v56 = vld [vmem:[#allocation11 + $0xe0] sm:$0xff] }
 0x30c   : >> { %6294 = vmatprep.mubr.f32.mxu1 %v8414_v33  ;;  %6846 = vmatpush3.bf16.msra.mxu1 %v8487_v57  ;;  %v6859_v33 = vpack.c.bf16 %v2922_v63, %v2921_v51  ;;  %v2923_v57 = vld [vmem:[#allocation11 + $0xd0] sm:$0xff]  ;;  %v2928_v51 = vld [vmem:[#allocation11 + $0xf8] sm:$0xff] }
 0x30d   : >> { %6848 = vmatprep.subr.bf16.mxu1 %v6847_v25  ;;  %v3253_v63 = vld [vmem:[#allocation11 + $0x110] sm:$0xff] }
 0x30f   : >> { %6295 = vmatmul.mubr.f32.gmra.mrb[2].mxu1 %v8411_v30  ;;  %v6863_v30 = vpack.c.bf16 %v2924_v53, %v2923_v57  ;;  %v3255_v53 = vld [vmem:[#allocation11 + $0x120] sm:$0xff] }
 0x310   : >> { %6297 = vmatprep.mubr.f32.mxu1 %v8424_v62  ;;  %6850 = vmatpush3.bf16.msra.mxu1 %v6847_v25  ;;  %v6867_v25 = vpack.c.bf16 %v2926_v61, %v2925_v56  ;;  %v3257_v61 = vld [vmem:[#allocation11 + $0x130] sm:$0xff] }
 0x311   : >> { %6852 = vmatprep.subr.bf16.mxu1 %v6851_v48 }
 0x313   : >> { %6298 = vmatmul.mubr.f32.gmra.mrb[4].mxu1 %v8421_v34 }
 0x314   : >> { %6300 = vmatprep.mubr.f32.mxu1 %v8434_v24  ;;  %6854 = vmatpush3.bf16.msra.mxu1 %v6851_v48  ;;  %v3252_v48 = vld [vmem:[#allocation11 + $0x108] sm:$0xff] }
 0x315   : >> { %6856 = vmatprep.subr.bf16.mxu1 %v6855_v43  ;;  %v6875_v31 = vpack.c.bf16 %v3252_v48, %v3251_v20  ;;  %v3264_v20 = vld [vmem:[#allocation11 + $0x168] sm:$0xff]  ;;  %v3266_v48 = vld [vmem:[#allocation11 + $0x178] sm:$0xff] }
 0x317   : >> { %6301 = vmatmul.mubr.f32.gmra.mrb[6].mxu1 %v8431_v39 }
 0x318   : >> { %6303 = vmatprep.mubr.f32.mxu1 %v8444_v50  ;;  %6858 = vmatpush3.bf16.msra.mxu1 %v6855_v43  ;;  %v6871_v43 = vpack.c.bf16 %v2928_v51, %v2927_v47  ;;  %v3260_v51 = vld [vmem:[#allocation11 + $0x148] sm:$0xff] }
 0x319   : >> { %6860 = vmatprep.subr.bf16.mxu1 %v6859_v33 }
 0x31b   : >> { %6304 = vmatmul.mubr.f32.gmra.mrb[8].mxu1 %v8441_v36 }
 0x31c   : >> { %6306 = vmatprep.mubr.f32.mxu1 %v8454_v26  ;;  %6862 = vmatpush3.bf16.msra.mxu1 %v6859_v33  ;;  %v3254_v33 = vld [vmem:[#allocation11 + $0x118] sm:$0xff] }
 0x31d   : >> { %6864 = vmatprep.subr.bf16.mxu1 %v6863_v30  ;;  %v6879_v57 = vpack.c.bf16 %v3254_v33, %v3253_v63  ;;  %v3596_v63 = vld [vmem:[#allocation11 + $0x1b8] sm:$0xff] }
 0x31e   : >> { %v3192_v33 = vld [vmem:[#allocation2 + $0x47] sm:$0xff] }
 0x31f   : >> { %6307 = vmatmul.mubr.f32.gmra.mrb[10].mxu1 %v8451_v32 }
 0x320   : >> { %6309 = vmatprep.mubr.f32.mxu1 %v8464_v29  ;;  %6866 = vmatpush3.bf16.msra.mxu1 %v6863_v30  ;;  %v3256_v30 = vld [vmem:[#allocation11 + $0x128] sm:$0xff] }
 0x321   : >> { %6868 = vmatprep.subr.bf16.mxu1 %v6867_v25  ;;  %v6883_v56 = vpack.c.bf16 %v3256_v30, %v3255_v53  ;;  %v3224_v30 = vmul.f32 %v3192_v33, %v10874_v7 }
 0x323   : >> { %6310 = vmatmul.mubr.f32.gmra.mrb[12].mxu1 %v8461_v37 }
 0x324   : >> { %6312 = vmatprep.mubr.f32.mxu1 %v8474_v23  ;;  %6870 = vmatpush3.bf16.msra.mxu1 %v6867_v25  ;;  %v3258_v25 = vld [vmem:[#allocation11 + $0x138] sm:$0xff] }
 0x325   : >> { %6872 = vmatprep.subr.bf16.mxu1 %v6871_v43  ;;  %v6887_v47 = vpack.c.bf16 %v3258_v25, %v3257_v61  ;;  %v3597_v61 = vld [vmem:[#allocation11 + $0x1c0] sm:$0xff]  ;;  %v3598_v25 = vld [vmem:[#allocation11 + $0x1c8] sm:$0xff] }
 0x327   : >> { %6313 = vmatmul.mubr.f32.gmra.mrb[14].mxu1 %v8471_v60 }
 0x328   : >> { %6315 = vmatprep.mubr.f32.mxu1 %v8484_v27  ;;  %6874 = vmatpush3.bf16.msra.mxu1 %v6871_v43  ;;  %v3262_v43 = vld [vmem:[#allocation11 + $0x158] sm:$0xff] }
 0x329   : >> { %6876 = vmatprep.subr.bf16.mxu1 %v6875_v31 }
 0x32b   : >> { %6316 = vmatmul.mubr.f32.gmra.mrb[16].mxu1 %v8481_v41 }
 0x32c   : >> { %6318 = vmatprep.mubr.f32.mxu1 %v8496_v46 }
 0x32f   : >> { %6319 = vmatmul.mubr.f32.gmra.mrb[18].mxu1 %v8493_v44 }
 0x330   : >> { %6321 = vmatprep.mubr.f32.mxu1 %v8507_v42 }
 0x333   : >> { %6322 = vmatmul.mubr.f32.gmra.mrb[20].mxu1 %v8504_v22 }
 0x334   : >> { %6324 = vmatprep.mubr.f32.mxu1 %v8517_v21 }
 0x337   : >> { %6325 = vmatmul.mubr.f32.gmra.mrb[22].mxu1 %v8514_v45 }
 0x338   : >> { %6327 = vmatprep.mubr.f32.mxu1 %v8527_v59 }
 0x33b   : >> { %6328 = vmatmul.mubr.f32.gmra.mrb[24].mxu1 %v8524_v49 }
 0x33c   : >> { %6330 = vmatprep.mubr.f32.mxu1 %v8537_v54 }
 0x33f   : >> { %6331 = vmatmul.mubr.f32.gmra.mrb[26].mxu1 %v8534_v58 }
 0x340   : >> { %6333 = vmatprep.mubr.f32.mxu1 %v8547_v40 }
 0x343   : >> { %6334 = vmatmul.mubr.f32.gmra.mrb[28].mxu1 %v8544_v38 }
 0x344   : >> { %6336 = vmatprep.mubr.f32.mxu1 %v8557_v55 }
 0x347   : >> { %6337 = vmatmul.mubr.f32.gmra.mrb[30].mxu1 %v8554_v52 }
 0x348   : >> { %6371 = vmatprep.mubr.f32.mxu1 %v8424_v62  ;;  %v3259_v62 = vld [vmem:[#allocation11 + $0x140] sm:$0xff] }
 0x34b   : >> { %6372 = vmatmul.mubr.f32.vlgmr.msra.gmra.mrb[0].mxu1 %v8421_v34  ;;  %v6891_v34 = vpack.c.bf16 %v3260_v51, %v3259_v62  ;;  %v6923_v51 = vpack.c.bf16 %v3598_v25, %v3597_v61  ;;  %v10934_v61 = vld [vmem:[#allocation40_spill] sm:$0xff] }
 0x34c   : >> { %6374 = vmatprep.mubr.f32.mxu1 %v8434_v24  ;;  %6878 = vmatpush3.bf16.msra.mxu1 %v6875_v31  ;;  %v3261_v24 = vld [vmem:[#allocation11 + $0x150] sm:$0xff]  ;;  %v3590_v31 = vld [vmem:[#allocation11 + $0x188] sm:$0xff] }
 0x34d   : >> { %6880 = vmatprep.subr.bf16.mxu1 %v6879_v57 }
 0x34f   : >> { %6375 = vmatmul.mubr.f32.gmra.mrb[2].mxu1 %v8431_v39  ;;  %v6895_v39 = vpack.c.bf16 %v3262_v43, %v3261_v24  ;;  %v3195_v24 = vld [vmem:[#allocation2 + $0x5f] sm:$0xff] }
 0x350   : >> { %6377 = vmatprep.mubr.f32.mxu1 %v8444_v50  ;;  %6882 = vmatpush3.bf16.msra.mxu1 %v6879_v57  ;;  %v3263_v50 = vld [vmem:[#allocation11 + $0x160] sm:$0xff]  ;;  %v3599_v43 = vld [vmem:[#allocation11 + $0x1d0] sm:$0xff] }
 0x351   : >> { %6884 = vmatprep.subr.bf16.mxu1 %v6883_v56 }
 0x353   : >> { %6378 = vmatmul.mubr.f32.gmra.mrb[4].mxu1 %v8441_v36  ;;  %v6899_v36 = vpack.c.bf16 %v3264_v20, %v3263_v50  ;;  %v3196_v50 = vld [vmem:[#allocation2 + $0x67] sm:$0xff]  ;;  %v3227_v20 = vmul.f32 %v3195_v24, %v10877_v10  ;;  %v8949_v10 = vld [vmem:[%s10653_s7 + $0x6] ss:$0 sm:$0xff] }
 0x354   : >> { %6380 = vmatprep.mubr.f32.mxu1 %v8454_v26  ;;  %6886 = vmatpush3.bf16.msra.mxu1 %v6883_v56  ;;  %v3265_v26 = vld [vmem:[#allocation11 + $0x170] sm:$0xff]  ;;  %v3193_v56 = vld [vmem:[#allocation2 + $0x4f] sm:$0xff]  ;;  %10983 = vst [vmem:[#allocation87_spill] sm:$0xff] %v8949_v10 }
 0x355   : >> { %6888 = vmatprep.subr.bf16.mxu1 %v6887_v47  ;;  %v3225_v62 = vmul.f32 %v3193_v56, %v10875_v8  ;;  %v3208_v56 = vld [vmem:[#allocation2 + $0xc7] sm:$0xff] }
 0x356   : >> { %v10936_v24 = vld [vmem:[#allocation42_spill] sm:$0xff] }
 0x357   : >> { %6381 = vmatmul.mubr.f32.gmra.mrb[6].mxu1 %v8451_v32  ;;  %v6903_v32 = vpack.c.bf16 %v3266_v48, %v3265_v26  ;;  %v3228_v26 = vmul.f32 %v3196_v50, %v10878_v11  ;;  %v3197_v48 = vld [vmem:[#allocation2 + $0x6f] sm:$0xff] }
 0x358   : >> { %6383 = vmatprep.mubr.f32.mxu1 %v8464_v29  ;;  %6890 = vmatpush3.bf16.msra.mxu1 %v6887_v47  ;;  %v3589_v29 = vld [vmem:[#allocation11 + $0x180] sm:$0xff] }
 0x359   : >> { %6892 = vmatprep.subr.bf16.mxu1 %v6891_v34  ;;  %v3194_v47 = vld [vmem:[#allocation2 + $0x57] sm:$0xff] }
 0x35b   : >> { %6384 = vmatmul.mubr.f32.gmra.mrb[8].mxu1 %v8461_v37  ;;  %v6907_v37 = vpack.c.bf16 %v3590_v31, %v3589_v29  ;;  %v3602_v29 = vld [vmem:[#allocation11 + $0x1e8] sm:$0xff] }
 0x35c   : >> { %6386 = vmatprep.mubr.f32.mxu1 %v8474_v23  ;;  %6894 = vmatpush3.bf16.msra.mxu1 %v6891_v34  ;;  %v3186_v23 = vld [vmem:[#allocation2 + $0x17] sm:$0xff]  ;;  %v3226_v34 = vmul.f32 %v3194_v47, %v10876_v9  ;;  %v10935_v47 = vld [vmem:[#allocation41_spill] sm:$0xff] }
 0x35d   : >> { %6896 = vmatprep.subr.bf16.mxu1 %v6895_v39  ;;  %v3198_v31 = vld [vmem:[#allocation2 + $0x77] sm:$0xff] }
 0x35f   : >> { %6387 = vmatmul.mubr.f32.gmra.mrb[10].mxu1 %v8471_v60  ;;  %v8634_v60 = vld [vmem:[#allocation2 + $0x118] sm:$0xff] }
 0x360   : >> { %6389 = vmatprep.mubr.f32.mxu1 %v8484_v27  ;;  %6898 = vmatpush3.bf16.msra.mxu1 %v6895_v39  ;;  %v3218_v27 = vmul.f32 %v3186_v23, %v10868_v1  ;;  %v3600_v39 = vld [vmem:[#allocation11 + $0x1d8] sm:$0xff] }
 0x361   : >> { %6900 = vmatprep.subr.bf16.mxu1 %v6899_v36 }
 0x363   : >> { %6390 = vmatmul.mubr.f32.gmra.mrb[12].mxu1 %v8481_v41  ;;  %v8638_v41 = vld [vmem:[#allocation2 + $0x120] sm:$0xff] }
 0x364   : >> { %6392 = vmatprep.mubr.f32.mxu1 %v8496_v46  ;;  %6902 = vmatpush3.bf16.msra.mxu1 %v6899_v36  ;;  %v3591_v46 = vld [vmem:[#allocation11 + $0x190] sm:$0xff]  ;;  %v6927_v36 = vpack.c.bf16 %v3600_v39, %v3599_v43  ;;  %v10937_v39 = vld [vmem:[#allocation43_spill] sm:$0xff] }
 0x365   : >> { %6904 = vmatprep.subr.bf16.mxu1 %v6903_v32 }
 0x367   : >> { %6393 = vmatmul.mubr.f32.gmra.mrb[14].mxu1 %v8493_v44  ;;  %v3187_v44 = vld [vmem:[#allocation2 + $0x1f] sm:$0xff] }
 0x368   : >> { %6395 = vmatprep.mubr.f32.mxu1 %v8507_v42  ;;  %6906 = vmatpush3.bf16.msra.mxu1 %v6903_v32  ;;  %v3188_v42 = vld [vmem:[#allocation2 + $0x27] sm:$0xff]  ;;  %v3601_v32 = vld [vmem:[#allocation11 + $0x1e0] sm:$0xff] }
 0x369   : >> { %6908 = vmatprep.subr.bf16.mxu1 %v6907_v37  ;;  %v6931_v23 = vpack.c.bf16 %v3602_v29, %v3601_v32  ;;  %v10939_v32 = vld [vmem:[#allocation45_spill] sm:$0xff] }
 0x36b   : >> { %6396 = vmatmul.mubr.f32.gmra.mrb[16].mxu1 %v8504_v22  ;;  %v3592_v22 = vld [vmem:[#allocation11 + $0x198] sm:$0xff] }
 0x36c   : >> { %6398 = vmatprep.mubr.f32.mxu1 %v8517_v21  ;;  %v6911_v21 = vpack.c.bf16 %v3592_v22, %v3591_v46  ;;  %v3603_v46 = vld [vmem:[#allocation11 + $0x1f0] sm:$0xff]  ;;  %v3604_v22 = vld [vmem:[#allocation11 + $0x1f8] sm:$0xff] }
 0x36f   : >> { %6399 = vmatmul.mubr.f32.gmra.mrb[18].mxu1 %v8514_v45  ;;  %v3219_v45 = vmul.f32 %v3187_v44, %v10869_v2  ;;  %v3199_v44 = vld [vmem:[#allocation2 + $0x7f] sm:$0xff] }
 0x370   : >> { %6401 = vmatprep.mubr.f32.mxu1 %v8527_v59  ;;  %v3189_v59 = vld [vmem:[#allocation2 + $0x2f] sm:$0xff] }
 0x373   : >> { %6402 = vmatmul.mubr.f32.gmra.mrb[20].mxu1 %v8524_v49  ;;  %v3220_v49 = vmul.f32 %v3188_v42, %v10870_v3  ;;  %v3200_v42 = vld [vmem:[#allocation2 + $0x87] sm:$0xff] }
 0x374   : >> { %6404 = vmatprep.mubr.f32.mxu1 %v8537_v54  ;;  %v3594_v54 = vld [vmem:[#allocation11 + $0x1a8] sm:$0xff] }
 0x377   : >> { %6405 = vmatmul.mubr.f32.gmra.mrb[22].mxu1 %v8534_v58  ;;  %v3593_v58 = vld [vmem:[#allocation11 + $0x1a0] sm:$0xff] }
 0x378   : >> { %6407 = vmatprep.mubr.f32.mxu1 %v8547_v40  ;;  %v3221_v40 = vmul.f32 %v3189_v59, %v10871_v4  ;;  %v3201_v59 = vld [vmem:[#allocation2 + $0x8f] sm:$0xff] }
 0x37b   : >> { %6408 = vmatmul.mubr.f32.gmra.mrb[24].mxu1 %v8544_v38  ;;  %v3190_v38 = vld [vmem:[#allocation2 + $0x37] sm:$0xff] }
 0x37c   : >> { %6410 = vmatprep.mubr.f32.mxu1 %v8557_v55  ;;  %v3222_v55 = vmul.f32 %v3190_v38, %v10872_v5  ;;  %v8968_v5 = vld [vmem:[%s10653_s7 + $0x8] ss:$0 sm:$0xff] }
 0x37d   : >> { %10986 = vst [vmem:[#allocation90_spill] sm:$0xff] %v8968_v5 }
 0x37f   : >> { %6411 = vmatmul.mubr.f32.gmra.mrb[26].mxu1 %v8554_v52  ;;  %v6915_v52 = vpack.c.bf16 %v3594_v54, %v3593_v58  ;;  %v3202_v58 = vld [vmem:[#allocation2 + $0x97] sm:$0xff]  ;;  %v3233_v54 = vmul.f32 %v3201_v59, %v10883_v16 }
 0x380   : >> { %6413 = vmatprep.mubr.f32.mxu1 %v8565_v28  ;;  %v3595_v28 = vld [vmem:[#allocation11 + $0x1b0] sm:$0xff]  ;;  %v3234_v38 = vmul.f32 %v3202_v58, %v10884_v17  ;;  %v3217_v58 = vld [vmem:[#allocation2 + $0x10f] sm:$0xff] }
 0x381   : >> { %v6919_v53 = vpack.c.bf16 %v3596_v63, %v3595_v28  ;;  %v3205_v28 = vld [vmem:[#allocation2 + $0xaf] sm:$0xff]  ;;  %v3206_v63 = vld [vmem:[#allocation2 + $0xb7] sm:$0xff]  ;;  %v8934_v17 = vld [vmem:[%s10653_s7 + $0x3] ss:$0 sm:$0xff] }
 0x382   : >> { %v3237_v33 = vmul.f32 %v3205_v28, %v10887_v0  ;;  %v3526_v28 = vld [vmem:[#allocation2 + $0x29] sm:$0xff]  ;;  %v5268_v0 = vld [vmem:[%s10981_s23] ss:$0 sm:$0xff] }
 0x383   : >> { %6414 = vmatmul.mubr.f32.gmra.mrb[28].mxu1 %v8563_v35  ;;  %v3191_v35 = vld [vmem:[#allocation2 + $0x3f] sm:$0xff] }
 0x384   : >> { %6416 = vmatprep.mubr.f32.mxu1 %v8634_v60  ;;  %v3223_v57 = vmul.f32 %v3191_v35, %v10873_v6  ;;  %v4399_v16 = vld [vmem:[#allocation2 + $0x119] sm:$0xff] }
 0x387   : >> { %6417 = vmatmul.mubr.f32.gmra.mrb[30].mxu1 %v8638_v41 }
 0x388   : >> { %6451 = vmatprep.mubr.f32.mxu1 %v3218_v27  ;;  %v3230_v27 = vmul.f32 %v3198_v31, %v10880_v13  ;;  %v3213_v31 = vld [vmem:[#allocation2 + $0xef] sm:$0xff] }
 0x38b   : >> { %6452 = vmatmul.mubr.f32.vlgmr.msra.gmra.mrb[0].mxu1 %v3219_v45  ;;  %v3231_v45 = vmul.f32 %v3199_v44, %v10881_v14  ;;  %v10941_v44 = vld [vmem:[#allocation47_spill] sm:$0xff] }
 0x38c   : >> { %6454 = vmatprep.mubr.f32.mxu1 %v3220_v49  ;;  %6910 = vmatpush3.bf16.msra.mxu1 %v6907_v37  ;;  %v3229_v37 = vmul.f32 %v3197_v48, %v10879_v12  ;;  %v3232_v49 = vmul.f32 %v3200_v42, %v10882_v15  ;;  %v3216_v42 = vld [vmem:[#allocation2 + $0x107] sm:$0xff] }
 0x38d   : >> { %6912 = vmatprep.subr.bf16.mxu1 %v6911_v21  ;;  %v4400_v15 = vld [vmem:[#allocation2 + $0x121] sm:$0xff] }
 0x38f   : >> { %6455 = vmatmul.mubr.f32.gmra.mrb[2].mxu1 %v3221_v40  ;;  %v3203_v40 = vld [vmem:[#allocation2 + $0x9f] sm:$0xff] }
 0x390   : >> { %6457 = vmatprep.mubr.f32.mxu1 %v3222_v55  ;;  %6914 = vmatpush3.bf16.msra.mxu1 %v6911_v21  ;;  %v6935_v21 = vpack.c.bf16 %v3604_v22, %v3603_v46  ;;  %v3235_v55 = vmul.f32 %v3203_v40, %v10885_v18  ;;  %v3215_v22 = vld [vmem:[#allocation2 + $0xff] sm:$0xff] }
 0x391   : >> { %6916 = vmatprep.subr.bf16.mxu1 %v6915_v52  ;;  %v4149_v18 = vld [vmem:[#allocation2 + $0x11f] sm:$0xff] }
 0x392   : >> { %v8963_v6 = vmul.f32 %v8949_v10, %v4149_v18 }
 0x393   : >> { %6458 = vmatmul.mubr.f32.gmra.mrb[4].mxu1 %v3223_v57  ;;  %v10933_v57 = vld [vmem:[#allocation39_spill] sm:$0xff] }
 0x394   : >> { %6460 = vmatprep.mubr.f32.mxu1 %v3224_v30  ;;  %6918 = vmatpush3.bf16.msra.mxu1 %v6915_v52  ;;  %v3204_v52 = vld [vmem:[#allocation2 + $0xa7] sm:$0xff]  ;;  %v3207_v30 = vld [vmem:[#allocation2 + $0xbf] sm:$0xff]  ;;  %10985 = vst [vmem:[#allocation89_spill] sm:$0xff] %v8963_v6 }
 0x395   : >> { %6920 = vmatprep.subr.bf16.mxu1 %v6919_v53  ;;  %v3236_v35 = vmul.f32 %v3204_v52, %v10886_v19  ;;  %v3239_v25 = vmul.f32 %v3207_v30, %v10934_v61  ;;  %v10945_v52 = vld [vmem:[#allocation51_spill] sm:$0xff] }
 0x396   : >> { %v4365_v61 = vld [vmem:[#allocation2 + $0x9] sm:$0xff] }
 0x397   : >> { %6461 = vmatmul.mubr.f32.gmra.mrb[6].mxu1 %v3225_v62  ;;  %v3240_v62 = vmul.f32 %v3208_v56, %v10935_v47  ;;  %v3527_v56 = vld [vmem:[#allocation2 + $0x31] sm:$0xff]  ;;  %v8915_v47 = vld [vmem:[%s10653_s7] ss:$0 sm:$0xff] }
 0x398   : >> { %6463 = vmatprep.mubr.f32.mxu1 %v3226_v34  ;;  %6922 = vmatpush3.bf16.msra.mxu1 %v6919_v53  ;;  %v3238_v53 = vmul.f32 %v3206_v63, %v10933_v57  ;;  %v3210_v34 = vld [vmem:[#allocation2 + $0xd7] sm:$0xff] }
 0x399   : >> { %6924 = vmatprep.subr.bf16.mxu1 %v6923_v51  ;;  %v3242_v50 = vmul.f32 %v3210_v34, %v10937_v39  ;;  %v10946_v63 = vld [vmem:[#allocation52_spill] sm:$0xff]  ;;  %v10949_v34 = vld [vmem:[#allocation55_spill] sm:$0xff] }
 0x39b   : >> { %6464 = vmatmul.mubr.f32.gmra.mrb[8].mxu1 %v3227_v20  ;;  %v3211_v20 = vld [vmem:[#allocation2 + $0xdf] sm:$0xff] }
 0x39c   : >> { %6466 = vmatprep.mubr.f32.mxu1 %v3228_v26  ;;  %6926 = vmatpush3.bf16.msra.mxu1 %v6923_v51  ;;  %v3209_v51 = vld [vmem:[#allocation2 + $0xcf] sm:$0xff]  ;;  %v10938_v26 = vld [vmem:[#allocation44_spill] sm:$0xff] }
 0x39d   : >> { %6928 = vmatprep.subr.bf16.mxu1 %v6927_v36  ;;  %v3241_v43 = vmul.f32 %v3209_v51, %v10936_v24  ;;  %v3243_v48 = vmul.f32 %v3211_v20, %v10938_v26  ;;  %v3530_v20 = vld [vmem:[#allocation2 + $0x49] sm:$0xff] }
 0x39e   : >> { %v4115_v24 = vld [vmem:[#allocation2 + $0xf] sm:$0xff] }
 0x39f   : >> { %6467 = vmatmul.mubr.f32.gmra.mrb[10].mxu1 %v3229_v37  ;;  %v3214_v37 = vld [vmem:[#allocation2 + $0xf7] sm:$0xff]  ;;  %v4158_v13 = vmul.f32 %v8915_v47, %v4115_v24 }
 0x3a0   : >> { %6469 = vmatprep.mubr.f32.mxu1 %v3230_v27  ;;  %6930 = vmatpush3.bf16.msra.mxu1 %v6927_v36  ;;  %v3212_v36 = vld [vmem:[#allocation2 + $0xe7] sm:$0xff]  ;;  %v3246_v46 = vmul.f32 %v3214_v37, %v10941_v44  ;;  %v3531_v37 = vld [vmem:[#allocation2 + $0x51] sm:$0xff] }
 0x3a1   : >> { %6932 = vmatprep.subr.bf16.mxu1 %v6931_v23  ;;  %v3244_v29 = vmul.f32 %v3212_v36, %v10939_v32  ;;  %v10950_v36 = vld [vmem:[#allocation56_spill] sm:$0xff] }
 0x3a3   : >> { %6470 = vmatmul.mubr.f32.gmra.mrb[12].mxu1 %v3231_v45  ;;  %v10942_v45 = vld [vmem:[#allocation48_spill] sm:$0xff] }
 0x3a4   : >> { %6472 = vmatprep.mubr.f32.mxu1 %v3232_v49  ;;  %6934 = vmatpush3.bf16.msra.mxu1 %v6931_v23  ;;  %v10940_v23 = vld [vmem:[#allocation46_spill] sm:$0xff]  ;;  %v10943_v49 = vld [vmem:[#allocation49_spill] sm:$0xff] }
 0x3a5   : >> { %6936 = vmatprep.subr.bf16.mxu1 %v6935_v21  ;;  %v3245_v27 = vmul.f32 %v3213_v31, %v10940_v23  ;;  %v3248_v59 = vmul.f32 %v3216_v42, %v10943_v49  ;;  %v10953_v42 = vld [vmem:[#allocation59_spill] sm:$0xff] }
 0x3a6   : >> { %v3543_v49 = vld [vmem:[#allocation2 + $0xb1] sm:$0xff] }
 0x3a7   : >> { %6473 = vmatmul.mubr.f32.gmra.mrb[14].mxu1 %v3233_v54  ;;  %v3524_v54 = vld [vmem:[#allocation2 + $0x19] sm:$0xff] }
 0x3a8   : >> { %6475 = vmatprep.mubr.f32.mxu1 %v3234_v38  ;;  %6938 = vmatpush3.bf16.msra.mxu1 %v6935_v21  ;;  %v3247_v21 = vmul.f32 %v3215_v22, %v10942_v45  ;;  %v10944_v38 = vld [vmem:[#allocation50_spill] sm:$0xff]  ;;  %v10965_v45 = vld [vmem:[#allocation71_spill] sm:$0xff] }
 0x3a9   : >> { %v3249_v40 = vmul.f32 %v3217_v58, %v10944_v38  ;;  %v3534_v58 = vld [vmem:[#allocation2 + $0x69] sm:$0xff]  ;;  %v10963_v38 = vld [vmem:[#allocation69_spill] sm:$0xff] }
 0x3ab   : >> { %6476 = vmatmul.mubr.f32.gmra.mrb[16].mxu1 %v3235_v55  ;;  %v3556_v55 = vmul.f32 %v3524_v54, %v10945_v52  ;;  %v10954_v54 = vld [vmem:[#allocation60_spill] sm:$0xff] }
 0x3ac   : >> { %6478 = vmatprep.mubr.f32.mxu1 %v3236_v35  ;;  %v3525_v35 = vld [vmem:[#allocation2 + $0x21] sm:$0xff] }
 0x3af   : >> { %6479 = vmatmul.mubr.f32.gmra.mrb[18].mxu1 %v3237_v33  ;;  %v3557_v33 = vmul.f32 %v3525_v35, %v10946_v63 }
 0x3b0   : >> { %6481 = vmatprep.mubr.f32.mxu1 %v3238_v53  ;;  %v10947_v53 = vld [vmem:[#allocation53_spill] sm:$0xff] }
 0x3b1   : >> { %v3558_v30 = vmul.f32 %v3526_v28, %v10947_v53  ;;  %v3535_v28 = vld [vmem:[#allocation2 + $0x71] sm:$0xff] }
 0x3b3   : >> { %6482 = vmatmul.mubr.f32.gmra.mrb[20].mxu1 %v3239_v25  ;;  %v3528_v25 = vld [vmem:[#allocation2 + $0x39] sm:$0xff] }
 0x3b4   : >> { %6484 = vmatprep.mubr.f32.mxu1 %v3240_v62  ;;  %v10948_v62 = vld [vmem:[#allocation54_spill] sm:$0xff] }
 0x3b5   : >> { %v3559_v51 = vmul.f32 %v3527_v56, %v10948_v62 }
 0x3b7   : >> { %6485 = vmatmul.mubr.f32.gmra.mrb[22].mxu1 %v3241_v43  ;;  %v3560_v43 = vmul.f32 %v3528_v25, %v10949_v34  ;;  %v10957_v25 = vld [vmem:[#allocation63_spill] sm:$0xff] }
 0x3b8   : >> { %6487 = vmatprep.mubr.f32.mxu1 %v3242_v50  ;;  %v3529_v50 = vld [vmem:[#allocation2 + $0x41] sm:$0xff] }
 0x3bb   : >> { %6488 = vmatmul.mubr.f32.gmra.mrb[24].mxu1 %v3243_v48  ;;  %v3561_v48 = vmul.f32 %v3529_v50, %v10950_v36  ;;  %v3538_v50 = vld [vmem:[#allocation2 + $0x89] sm:$0xff] }
 0x3bc   : >> { %6490 = vmatprep.mubr.f32.mxu1 %v3244_v29  ;;  %v10951_v29 = vld [vmem:[#allocation57_spill] sm:$0xff] }
 0x3bd   : >> { %v3562_v31 = vmul.f32 %v3530_v20, %v10951_v29  ;;  %v10958_v20 = vld [vmem:[#allocation64_spill] sm:$0xff] }
 0x3bf   : >> { %6491 = vmatmul.mubr.f32.gmra.mrb[26].mxu1 %v3245_v27  ;;  %v3532_v27 = vld [vmem:[#allocation2 + $0x59] sm:$0xff] }
 0x3c0   : >> { %6493 = vmatprep.mubr.f32.mxu1 %v3246_v46  ;;  %v10952_v46 = vld [vmem:[#allocation58_spill] sm:$0xff] }
 0x3c1   : >> { %v3563_v22 = vmul.f32 %v3531_v37, %v10952_v46 }
 0x3c3   : >> { %6494 = vmatmul.mubr.f32.gmra.mrb[28].mxu1 %v3247_v21  ;;  %v3564_v21 = vmul.f32 %v3532_v27, %v10953_v42  ;;  %v3539_v27 = vld [vmem:[#allocation2 + $0x91] sm:$0xff] }
 0x3c4   : >> { %6496 = vmatprep.mubr.f32.mxu1 %v3248_v59  ;;  %v3533_v59 = vld [vmem:[#allocation2 + $0x61] sm:$0xff] }
 0x3c7   : >> { %6497 = vmatmul.mubr.f32.gmra.mrb[30].mxu1 %v3249_v40  ;;  %v3565_v40 = vmul.f32 %v3533_v59, %v10954_v54 }
 0x3c8   : >> { %6531 = vmatprep.mubr.f32.mxu1 %v3556_v55  ;;  %v10955_v55 = vld [vmem:[#allocation61_spill] sm:$0xff] }
 0x3c9   : >> { %v3566_v35 = vmul.f32 %v3534_v58, %v10955_v55  ;;  %v10961_v58 = vld [vmem:[#allocation67_spill] sm:$0xff] }
 0x3cb   : >> { %6532 = vmatmul.mubr.f32.vlgmr.msra.gmra.mrb[0].mxu1 %v3557_v33  ;;  %v3536_v33 = vld [vmem:[#allocation2 + $0x79] sm:$0xff] }
 0x3cc   : >> { %6534 = vmatprep.mubr.f32.mxu1 %v3558_v30  ;;  %v10956_v30 = vld [vmem:[#allocation62_spill] sm:$0xff] }
 0x3cd   : >> { %v3567_v56 = vmul.f32 %v3535_v28, %v10956_v30  ;;  %v3542_v28 = vld [vmem:[#allocation2 + $0xa9] sm:$0xff] }
 0x3cf   : >> { %6535 = vmatmul.mubr.f32.gmra.mrb[2].mxu1 %v3559_v51  ;;  %v3568_v51 = vmul.f32 %v3536_v33, %v10957_v25  ;;  %v10962_v33 = vld [vmem:[#allocation68_spill] sm:$0xff] }
 0x3d0   : >> { %6537 = vmatprep.mubr.f32.mxu1 %v3560_v43  ;;  %v3537_v43 = vld [vmem:[#allocation2 + $0x81] sm:$0xff] }
 0x3d3   : >> { %6538 = vmatmul.mubr.f32.gmra.mrb[4].mxu1 %v3561_v48  ;;  %v3569_v48 = vmul.f32 %v3537_v43, %v10958_v20  ;;  %v3544_v43 = vld [vmem:[#allocation2 + $0xb9] sm:$0xff] }
 0x3d4   : >> { %6540 = vmatprep.mubr.f32.mxu1 %v3562_v31  ;;  %v10959_v31 = vld [vmem:[#allocation65_spill] sm:$0xff] }
 0x3d5   : >> { %v3570_v37 = vmul.f32 %v3538_v50, %v10959_v31  ;;  %v10964_v50 = vld [vmem:[#allocation70_spill] sm:$0xff] }
 0x3d6   : >> { %v3545_v31 = vld [vmem:[#allocation2 + $0xc1] sm:$0xff] }
 0x3d7   : >> { %6541 = vmatmul.mubr.f32.gmra.mrb[6].mxu1 %v3563_v22  ;;  %v3540_v22 = vld [vmem:[#allocation2 + $0x99] sm:$0xff] }
 0x3d8   : >> { %6543 = vmatprep.mubr.f32.mxu1 %v3564_v21  ;;  %v10960_v21 = vld [vmem:[#allocation66_spill] sm:$0xff] }
 0x3d9   : >> { %v3571_v59 = vmul.f32 %v3539_v27, %v10960_v21  ;;  %v3546_v27 = vld [vmem:[#allocation2 + $0xc9] sm:$0xff]  ;;  %v3547_v21 = vld [vmem:[#allocation2 + $0xd1] sm:$0xff] }
 0x3db   : >> { %6544 = vmatmul.mubr.f32.gmra.mrb[8].mxu1 %v3565_v40  ;;  %v3572_v40 = vmul.f32 %v3540_v22, %v10961_v58  ;;  %v10966_v22 = vld [vmem:[#allocation72_spill] sm:$0xff]  ;;  %v10967_v58 = vld [vmem:[#allocation73_spill] sm:$0xff] }
 0x3dc   : >> { %6546 = vmatprep.mubr.f32.mxu1 %v3566_v35  ;;  %v3541_v35 = vld [vmem:[#allocation2 + $0xa1] sm:$0xff] }
 0x3df   : >> { %6547 = vmatmul.mubr.f32.gmra.mrb[10].mxu1 %v3567_v56  ;;  %v3573_v56 = vmul.f32 %v3541_v35, %v10962_v33  ;;  %v3548_v35 = vld [vmem:[#allocation2 + $0xd9] sm:$0xff]  ;;  %v3549_v33 = vld [vmem:[#allocation2 + $0xe1] sm:$0xff] }
 0x3e0   : >> { %6549 = vmatprep.mubr.f32.mxu1 %v3568_v51  ;;  %v3574_v51 = vmul.f32 %v3542_v28, %v10963_v38  ;;  %v10968_v28 = vld [vmem:[#allocation74_spill] sm:$0xff]  ;;  %v10969_v38 = vld [vmem:[#allocation75_spill] sm:$0xff] }
 0x3e3   : >> { %6550 = vmatmul.mubr.f32.gmra.mrb[12].mxu1 %v3569_v48  ;;  %v3575_v48 = vmul.f32 %v3543_v49, %v10964_v50  ;;  %v3550_v49 = vld [vmem:[#allocation2 + $0xe9] sm:$0xff]  ;;  %v3551_v50 = vld [vmem:[#allocation2 + $0xf1] sm:$0xff] }
 0x3e4   : >> { %6552 = vmatprep.mubr.f32.mxu1 %v3570_v37  ;;  %v3576_v37 = vmul.f32 %v3544_v43, %v10965_v45  ;;  %v10970_v43 = vld [vmem:[#allocation76_spill] sm:$0xff]  ;;  %v10971_v45 = vld [vmem:[#allocation77_spill] sm:$0xff] }
 0x3e7   : >> { %6553 = vmatmul.mubr.f32.gmra.mrb[14].mxu1 %v3571_v59  ;;  %v3577_v59 = vmul.f32 %v3545_v31, %v10966_v22  ;;  %v3552_v31 = vld [vmem:[#allocation2 + $0xf9] sm:$0xff]  ;;  %v3553_v22 = vld [vmem:[#allocation2 + $0x101] sm:$0xff] }
 0x3e8   : >> { %6555 = vmatprep.mubr.f32.mxu1 %v3572_v40  ;;  %v3578_v40 = vmul.f32 %v3546_v27, %v10967_v58  ;;  %v10972_v27 = vld [vmem:[#allocation78_spill] sm:$0xff]  ;;  %v10973_v58 = vld [vmem:[#allocation79_spill] sm:$0xff] }
 0x3eb   : >> { %6556 = vmatmul.mubr.f32.gmra.mrb[16].mxu1 %v3573_v56  ;;  %v3579_v56 = vmul.f32 %v3547_v21, %v10968_v28  ;;  %v3554_v21 = vld [vmem:[#allocation2 + $0x109] sm:$0xff]  ;;  %v3555_v28 = vld [vmem:[#allocation2 + $0x111] sm:$0xff] }
 0x3ec   : >> { %6558 = vmatprep.mubr.f32.mxu1 %v3574_v51  ;;  %v3580_v51 = vmul.f32 %v3548_v35, %v10969_v38  ;;  %v10974_v35 = vld [vmem:[#allocation80_spill] sm:$0xff]  ;;  %v10975_v38 = vld [vmem:[#allocation81_spill] sm:$0xff] }
 0x3ef   : >> { %6559 = vmatmul.mubr.f32.gmra.mrb[18].mxu1 %v3575_v48  ;;  %v3581_v48 = vmul.f32 %v3549_v33, %v10970_v43  ;;  %v10976_v33 = vld [vmem:[#allocation82_spill] sm:$0xff] }
 0x3f0   : >> { %6561 = vmatprep.mubr.f32.mxu1 %v3576_v37  ;;  %v3582_v37 = vmul.f32 %v3550_v49, %v10971_v45  ;;  %v3587_v49 = vmul.f32 %v3555_v28, %v10976_v33  ;;  %v4793_v28 = vld [vmem:[%s10655_s9 + $0x18] sm:$0xff] }
 0x3f3   : >> { %6562 = vmatmul.mubr.f32.gmra.mrb[20].mxu1 %v3577_v59  ;;  %v3583_v59 = vmul.f32 %v3551_v50, %v10972_v27  ;;  %v4790_v50 = vld [vmem:[%s10655_s9] sm:$0xff] }
 0x3f4   : >> { %6564 = vmatprep.mubr.f32.mxu1 %v3578_v40  ;;  %v3584_v40 = vmul.f32 %v3552_v31, %v10973_v58 }
 0x3f7   : >> { %6565 = vmatmul.mubr.f32.gmra.mrb[22].mxu1 %v3579_v56  ;;  %v3585_v56 = vmul.f32 %v3553_v22, %v10974_v35  ;;  %v4792_v22 = vld [vmem:[%s10655_s9 + $0x10] sm:$0xff] }
 0x3f8   : >> { %6567 = vmatprep.mubr.f32.mxu1 %v3580_v51  ;;  %v3586_v51 = vmul.f32 %v3554_v21, %v10975_v38  ;;  %v4795_v21 = vld [vmem:[%s10655_s9 + $0x28] sm:$0xff] }
 0x3fb   : >> { %6568 = vmatmul.mubr.f32.gmra.mrb[24].mxu1 %v3581_v48  ;;  %v7654_v48 = vmov 0.0|0.0  }
 0x3fc   : >> { %6570 = vmatprep.mubr.f32.mxu1 %v3582_v37  ;;  %6939 = vmatprep.subr.bf16.mxu0 %v7654_v48  ;;  %v4791_v37 = vld [vmem:[%s10655_s9 + $0x8] sm:$0xff] }
 0x3fd   : >> { %v6940_v31 = vpack.c.bf16 %v4791_v37, %v4790_v50  ;;  %v4798_v50 = vld [vmem:[%s10655_s9 + $0x40] sm:$0xff] }
 0x3ff   : >> { %6571 = vmatmul.mubr.f32.gmra.mrb[26].mxu1 %v3583_v59  ;;  %6941 = vmatpush3.bf16.msra.mxu0 %v6940_v31  ;;  %v6943_v59 = vpack.c.bf16 %v4793_v28, %v4792_v22  ;;  %v4799_v31 = vld [vmem:[%s10655_s9 + $0x48] sm:$0xff]  ;;  %v7656_v22 = vmov 0.0  }
 0x400   : >> { %6573 = vmatprep.mubr.f32.mxu1 %v3584_v40  ;;  %6942 = vmatprep.subr.bf16.mxu0 %v7654_v48  ;;  %v4794_v40 = vld [vmem:[%s10655_s9 + $0x20] sm:$0xff]  ;;  %v6952_v28 = vpack.c.bf16 %v4799_v31, %v4798_v50  ;;  %v4804_v50 = vld [vmem:[%s10655_s9 + $0x70] sm:$0xff] }
 0x401   : >> { %6611 = vmatprep.mubr.msk.f32.mxu0 %vm7655_vm0, %v7656_v22  ;;  %6614 = vmatprep.subr.mxu1 %v7656_v22 }
 0x403   : >> { %6574 = vmatmul.mubr.f32.gmra.mrb[28].mxu1 %v3585_v56  ;;  %6944 = vmatpush3.bf16.msra.mxu0 %v6943_v59  ;;  %v6946_v56 = vpack.c.bf16 %v4795_v21, %v4794_v40  ;;  %v4800_v59 = vld [vmem:[%s10655_s9 + $0x50] sm:$0xff]  ;;  %v4801_v40 = vld [vmem:[%s10655_s9 + $0x58] sm:$0xff] }
 0x404   : >> { %6576 = vmatprep.mubr.f32.mxu1 %v3586_v51  ;;  %6945 = vmatprep.subr.bf16.mxu0 %v7654_v48  ;;  %v4796_v51 = vld [vmem:[%s10655_s9 + $0x30] sm:$0xff]  ;;  %v6955_v21 = vpack.c.bf16 %v4801_v40, %v4800_v59  ;;  %v8761_v59 = vld [vmem:[%s10653_s7 + $0x1] ss:$0 sm:$0xff]  ;;  %v8766_v40 = vld [vmem:[%s10653_s7 + $0x4] ss:$0 sm:$0xff] }
 0x407   : >> { %6577 = vmatmul.mubr.f32.gmra.mrb[30].mxu1 %v3587_v49  ;;  %6947 = vmatpush3.bf16.msra.mxu0 %v6946_v56  ;;  %v4797_v49 = vld [vmem:[%s10655_s9 + $0x38] sm:$0xff]  ;;  %v4802_v56 = vld [vmem:[%s10655_s9 + $0x60] sm:$0xff] }
 0x408   : >> { %6948 = vmatprep.subr.bf16.mxu0 %v7654_v48  ;;  %v6949_v37 = vpack.c.bf16 %v4797_v49, %v4796_v51  ;;  %6616 = vmatprep.mubr.msk.f32.mxu1 %vm7655_vm0, %v7656_v22  ;;  %v4803_v51 = vld [vmem:[%s10655_s9 + $0x68] sm:$0xff]  ;;  %v8756_v22 = vld [vmem:[%s10652_s6] ss:$0 sm:$0xff] }
 0x409   : >> { %v6958_v49 = vpack.c.bf16 %v4803_v51, %v4802_v56 }
 0x40b   : >> { %6950 = vmatpush3.bf16.msra.mxu0 %v6949_v37  ;;  %v4805_v37 = vld [vmem:[%s10655_s9 + $0x78] sm:$0xff] }
 0x40c   : >> { %6951 = vmatprep.subr.bf16.mxu0 %v7654_v48  ;;  %v6961_v31 = vpack.c.bf16 %v4805_v37, %v4804_v50  ;;  %v10977_v37 = vld [vmem:[#allocation83_spill] sm:$0xff] }
 0x40f   : >> { %6953 = vmatpush3.bf16.msra.mxu0 %v6952_v28 }
 0x410   : >> { %6954 = vmatprep.subr.bf16.mxu0 %v7654_v48 }
 0x413   : >> { %6956 = vmatpush3.bf16.msra.mxu0 %v6955_v21  ;;  %v3895_v21 = vld [vmem:[#allocation2 + $0x10] sm:$0xff] }
 0x414   : >> { %6957 = vmatprep.subr.bf16.mxu0 %v7654_v48 }
 0x417   : >> { %6959 = vmatpush3.bf16.msra.mxu0 %v6958_v49  ;;  %v3939_v49 = vmul.f32 %v8761_v59, %v3895_v21 }
 0x418   : >> { %6960 = vmatprep.subr.bf16.mxu0 %v7654_v48 }
 0x41b   : >> { %6962 = vmatpush3.bf16.msra.mxu0 %v6961_v31  ;;  %v3938_v31 = vmul.f32 %v8761_v59, %v10977_v37 }
 0x49e   : >> { %v6533_v28 = vpop.f32.mrb[0].mxu1 }
 0x49f   : >> { %v8769_v48 = vadd.f32 %v6533_v28, %v8756_v22  ;;  %v3671_v56 = vpop.f32.mrb[1].mxu1 }
 0x4a0   : >> { %v8772_v51 = vadd.f32 %v8756_v22, %v3671_v56  ;;  %v8786_v56 = vld [vmem:[%s10653_s7 + $0x7] ss:$0 sm:$0xff] }
 0x4a1   : >> { %3863 = vst [vmem:[#allocation2 + $0x20] sm:$0xff] %v8769_v48  ;;  %v3979_v50 = vmul.f32 %v8769_v48, %v8766_v40  ;;  %v3941_v37 = vmul.f32 %v8769_v48, %v8761_v59  ;;  %v8960_v7 = vmul.f32 %v8786_v56, %v8638_v41  ;;  %v8980_v41 = vmul.f32 %v8968_v5, %v4400_v15 }
 0x4a2   : >> { %3862 = vst [vmem:[#allocation2 + $0x18] sm:$0xff] %v8772_v51  ;;  %v3978_v28 = vmul.f32 %v8772_v51, %v8766_v40  ;;  %v6536_v33 = vpop.f32.mrb[2].mxu1 }
 0x4a3   : >> { %v8789_v38 = vadd.f32 %v6536_v33, %v8756_v22  ;;  %v3681_v21 = vpop.f32.mrb[3].mxu1  ;;  %v4011_v27 = vadd.f32 %v3979_v50, %v3939_v49  ;;  %v3940_v33 = vmul.f32 %v8772_v51, %v8761_v59  ;;  %10984 = vst [vmem:[#allocation88_spill] sm:$0xff] %v8960_v7  ;;  %10989 = vst [vmem:[#allocation93_spill] sm:$0xff] %v8980_v41 }
 0x4a4   : >> { %v8792_v35 = vadd.f32 %v8756_v22, %v3681_v21  ;;  %v4010_v43 = vadd.f32 %v3978_v28, %v3938_v31 }
 0x4a5   : >> { %3865 = vst [vmem:[#allocation2 + $0x30] sm:$0xff] %v8789_v38  ;;  %v3981_v58 = vmul.f32 %v8789_v38, %v8766_v40  ;;  %v4051_v45 = vmul.f32 %v8789_v38, %v8786_v56  ;;  %v3943_v3 = vmul.f32 %v8789_v38, %v8761_v59 }
 0x4a6   : >> { %3864 = vst [vmem:[#allocation2 + $0x28] sm:$0xff] %v8792_v35  ;;  %v6539_v21 = vpop.f32.mrb[4].mxu1  ;;  %v3980_v20 = vmul.f32 %v8792_v35, %v8766_v40  ;;  %v4050_v25 = vmul.f32 %v8792_v35, %v8786_v56  ;;  %v3942_v15 = vmul.f32 %v8792_v35, %v8761_v59  ;;  %v8998_v41 = vadd.f32 %v8792_v35, %v5268_v0 }
 0x4a7   : >> { %v8809_v30 = vadd.f32 %v6539_v21, %v8756_v22  ;;  %v3691_v49 = vpop.f32.mrb[5].mxu1  ;;  %v8811_v50 = vadd.f32 %v3981_v58, %v3941_v37  ;;  %v8813_v55 = vadd.f32 %v4051_v45, %v4011_v27 }
 0x4a8   : >> { %v8816_v54 = vadd.f32 %v8756_v22, %v3691_v49  ;;  %v8818_v31 = vadd.f32 %v3980_v20, %v3940_v33  ;;  %v8820_v28 = vadd.f32 %v4050_v25, %v4010_v43  ;;  %10992 = vst [vmem:[#allocation96_spill] sm:$0xff] %v8998_v41 }
 0x4a9   : >> { %10978 = vst [vmem:[#allocation83_spill] sm:$0xff] %v8813_v55  ;;  %3867 = vst [vmem:[#allocation2 + $0x40] sm:$0xff] %v8809_v30  ;;  %v4117_v9 = vld [vmem:[#allocation2 + $0x1f] sm:$0xff]  ;;  %v4366_v7 = vld [vmem:[#allocation2 + $0x11] sm:$0xff] }
 0x4aa   : >> { %10979 = vst [vmem:[#allocation84_spill] sm:$0xff] %v8820_v28  ;;  %3866 = vst [vmem:[#allocation2 + $0x38] sm:$0xff] %v8816_v54  ;;  %v6542_v42 = vpop.f32.mrb[6].mxu1  ;;  %v4367_v8 = vld [vmem:[#allocation2 + $0x19] sm:$0xff]  ;;  %v3982_v35 = vmul.f32 %v8816_v54, %v8766_v40 }
 0x4ab   : >> { %v8825_v21 = vadd.f32 %v6542_v42, %v8756_v22  ;;  %v3701_v46 = vpop.f32.mrb[7].mxu1 }
 0x4ac   : >> { %v8828_v58 = vadd.f32 %v8756_v22, %v3701_v46 }
 0x4ad   : >> { %3869 = vst [vmem:[#allocation2 + $0x50] sm:$0xff] %v8825_v21 }
 0x4ae   : >> { %3868 = vst [vmem:[#allocation2 + $0x48] sm:$0xff] %v8828_v58  ;;  %v6545_v45 = vpop.f32.mrb[8].mxu1  ;;  %v3984_v41 = vmul.f32 %v8828_v58, %v8766_v40 }
 0x4af   : >> { %v8833_v25 = vadd.f32 %v6545_v45, %v8756_v22  ;;  %v3711_v20 = vpop.f32.mrb[9].mxu1 }
 0x4b0   : >> { %v8836_v43 = vadd.f32 %v8756_v22, %v3711_v20 }
 0x4b1   : >> { %3871 = vst [vmem:[#allocation2 + $0x60] sm:$0xff] %v8833_v25 }
 0x4b2   : >> { %3870 = vst [vmem:[#allocation2 + $0x58] sm:$0xff] %v8836_v43  ;;  %v6548_v42 = vpop.f32.mrb[10].mxu1  ;;  %v3948_v2 = vmul.f32 %v8836_v43, %v8761_v59 }
 0x4b3   : >> { %v8841_v46 = vadd.f32 %v6548_v42, %v8756_v22  ;;  %v3721_v27 = vpop.f32.mrb[11].mxu1 }
 0x4b4   : >> { %v8844_v37 = vadd.f32 %v8756_v22, %v3721_v27 }
 0x4b5   : >> { %3873 = vst [vmem:[#allocation2 + $0x70] sm:$0xff] %v8841_v46 }
 0x4b6   : >> { %3872 = vst [vmem:[#allocation2 + $0x68] sm:$0xff] %v8844_v37  ;;  %v6551_v33 = vpop.f32.mrb[12].mxu1 }
 0x4b7   : >> { %v8849_v49 = vadd.f32 %v6551_v33, %v8756_v22  ;;  %v3731_v45 = vpop.f32.mrb[13].mxu1 }
 0x4b8   : >> { %v8852_v20 = vadd.f32 %v8756_v22, %v3731_v45 }
 0x4b9   : >> { %3875 = vst [vmem:[#allocation2 + $0x80] sm:$0xff] %v8849_v49 }
 0x4ba   : >> { %3874 = vst [vmem:[#allocation2 + $0x78] sm:$0xff] %v8852_v20  ;;  %v6554_v42 = vpop.f32.mrb[14].mxu1 }
 0x4bb   : >> { %v8857_v27 = vadd.f32 %v6554_v42, %v8756_v22  ;;  %v3741_v29 = vpop.f32.mrb[15].mxu1 }
 0x4bc   : >> { %v8860_v36 = vadd.f32 %v8756_v22, %v3741_v29 }
 0x4bd   : >> { %3877 = vst [vmem:[#allocation2 + $0x90] sm:$0xff] %v8857_v27  ;;  %v9152_v1 = vld [vmem:[#allocation2 + $0x6f] sm:$0xff] }
 0x4be   : >> { %3876 = vst [vmem:[#allocation2 + $0x88] sm:$0xff] %v8860_v36  ;;  %v6557_v33 = vpop.f32.mrb[16].mxu1  ;;  %11016 = vst [vmem:[#allocation120_spill] sm:$0xff] %v9152_v1 }
 0x4bf   : >> { %v8865_v45 = vadd.f32 %v6557_v33, %v8756_v22  ;;  %v3751_v34 = vpop.f32.mrb[17].mxu1 }
 0x4c0   : >> { %v8868_v62 = vadd.f32 %v8756_v22, %v3751_v34 }
 0x4c1   : >> { %3879 = vst [vmem:[#allocation2 + $0xa0] sm:$0xff] %v8865_v45 }
 0x4c2   : >> { %3878 = vst [vmem:[#allocation2 + $0x98] sm:$0xff] %v8868_v62  ;;  %v6560_v42 = vpop.f32.mrb[18].mxu1 }
 0x4c3   : >> { %v8873_v29 = vadd.f32 %v6560_v42, %v8756_v22  ;;  %v3761_v53 = vpop.f32.mrb[19].mxu1 }
 0x4c4   : >> { %v8876_v52 = vadd.f32 %v8756_v22, %v3761_v53 }
 0x4c5   : >> { %3881 = vst [vmem:[#allocation2 + $0xb0] sm:$0xff] %v8873_v29 }
 0x4c6   : >> { %3880 = vst [vmem:[#allocation2 + $0xa8] sm:$0xff] %v8876_v52  ;;  %v6563_v33 = vpop.f32.mrb[20].mxu1 }
 0x4c7   : >> { %v8881_v34 = vadd.f32 %v6563_v33, %v8756_v22  ;;  %v3771_v63 = vpop.f32.mrb[21].mxu1 }
 0x4c8   : >> { %v8884_v55 = vadd.f32 %v8756_v22, %v3771_v63 }
 0x4c9   : >> { %3883 = vst [vmem:[#allocation2 + $0xc0] sm:$0xff] %v8881_v34 }
 0x4ca   : >> { %3882 = vst [vmem:[#allocation2 + $0xb8] sm:$0xff] %v8884_v55  ;;  %v6566_v42 = vpop.f32.mrb[22].mxu1 }
 0x4cb   : >> { %v8889_v53 = vadd.f32 %v6566_v42, %v8756_v22  ;;  %v3781_v28 = vpop.f32.mrb[23].mxu1 }
 0x4cc   : >> { %v8892_v44 = vadd.f32 %v8756_v22, %v3781_v28 }
 0x4cd   : >> { %3885 = vst [vmem:[#allocation2 + $0xd0] sm:$0xff] %v8889_v53 }
 0x4ce   : >> { %3884 = vst [vmem:[#allocation2 + $0xc8] sm:$0xff] %v8892_v44  ;;  %v6569_v33 = vpop.f32.mrb[24].mxu1 }
 0x4cf   : >> { %v8897_v63 = vadd.f32 %v6569_v33, %v8756_v22  ;;  %v3791_v23 = vpop.f32.mrb[25].mxu1  ;;  %v4114_v33 = vld [vmem:[#allocation2 + $0x7] sm:$0xff] }
 0x4d0   : >> { %v8900_v32 = vadd.f32 %v8756_v22, %v3791_v23  ;;  %v4157_v14 = vmul.f32 %v8915_v47, %v4114_v33 }
 0x4d1   : >> { %3887 = vst [vmem:[#allocation2 + $0xe0] sm:$0xff] %v8897_v63 }
 0x4d2   : >> { %3886 = vst [vmem:[#allocation2 + $0xd8] sm:$0xff] %v8900_v32  ;;  %v6572_v42 = vpop.f32.mrb[26].mxu1 }
 0x4d3   : >> { %v8905_v28 = vadd.f32 %v6572_v42, %v8756_v22  ;;  %v3801_v26 = vpop.f32.mrb[27].mxu1  ;;  %v8920_v42 = vld [vmem:[%s10653_s7 + $0x2] ss:$0 sm:$0xff] }
 0x4d4   : >> { %v8908_v39 = vadd.f32 %v8756_v22, %v3801_v26  ;;  %10980 = vst [vmem:[#allocation85_spill] sm:$0xff] %v8920_v42  ;;  %v4409_v12 = vmul.f32 %v8920_v42, %v4365_v61  ;;  %v8956_v61 = vmul.f32 %v8786_v56, %v8634_v60  ;;  %v8977_v60 = vmul.f32 %v8968_v5, %v4399_v16 }
 0x4d5   : >> { %3889 = vst [vmem:[#allocation2 + $0xf0] sm:$0xff] %v8905_v28  ;;  %v4198_v16 = vmul.f32 %v8934_v17, %v4117_v9  ;;  %v4053_v5 = vmul.f32 %v8809_v30, %v8786_v56 }
 0x4d6   : >> { %3888 = vst [vmem:[#allocation2 + $0xe8] sm:$0xff] %v8908_v39  ;;  %v6575_v23 = vpop.f32.mrb[28].mxu1  ;;  %10988 = vst [vmem:[#allocation92_spill] sm:$0xff] %v8977_v60 }
 0x4d7   : >> { %v8923_v26 = vadd.f32 %v6575_v23, %v8756_v22  ;;  %v3811_v57 = vpop.f32.mrb[29].mxu1  ;;  %v4116_v23 = vld [vmem:[#allocation2 + $0x17] sm:$0xff] }
 0x4d8   : >> { %v8929_v19 = vadd.f32 %v8756_v22, %v3811_v57  ;;  %v8943_v57 = vld [vmem:[%s10653_s7 + $0x5] ss:$0 sm:$0xff]  ;;  %v4197_v18 = vmul.f32 %v8934_v17, %v4116_v23  ;;  %v9001_v60 = vmul.f32 %v8915_v47, %v4116_v23 }
 0x4d9   : >> { %3891 = vst [vmem:[#allocation2 + $0x100] sm:$0xff] %v8923_v26  ;;  %10982 = vst [vmem:[#allocation86_spill] sm:$0xff] %v8943_v57 }
 0x4da   : >> { %3890 = vst [vmem:[#allocation2 + $0xf8] sm:$0xff] %v8929_v19  ;;  %v6578_v11 = vpop.f32.mrb[30].mxu1  ;;  %v9020_v23 = vadd.f32 %v4197_v18, %v4157_v14  ;;  %v4054_v14 = vmul.f32 %v8828_v58, %v8786_v56  ;;  %v3946_v18 = vmul.f32 %v8828_v58, %v8761_v59  ;;  %v4056_v58 = vmul.f32 %v8836_v43, %v8786_v56 }
 0x4db   : >> { %v8952_v33 = vadd.f32 %v6578_v11, %v8756_v22  ;;  %v3821_v24 = vpop.f32.mrb[31].mxu1  ;;  %v8971_v11 = vadd.f32 %v8772_v51, %v5268_v0  ;;  %v8987_v51 = vadd.f32 %v8769_v48, %v5268_v0  ;;  %v3945_v48 = vmul.f32 %v8809_v30, %v8761_v59 }
 0x4dc   : >> { %v8974_v4 = vadd.f32 %v8756_v22, %v3821_v24  ;;  %v8990_v22 = vadd.f32 %v8789_v38, %v5268_v0  ;;  %v4449_v24 = vmul.f32 %v8943_v57, %v4367_v8  ;;  %v3983_v38 = vmul.f32 %v8809_v30, %v8766_v40  ;;  %10995 = vst [vmem:[#allocation99_spill] sm:$0xff] %v9020_v23 }
 0x4dd   : >> { %10987 = vst [vmem:[#allocation91_spill] sm:$0xff] %v8971_v11  ;;  %3893 = vst [vmem:[#allocation2 + $0x110] sm:$0xff] %v8952_v33  ;;  %v9016_v0 = vmul.f32 %v8920_v42, %v4367_v8  ;;  %v3985_v30 = vmul.f32 %v8825_v21, %v8766_v40  ;;  %v9028_v11 = vadd.f32 %v4198_v16, %v4158_v13 }
 0x4de   : >> { %10990 = vst [vmem:[#allocation94_spill] sm:$0xff] %v8987_v51  ;;  %10991 = vst [vmem:[#allocation95_spill] sm:$0xff] %v8990_v22  ;;  %v9010_v22 = vmul.f32 %v8915_v47, %v4117_v9  ;;  %v9013_v51 = vmul.f32 %v8920_v42, %v4366_v7  ;;  %v4052_v9 = vmul.f32 %v8816_v54, %v8786_v56 }
 0x4df   : >> { %3892 = vst [vmem:[#allocation2 + $0x108] sm:$0xff] %v8974_v4  ;;  %10994 = vst [vmem:[#allocation98_spill] sm:$0xff] %v9016_v0  ;;  %v9030_v7 = vadd.f32 %v4449_v24, %v4409_v12  ;;  %v3944_v8 = vmul.f32 %v8816_v54, %v8761_v59  ;;  %v3947_v0 = vmul.f32 %v8825_v21, %v8761_v59 }
 0x4e0   : >> { %10993 = vst [vmem:[#allocation97_spill] sm:$0xff] %v9013_v51  ;;  %10996 = vst [vmem:[#allocation100_spill] sm:$0xff] %v9028_v11  ;;  %v3987_v51 = vmul.f32 %v8833_v25, %v8766_v40  ;;  %v4055_v13 = vmul.f32 %v8825_v21, %v8786_v56  ;;  %v3986_v12 = vmul.f32 %v8836_v43, %v8766_v40 }
 0x4e1   : >> { %10997 = vst [vmem:[#allocation101_spill] sm:$0xff] %v9030_v7  ;;  %v4014_v16 = vadd.f32 %v3982_v35, %v3942_v15  ;;  %v4015_v54 = vadd.f32 %v3983_v38, %v3943_v3  ;;  %v4057_v24 = vmul.f32 %v8833_v25, %v8786_v56  ;;  %v4016_v7 = vadd.f32 %v3984_v41, %v3944_v8  ;;  %v9062_v38 = vld [vmem:[#allocation2 + $0x27] sm:$0xff]  ;;  %v9064_v41 = vld [vmem:[#allocation2 + $0x2f] sm:$0xff]  ;;  %v9080_v8 = vld [vmem:[#allocation2 + $0x3f] sm:$0xff] }
 0x4e2   : >> { %v4017_v57 = vadd.f32 %v3985_v30, %v3945_v48  ;;  %v9051_v42 = vadd.f32 %v4052_v9, %v8818_v31  ;;  %v3949_v21 = vmul.f32 %v8833_v25, %v8761_v59  ;;  %v9058_v15 = vadd.f32 %v4053_v5, %v8811_v50  ;;  %11001 = vst [vmem:[#allocation105_spill] sm:$0xff] %v9062_v38  ;;  %v9072_v30 = vld [vmem:[#allocation2 + $0x37] sm:$0xff] }
 0x4e3   : >> { %v9060_v3 = vadd.f32 %v4054_v14, %v4014_v16  ;;  %11002 = vst [vmem:[#allocation106_spill] sm:$0xff] %v9064_v41  ;;  %v3989_v48 = vmul.f32 %v8841_v46, %v8766_v40  ;;  %v4019_v31 = vadd.f32 %v3987_v51, %v3947_v0  ;;  %v4059_v35 = vmul.f32 %v8841_v46, %v8786_v56  ;;  %v9086_v14 = vld [vmem:[#allocation2 + $0x47] sm:$0xff]  ;;  %v9104_v16 = vld [vmem:[#allocation2 + $0x57] sm:$0xff] }
 0x4e4   : >> { %10998 = vst [vmem:[#allocation102_spill] sm:$0xff] %v9051_v42  ;;  %10999 = vst [vmem:[#allocation103_spill] sm:$0xff] %v9058_v15  ;;  %v9070_v43 = vadd.f32 %v4055_v13, %v4015_v54  ;;  %v3988_v5 = vmul.f32 %v8844_v37, %v8766_v40  ;;  %v4018_v50 = vadd.f32 %v3986_v12, %v3946_v18  ;;  %v9122_v15 = vld [vmem:[#allocation2 + $0x5f] sm:$0xff] }
 0x4e5   : >> { %11000 = vst [vmem:[#allocation104_spill] sm:$0xff] %v9060_v3  ;;  %11004 = vst [vmem:[#allocation108_spill] sm:$0xff] %v9072_v30  ;;  %v4058_v25 = vmul.f32 %v8844_v37, %v8786_v56  ;;  %v9078_v9 = vadd.f32 %v4057_v24, %v4017_v57  ;;  %v3951_v51 = vmul.f32 %v8841_v46, %v8761_v59 }
 0x4e6   : >> { %11003 = vst [vmem:[#allocation107_spill] sm:$0xff] %v9070_v43  ;;  %11006 = vst [vmem:[#allocation110_spill] sm:$0xff] %v9080_v8  ;;  %v9084_v0 = vadd.f32 %v4056_v58, %v4016_v7  ;;  %v9090_v13 = vmul.f32 %v8915_v47, %v9062_v38  ;;  %v9094_v18 = vmul.f32 %v8915_v47, %v9064_v41  ;;  %v9102_v7 = vld [vmem:[#allocation2 + $0x4f] sm:$0xff] }
 0x4e7   : >> { %11005 = vst [vmem:[#allocation109_spill] sm:$0xff] %v9078_v9  ;;  %11008 = vst [vmem:[#allocation112_spill] sm:$0xff] %v9086_v14  ;;  %v3950_v57 = vmul.f32 %v8844_v37, %v8761_v59  ;;  %v3991_v12 = vmul.f32 %v8849_v49, %v8766_v40  ;;  %v4061_v46 = vmul.f32 %v8849_v49, %v8786_v56 }
 0x4e8   : >> { %11007 = vst [vmem:[#allocation111_spill] sm:$0xff] %v9084_v0  ;;  %11009 = vst [vmem:[#allocation113_spill] sm:$0xff] %v9102_v7  ;;  %v9108_v54 = vmul.f32 %v8915_v47, %v9072_v30  ;;  %v3990_v24 = vmul.f32 %v8852_v20, %v8766_v40  ;;  %v4021_v58 = vadd.f32 %v3989_v48, %v3949_v21 }
 0x4e9   : >> { %11010 = vst [vmem:[#allocation114_spill] sm:$0xff] %v9104_v16  ;;  %v9112_v9 = vadd.f32 %v4059_v35, %v4019_v31  ;;  %v9116_v37 = vmul.f32 %v8915_v47, %v9080_v8  ;;  %v4020_v0 = vadd.f32 %v3988_v5, %v3948_v2  ;;  %v4060_v43 = vmul.f32 %v8852_v20, %v8786_v56 }
 0x4ea   : >> { %v9120_v3 = vadd.f32 %v4058_v25, %v4018_v50  ;;  %11013 = vst [vmem:[#allocation117_spill] sm:$0xff] %v9122_v15  ;;  %v9126_v42 = vmul.f32 %v8915_v47, %v9086_v14  ;;  %v3952_v21 = vmul.f32 %v8852_v20, %v8761_v59  ;;  %v3953_v48 = vmul.f32 %v8849_v49, %v8761_v59  ;;  %v9146_v20 = vld [vmem:[#allocation2 + $0x67] sm:$0xff] }
 0x4eb   : >> { %11011 = vst [vmem:[#allocation115_spill] sm:$0xff] %v9112_v9  ;;  %v9134_v2 = vmul.f32 %v8915_v47, %v9102_v7  ;;  %v9138_v31 = vmul.f32 %v8915_v47, %v9104_v16  ;;  %v3993_v35 = vmul.f32 %v8857_v27, %v8766_v40  ;;  %v4023_v5 = vadd.f32 %v3991_v12, %v3951_v51 }
 0x4ec   : >> { %11012 = vst [vmem:[#allocation116_spill] sm:$0xff] %v9120_v3  ;;  %v4063_v50 = vmul.f32 %v8857_v27, %v8786_v56  ;;  %v9144_v25 = vadd.f32 %v4061_v46, %v4021_v58  ;;  %11015 = vst [vmem:[#allocation119_spill] sm:$0xff] %v9146_v20  ;;  %v3992_v49 = vmul.f32 %v8860_v36, %v8766_v40 }
 0x4ed   : >> { %v4022_v9 = vadd.f32 %v3990_v24, %v3950_v57  ;;  %v4062_v3 = vmul.f32 %v8860_v36, %v8786_v56  ;;  %v9156_v6 = vmul.f32 %v8915_v47, %v9122_v15  ;;  %v3955_v51 = vmul.f32 %v8857_v27, %v8761_v59  ;;  %v9176_v27 = vld [vmem:[#allocation2 + $0x77] sm:$0xff] }
 0x4ee   : >> { %11014 = vst [vmem:[#allocation118_spill] sm:$0xff] %v9144_v25  ;;  %v9160_v12 = vadd.f32 %v4060_v43, %v4020_v0  ;;  %v9164_v46 = vmul.f32 %v8934_v17, %v9062_v38  ;;  %v9168_v57 = vmul.f32 %v8934_v17, %v9064_v41  ;;  %v3954_v24 = vmul.f32 %v8860_v36, %v8761_v59  ;;  %v9194_v38 = vld [vmem:[#allocation2 + $0x7f] sm:$0xff] }
 0x4ef   : >> { %v3995_v58 = vmul.f32 %v8865_v45, %v8766_v40  ;;  %v4065_v25 = vmul.f32 %v8865_v45, %v8786_v56  ;;  %11018 = vst [vmem:[#allocation122_spill] sm:$0xff] %v9176_v27  ;;  %v9180_v43 = vmul.f32 %v8915_v47, %v9146_v20  ;;  %v3994_v0 = vmul.f32 %v8868_v62, %v8766_v40 }
 0x4f0   : >> { %11017 = vst [vmem:[#allocation121_spill] sm:$0xff] %v9160_v12  ;;  %v4025_v12 = vadd.f32 %v3993_v35, %v3953_v48  ;;  %v9184_v11 = vadd.f32 %v4063_v50, %v4023_v5  ;;  %v9188_v36 = vmul.f32 %v8915_v47, %v9152_v1  ;;  %v4024_v23 = vadd.f32 %v3992_v49, %v3952_v21 }
 0x4f1   : >> { %11019 = vst [vmem:[#allocation123_spill] sm:$0xff] %v9180_v43  ;;  %v4064_v41 = vmul.f32 %v8868_v62, %v8786_v56  ;;  %v9192_v10 = vadd.f32 %v4062_v3, %v4022_v9  ;;  %11023 = vst [vmem:[#allocation127_spill] sm:$0xff] %v9194_v38  ;;  %v9198_v43 = vmul.f32 %v8934_v17, %v9072_v30 }
 0x4f2   : >> { %11020 = vst [vmem:[#allocation124_spill] sm:$0xff] %v9184_v11  ;;  %11021 = vst [vmem:[#allocation125_spill] sm:$0xff] %v9188_v36  ;;  %v3956_v48 = vmul.f32 %v8868_v62, %v8761_v59  ;;  %v3957_v35 = vmul.f32 %v8865_v45, %v8761_v59  ;;  %v9206_v21 = vmul.f32 %v8915_v47, %v9176_v27  ;;  %v9218_v62 = vld [vmem:[#allocation2 + $0x87] sm:$0xff]  ;;  %v9266_v36 = vld [vmem:[#allocation2 + $0x9f] sm:$0xff] }
 0x4f3   : >> { %11022 = vst [vmem:[#allocation126_spill] sm:$0xff] %v9192_v10  ;;  %v9210_v3 = vmul.f32 %v8934_v17, %v9080_v8  ;;  %v3997_v9 = vmul.f32 %v8873_v29, %v8766_v40  ;;  %v4027_v5 = vadd.f32 %v3995_v58, %v3955_v51  ;;  %v4067_v50 = vmul.f32 %v8873_v29, %v8786_v56  ;;  %v9224_v8 = vld [vmem:[#allocation2 + $0x8f] sm:$0xff] }
 0x4f4   : >> { %11024 = vst [vmem:[#allocation128_spill] sm:$0xff] %v9206_v21  ;;  %v9216_v49 = vadd.f32 %v4065_v25, %v4025_v12  ;;  %11026 = vst [vmem:[#allocation130_spill] sm:$0xff] %v9218_v62  ;;  %v3996_v45 = vmul.f32 %v8876_v52, %v8766_v40  ;;  %v4026_v11 = vadd.f32 %v3994_v0, %v3954_v24 }
 0x4f5   : >> { %v4066_v10 = vmul.f32 %v8876_v52, %v8786_v56  ;;  %11027 = vst [vmem:[#allocation131_spill] sm:$0xff] %v9224_v8  ;;  %v9228_v30 = vmul.f32 %v8915_v47, %v9194_v38  ;;  %v3959_v51 = vmul.f32 %v8873_v29, %v8761_v59  ;;  %v9232_v25 = vadd.f32 %v4064_v41, %v4024_v23  ;;  %v9248_v29 = vld [vmem:[#allocation2 + $0x97] sm:$0xff] }
 0x4f6   : >> { %11025 = vst [vmem:[#allocation129_spill] sm:$0xff] %v9216_v49  ;;  %v9236_v12 = vmul.f32 %v8934_v17, %v9086_v14  ;;  %v9240_v24 = vmul.f32 %v8934_v17, %v9102_v7  ;;  %v3958_v58 = vmul.f32 %v8876_v52, %v8761_v59  ;;  %v3999_v0 = vmul.f32 %v8881_v34, %v8766_v40 }
 0x4f7   : >> { %11028 = vst [vmem:[#allocation132_spill] sm:$0xff] %v9228_v30  ;;  %11029 = vst [vmem:[#allocation133_spill] sm:$0xff] %v9232_v25  ;;  %v4069_v49 = vmul.f32 %v8881_v34, %v8786_v56  ;;  %v9252_v23 = vmul.f32 %v8915_v47, %v9218_v62  ;;  %v3998_v41 = vmul.f32 %v8884_v55, %v8766_v40 }
 0x4f8   : >> { %11030 = vst [vmem:[#allocation134_spill] sm:$0xff] %v9248_v29  ;;  %v4029_v25 = vadd.f32 %v3997_v9, %v3957_v35  ;;  %v9256_v7 = vadd.f32 %v4067_v50, %v4027_v5  ;;  %v9260_v52 = vmul.f32 %v8915_v47, %v9224_v8  ;;  %v4028_v14 = vadd.f32 %v3996_v45, %v3956_v48 }
 0x4f9   : >> { %11031 = vst [vmem:[#allocation135_spill] sm:$0xff] %v9252_v23  ;;  %v4068_v30 = vmul.f32 %v8884_v55, %v8786_v56  ;;  %v9264_v21 = vadd.f32 %v4066_v10, %v4026_v11  ;;  %11035 = vst [vmem:[#allocation139_spill] sm:$0xff] %v9266_v36  ;;  %v9270_v23 = vmul.f32 %v8934_v17, %v9104_v16 }
 0x4fa   : >> { %11032 = vst [vmem:[#allocation136_spill] sm:$0xff] %v9256_v7  ;;  %11033 = vst [vmem:[#allocation137_spill] sm:$0xff] %v9260_v52  ;;  %v3960_v35 = vmul.f32 %v8884_v55, %v8761_v59  ;;  %v3961_v9 = vmul.f32 %v8881_v34, %v8761_v59  ;;  %v9278_v48 = vmul.f32 %v8915_v47, %v9248_v29  ;;  %v9290_v55 = vld [vmem:[#allocation2 + $0xa7] sm:$0xff]  ;;  %v9338_v52 = vld [vmem:[#allocation2 + $0xbf] sm:$0xff] }
 0x4fb   : >> { %11034 = vst [vmem:[#allocation138_spill] sm:$0xff] %v9264_v21  ;;  %v9282_v10 = vmul.f32 %v8934_v17, %v9122_v15  ;;  %v4001_v11 = vmul.f32 %v8889_v53, %v8766_v40  ;;  %v4031_v5 = vadd.f32 %v3999_v0, %v3959_v51  ;;  %v4071_v50 = vmul.f32 %v8889_v53, %v8786_v56  ;;  %v9296_v15 = vld [vmem:[#allocation2 + $0xaf] sm:$0xff] }
 0x4fc   : >> { %11036 = vst [vmem:[#allocation140_spill] sm:$0xff] %v9278_v48  ;;  %v9288_v45 = vadd.f32 %v4069_v49, %v4029_v25  ;;  %v4000_v34 = vmul.f32 %v8892_v44, %v8766_v40  ;;  %v4030_v7 = vadd.f32 %v3998_v41, %v3958_v58  ;;  %v4070_v21 = vmul.f32 %v8892_v44, %v8786_v56 }
 0x4fd   : >> { %v9300_v16 = vmul.f32 %v8915_v47, %v9266_v36  ;;  %v3963_v51 = vmul.f32 %v8889_v53, %v8761_v59  ;;  %v9304_v49 = vadd.f32 %v4068_v30, %v4028_v14  ;;  %v9308_v25 = vmul.f32 %v8934_v17, %v9146_v20 }
 0x4fe   : >> { %11037 = vst [vmem:[#allocation141_spill] sm:$0xff] %v9288_v45  ;;  %v9312_v58 = vmul.f32 %v8934_v17, %v9152_v1  ;;  %v3962_v0 = vmul.f32 %v8892_v44, %v8761_v59  ;;  %v4003_v41 = vmul.f32 %v8897_v63, %v8766_v40  ;;  %v4073_v45 = vmul.f32 %v8897_v63, %v8786_v56  ;;  %v9328_v1 = vld [vmem:[#allocation2 + $0xb7] sm:$0xff] }
 0x4ff   : >> { %11038 = vst [vmem:[#allocation142_spill] sm:$0xff] %v9300_v16  ;;  %11039 = vst [vmem:[#allocation143_spill] sm:$0xff] %v9304_v49  ;;  %v9322_v53 = vmul.f32 %v8915_v47, %v9290_v55  ;;  %v4002_v30 = vmul.f32 %v8900_v32, %v8766_v40  ;;  %v4033_v14 = vadd.f32 %v4001_v11, %v3961_v9 }
 0x500   : >> { %v9326_v49 = vadd.f32 %v4071_v50, %v4031_v5  ;;  %v9332_v44 = vmul.f32 %v8915_v47, %v9296_v15  ;;  %v4032_v20 = vadd.f32 %v4000_v34, %v3960_v35  ;;  %v4072_v16 = vmul.f32 %v8900_v32, %v8786_v56  ;;  %v9358_v34 = vld [vmem:[#allocation2 + $0xc7] sm:$0xff] }
 0x501   : >> { %11040 = vst [vmem:[#allocation144_spill] sm:$0xff] %v9322_v53  ;;  %v9336_v48 = vadd.f32 %v4070_v21, %v4030_v7  ;;  %v9342_v53 = vmul.f32 %v8934_v17, %v9176_v27  ;;  %v3965_v9 = vmul.f32 %v8897_v63, %v8761_v59  ;;  %v4005_v11 = vmul.f32 %v8905_v28, %v8766_v40  ;;  %v9368_v27 = vld [vmem:[#allocation2 + $0xcf] sm:$0xff] }
 0x502   : >> { %11041 = vst [vmem:[#allocation145_spill] sm:$0xff] %v9326_v49  ;;  %11042 = vst [vmem:[#allocation146_spill] sm:$0xff] %v9332_v44  ;;  %v4075_v35 = vmul.f32 %v8905_v28, %v8786_v56  ;;  %v9352_v5 = vmul.f32 %v8934_v17, %v9194_v38  ;;  %v3964_v7 = vmul.f32 %v8900_v32, %v8761_v59  ;;  %v9446_v44 = vld [vmem:[#allocation2 + $0xf7] sm:$0xff] }
 0x503   : >> { %11043 = vst [vmem:[#allocation147_spill] sm:$0xff] %v9336_v48  ;;  %v4035_v21 = vadd.f32 %v4003_v41, %v3963_v51  ;;  %v9356_v50 = vadd.f32 %v4073_v45, %v4033_v14  ;;  %v9362_v63 = vmul.f32 %v8915_v47, %v9328_v1  ;;  %v4004_v49 = vmul.f32 %v8908_v39, %v8766_v40 }
 0x504   : >> { %v4034_v48 = vadd.f32 %v4002_v30, %v3962_v0  ;;  %v4074_v38 = vmul.f32 %v8908_v39, %v8786_v56  ;;  %v9372_v32 = vmul.f32 %v8915_v47, %v9338_v52  ;;  %v3967_v45 = vmul.f32 %v8905_v28, %v8761_v59 }
 0x505   : >> { %11044 = vst [vmem:[#allocation148_spill] sm:$0xff] %v9356_v50  ;;  %11045 = vst [vmem:[#allocation149_spill] sm:$0xff] %v9362_v63  ;;  %v9376_v51 = vadd.f32 %v4072_v16, %v4032_v20  ;;  %v9380_v41 = vmul.f32 %v8934_v17, %v9218_v62  ;;  %v9384_v0 = vmul.f32 %v8934_v17, %v9224_v8 }
 0x506   : >> { %11046 = vst [vmem:[#allocation150_spill] sm:$0xff] %v9372_v32  ;;  %v3966_v30 = vmul.f32 %v8908_v39, %v8761_v59  ;;  %v4037_v14 = vadd.f32 %v4005_v11, %v3965_v9  ;;  %v9388_v50 = vadd.f32 %v4075_v35, %v4035_v21  ;;  %v9392_v32 = vmul.f32 %v8915_v47, %v9358_v34 }
 0x507   : >> { %11047 = vst [vmem:[#allocation151_spill] sm:$0xff] %v9376_v51  ;;  %v4006_v28 = vmul.f32 %v8929_v19, %v8766_v40  ;;  %v4007_v16 = vmul.f32 %v8923_v26, %v8766_v40  ;;  %v4077_v20 = vmul.f32 %v8923_v26, %v8786_v56  ;;  %v9400_v51 = vld [vmem:[#allocation2 + $0xd7] sm:$0xff]  ;;  %v9404_v39 = vmul.f32 %v8915_v47, %v9368_v27 }
 0x508   : >> { %11048 = vst [vmem:[#allocation152_spill] sm:$0xff] %v9388_v50  ;;  %11049 = vst [vmem:[#allocation153_spill] sm:$0xff] %v9392_v32  ;;  %v4008_v9 = vmul.f32 %v8974_v4, %v8766_v40  ;;  %v4036_v11 = vadd.f32 %v4004_v49, %v3964_v7  ;;  %v4076_v35 = vmul.f32 %v8929_v19, %v8786_v56  ;;  %v9412_v50 = vld [vmem:[#allocation2 + $0xdf] sm:$0xff]  ;;  %v9428_v7 = vld [vmem:[#allocation2 + $0xe7] sm:$0xff] }
 0x509   : >> { %11050 = vst [vmem:[#allocation154_spill] sm:$0xff] %v9404_v39  ;;  %v9410_v21 = vadd.f32 %v4074_v38, %v4034_v48  ;;  %v3969_v8 = vmul.f32 %v8923_v26, %v8761_v59  ;;  %v4009_v62 = vmul.f32 %v8952_v33, %v8766_v40  ;;  %v4213_v39 = vmul.f32 %v8934_v17, %v9248_v29  ;;  %v9430_v26 = vld [vmem:[#allocation2 + $0xef] sm:$0xff] }
 0x50a   : >> { %v4214_v32 = vmul.f32 %v8934_v17, %v9266_v36  ;;  %v3968_v49 = vmul.f32 %v8929_v19, %v8761_v59  ;;  %v4078_v38 = vmul.f32 %v8974_v4, %v8786_v56  ;;  %v4079_v48 = vmul.f32 %v8952_v33, %v8786_v56 }
 0x50b   : >> { %11051 = vst [vmem:[#allocation155_spill] sm:$0xff] %v9410_v21  ;;  %v4183_v40 = vmul.f32 %v8915_v47, %v9400_v51  ;;  %v4038_v21 = vadd.f32 %v4006_v28, %v3966_v30  ;;  %v4039_v29 = vadd.f32 %v4007_v16, %v3967_v45  ;;  %v9434_v63 = vadd.f32 %v4077_v20, %v4037_v14  ;;  %v9448_v30 = vld [vmem:[#allocation2 + $0xff] sm:$0xff] }
 0x50c   : >> { %v4184_v19 = vmul.f32 %v8915_v47, %v9412_v50  ;;  %v4040_v59 = vadd.f32 %v4008_v9, %v3968_v49  ;;  %v9438_v36 = vadd.f32 %v4076_v35, %v4036_v11  ;;  %v4215_v4 = vmul.f32 %v8934_v17, %v9290_v55 }
 0x50d   : >> { %11052 = vst [vmem:[#allocation156_spill] sm:$0xff] %v9434_v63  ;;  %v4216_v56 = vmul.f32 %v8934_v17, %v9296_v15  ;;  %v9444_v33 = vadd.f32 %v4009_v62, %v3969_v8  ;;  %v4185_v45 = vmul.f32 %v8915_v47, %v9428_v7  ;;  %v4186_v14 = vmul.f32 %v8915_v47, %v9430_v26 }
 0x50e   : >> { %11053 = vst [vmem:[#allocation157_spill] sm:$0xff] %v9438_v36  ;;  %v4217_v28 = vmul.f32 %v8934_v17, %v9328_v1  ;;  %v9456_v16 = vadd.f32 %v4078_v38, %v4038_v21  ;;  %v9458_v20 = vadd.f32 %v4079_v48, %v4039_v29  ;;  %v4218_v8 = vmul.f32 %v8934_v17, %v9338_v52 }
 0x50f   : >> { %11054 = vst [vmem:[#allocation158_spill] sm:$0xff] %v9444_v33  ;;  %v4219_v62 = vmul.f32 %v8934_v17, %v9358_v34  ;;  %v4220_v9 = vmul.f32 %v8934_v17, %v9368_v27  ;;  %v4221_v11 = vmul.f32 %v8934_v17, %v9400_v51  ;;  %v4222_v35 = vmul.f32 %v8934_v17, %v9412_v50  ;;  %v9483_v33 = vld [vmem:[#allocation2 + $0x10f] sm:$0xff] }
 0x510   : >> { %11055 = vst [vmem:[#allocation159_spill] sm:$0xff] %v9456_v16  ;;  %11056 = vst [vmem:[#allocation160_spill] sm:$0xff] %v9458_v20  ;;  %v4223_v21 = vmul.f32 %v8934_v17, %v9428_v7  ;;  %v9473_v29 = vadd.f32 %v8956_v61, %v4040_v59  ;;  %v4187_v49 = vmul.f32 %v8915_v47, %v9446_v44  ;;  %v9481_v20 = vld [vmem:[#allocation2 + $0x107] sm:$0xff] }
 0x511   : >> { %v4188_v38 = vmul.f32 %v8915_v47, %v9448_v30  ;;  %v4224_v48 = vmul.f32 %v8934_v17, %v9430_v26  ;;  %v4225_v16 = vmul.f32 %v8934_v17, %v9446_v44  ;;  %v4226_v61 = vmul.f32 %v8934_v17, %v9448_v30 }
 0x512   : >> { %11057 = vst [vmem:[#allocation161_spill] sm:$0xff] %v9473_v29  ;;  %v9491_v59 = vadd.f32 %v9164_v46, %v9001_v60  ;;  %v9495_v47 = vadd.f32 %v9168_v57, %v9010_v22  ;;  %v9499_v29 = vadd.f32 %v9198_v43, %v9090_v13  ;;  %v9503_v63 = vadd.f32 %v9210_v3, %v9094_v18 }
 0x513   : >> { %v9507_v36 = vadd.f32 %v9236_v12, %v9108_v54  ;;  %v9511_v60 = vadd.f32 %v9240_v24, %v9116_v37  ;;  %v9515_v22 = vadd.f32 %v9270_v23, %v9126_v42  ;;  %v9519_v13 = vadd.f32 %v9282_v10, %v9134_v2  ;;  %v11058_v42 = vld [vmem:[#allocation123_spill] sm:$0xff]  ;;  %v11059_v2 = vld [vmem:[#allocation125_spill] sm:$0xff] }
 0x514   : >> { %v9523_v18 = vadd.f32 %v9308_v25, %v9138_v31  ;;  %v9527_v54 = vadd.f32 %v9312_v58, %v9156_v6  ;;  %v4227_v37 = vmul.f32 %v8934_v17, %v9481_v20  ;;  %v4228_v46 = vmul.f32 %v8934_v17, %v9483_v33  ;;  %v11060_v31 = vld [vmem:[#allocation128_spill] sm:$0xff]  ;;  %v11062_v24 = vld [vmem:[#allocation135_spill] sm:$0xff]  ;;  %v11063_v17 = vld [vmem:[#allocation137_spill] sm:$0xff] }
 0x515   : >> { %v9535_v57 = vadd.f32 %v9342_v53, %v11058_v42  ;;  %v9539_v43 = vadd.f32 %v9352_v5, %v11059_v2  ;;  %v9543_v3 = vadd.f32 %v9380_v41, %v11060_v31  ;;  %v11061_v6 = vld [vmem:[#allocation132_spill] sm:$0xff]  ;;  %v9550_v23 = vadd.f32 %v4213_v39, %v11062_v24  ;;  %v11065_v53 = vld [vmem:[#allocation142_spill] sm:$0xff] }
 0x516   : >> { %v9547_v12 = vadd.f32 %v9384_v0, %v11061_v6  ;;  %v9553_v10 = vadd.f32 %v4214_v32, %v11063_v17  ;;  %v11064_v25 = vld [vmem:[#allocation140_spill] sm:$0xff]  ;;  %v9559_v5 = vadd.f32 %v4216_v56, %v11065_v53  ;;  %v11067_v41 = vld [vmem:[#allocation146_spill] sm:$0xff]  ;;  %v11068_v0 = vld [vmem:[#allocation149_spill] sm:$0xff]  ;;  %v9579_v56 = vadd.f32 %v4223_v21, %v4183_v40 }
 0x517   : >> { %v9556_v58 = vadd.f32 %v4215_v4, %v11064_v25  ;;  %v11066_v42 = vld [vmem:[#allocation144_spill] sm:$0xff]  ;;  %v9565_v31 = vadd.f32 %v4218_v8, %v11067_v41  ;;  %v9568_v6 = vadd.f32 %v4219_v62, %v11068_v0  ;;  %v11070_v39 = vld [vmem:[#allocation150_spill] sm:$0xff]  ;;  %v11072_v32 = vld [vmem:[#allocation153_spill] sm:$0xff]  ;;  %v9581_v53 = vadd.f32 %v4224_v48, %v4184_v19 }
 0x518   : >> { %v9562_v2 = vadd.f32 %v4217_v28, %v11066_v42  ;;  %v9571_v24 = vadd.f32 %v4220_v9, %v11070_v39  ;;  %v9574_v17 = vadd.f32 %v4221_v11, %v11072_v32  ;;  %v11074_v4 = vld [vmem:[#allocation154_spill] sm:$0xff]  ;;  %11076 = vst [vmem:[#allocation135_spill] sm:$0xff] %v9579_v56  ;;  %v9583_v28 = vadd.f32 %v4225_v16, %v4185_v45  ;;  %v11082_v9 = vld [vmem:[#allocation105_spill] sm:$0xff]  ;;  %v11083_v41 = vld [vmem:[#allocation87_spill] sm:$0xff] }
 0x519   : >> { %11069 = vst [vmem:[#allocation123_spill] sm:$0xff] %v9568_v6  ;;  %v9577_v25 = vadd.f32 %v4222_v35, %v11074_v4  ;;  %11077 = vst [vmem:[#allocation137_spill] sm:$0xff] %v9581_v53  ;;  %v9585_v8 = vadd.f32 %v4226_v61, %v4186_v14  ;;  %v9587_v42 = vadd.f32 %v4227_v37, %v4187_v49  ;;  %v11084_v11 = vld [vmem:[#allocation106_spill] sm:$0xff]  ;;  %v11085_v35 = vld [vmem:[#allocation108_spill] sm:$0xff] }
 0x51a   : >> { %11071 = vst [vmem:[#allocation125_spill] sm:$0xff] %v9571_v24  ;;  %11073 = vst [vmem:[#allocation128_spill] sm:$0xff] %v9574_v17  ;;  %v9589_v62 = vadd.f32 %v4228_v46, %v4188_v38  ;;  %v4269_v0 = vmul.f32 %v11083_v41, %v11082_v9  ;;  %v4270_v39 = vmul.f32 %v11083_v41, %v11084_v11  ;;  %v11086_v21 = vld [vmem:[#allocation110_spill] sm:$0xff]  ;;  %v11087_v45 = vld [vmem:[#allocation112_spill] sm:$0xff] }
 0x51b   : >> { %11075 = vst [vmem:[#allocation132_spill] sm:$0xff] %v9577_v25  ;;  %11078 = vst [vmem:[#allocation140_spill] sm:$0xff] %v9583_v28  ;;  %v4271_v40 = vmul.f32 %v11083_v41, %v11085_v35  ;;  %v4272_v19 = vmul.f32 %v11083_v41, %v11086_v21  ;;  %v4273_v14 = vmul.f32 %v11083_v41, %v11087_v45  ;;  %v11088_v16 = vld [vmem:[#allocation113_spill] sm:$0xff]  ;;  %v11089_v38 = vld [vmem:[#allocation114_spill] sm:$0xff] }
 0x51c   : >> { %11079 = vst [vmem:[#allocation142_spill] sm:$0xff] %v9585_v8  ;;  %11080 = vst [vmem:[#allocation144_spill] sm:$0xff] %v9587_v42  ;;  %v4274_v49 = vmul.f32 %v11083_v41, %v11088_v16  ;;  %v4275_v48 = vmul.f32 %v11083_v41, %v11089_v38  ;;  %v11090_v61 = vld [vmem:[#allocation117_spill] sm:$0xff]  ;;  %v11091_v46 = vld [vmem:[#allocation119_spill] sm:$0xff]  ;;  %v4288_v53 = vmul.f32 %v11083_v41, %v9338_v52 }
 0x51d   : >> { %11081 = vst [vmem:[#allocation146_spill] sm:$0xff] %v9589_v62  ;;  %v4276_v37 = vmul.f32 %v11083_v41, %v11090_v61  ;;  %v4277_v32 = vmul.f32 %v11083_v41, %v11091_v46  ;;  %v11092_v4 = vld [vmem:[#allocation120_spill] sm:$0xff]  ;;  %v11093_v11 = vld [vmem:[#allocation122_spill] sm:$0xff]  ;;  %v11094_v21 = vld [vmem:[#allocation127_spill] sm:$0xff]  ;;  %v4295_v52 = vmul.f32 %v11083_v41, %v9446_v44  ;;  %v4304_v24 = vadd.f32 %v4272_v19, %v9495_v47 }
 0x51e   : >> { %v4278_v9 = vmul.f32 %v11083_v41, %v11092_v4  ;;  %v4279_v35 = vmul.f32 %v11083_v41, %v11093_v11  ;;  %v4280_v45 = vmul.f32 %v11083_v41, %v11094_v21  ;;  %v11095_v62 = vld [vmem:[#allocation130_spill] sm:$0xff]  ;;  %v11096_v42 = vld [vmem:[#allocation131_spill] sm:$0xff]  ;;  %v4880_v61 = vld [vmem:[%s11097_s21] sm:$0xff]  ;;  %v4285_v11 = vmul.f32 %v11083_v41, %v9290_v55  ;;  %s5110_s21 = sshll.u32 (%p592_p3), %s8106_s14, 4  ;;  %s10602_s21 = int_to_ptr.vmem [resolvable:$true] %s5110_s21 }
 0x51f   : >> { %v4281_v16 = vmul.f32 %v11083_v41, %v11095_v62  ;;  %v4282_v38 = vmul.f32 %v11083_v41, %v11096_v42  ;;  %v11098_v46 = vld [vmem:[#allocation134_spill] sm:$0xff]  ;;  %v11099_v4 = vld [vmem:[#allocation139_spill] sm:$0xff]  ;;  %v4286_v21 = vmul.f32 %v11083_v41, %v9296_v15  ;;  %6615 = vmatpush3.msra.mxu1 %v4880_v61  ;;  %v4287_v42 = vmul.f32 %v11083_v41, %v9328_v1  ;;  %s7562_s17 = scalar_lea.vmem (%p592_p3), %s10602_s21, 8192  ;;  %p7569_p1 = scmp.lt.s32.totalorder (%p592_p3), %s10602_s21, %s7567_s16 }
 0x520   : >> { %v4283_v8 = vmul.f32 %v11083_v41, %v11098_v46  ;;  %v4284_v28 = vmul.f32 %v11083_v41, %v11099_v4  ;;  %v4148_v62 = vld [vmem:[#allocation2 + $0x117] sm:$0xff]  ;;  %v4289_v46 = vmul.f32 %v11083_v41, %v9358_v34  ;;  %v4290_v4 = vmul.f32 %v11083_v41, %v9368_v27  ;;  %p7563_p5 = scmp.ne.s32.totalorder (%p592_p3), %s10602_s21, %s7562_s17 }
 0x521   : >> { %v4291_v55 = vmul.f32 %v11083_v41, %v9400_v51  ;;  %v4292_v15 = vmul.f32 %v11083_v41, %v9412_v50  ;;  %v4293_v61 = vmul.f32 %v11083_v41, %v9428_v7  ;;  %v4294_v1 = vmul.f32 %v11083_v41, %v9430_v26  ;;  %v11100_v56 = vld [vmem:[#allocation99_spill] sm:$0xff]  ;;  %v11101_v7 = vld [vmem:[#allocation100_spill] sm:$0xff] }
 0x522   : >> { %v4296_v34 = vmul.f32 %v11083_v41, %v9448_v30  ;;  %v4297_v27 = vmul.f32 %v11083_v41, %v9481_v20  ;;  %v4298_v51 = vmul.f32 %v11083_v41, %v9483_v33  ;;  %v4299_v50 = vmul.f32 %v11083_v41, %v4148_v62  ;;  %v11104_v19 = vld [vmem:[#allocation128_spill] sm:$0xff]  ;;  %p7564_p7 = pnand (%p592_p3), %p7563_p5, %p7901_p10 }
 0x523   : >> { %v4301_v25 = vadd.f32 %v4269_v0, %v11100_v56  ;;  %v4302_v17 = vadd.f32 %v4270_v39, %v11101_v7  ;;  %v4303_v26 = vadd.f32 %v4271_v40, %v9491_v59  ;;  %v4305_v44 = vadd.f32 %v4273_v14, %v9499_v29  ;;  %v11102_v39 = vld [vmem:[#allocation123_spill] sm:$0xff]  ;;  %v11103_v40 = vld [vmem:[#allocation125_spill] sm:$0xff] }
 0x524   : >> { %v4306_v30 = vadd.f32 %v4274_v49, %v9503_v63  ;;  %v4307_v6 = vadd.f32 %v4275_v48, %v9507_v36  ;;  %v4308_v20 = vadd.f32 %v4276_v37, %v9511_v60  ;;  %v4309_v33 = vadd.f32 %v4277_v32, %v9515_v22  ;;  %v11107_v14 = vld [vmem:[#allocation137_spill] sm:$0xff]  ;;  %v11108_v49 = vld [vmem:[#allocation140_spill] sm:$0xff]  ;;  %v11109_v48 = vld [vmem:[#allocation142_spill] sm:$0xff]  ;;  %p7565_p12 = pneg (%p592_p3), %p7564_p7 }
 0x525   : >> { %v4310_v41 = vadd.f32 %v4278_v9, %v9519_v13  ;;  %v4311_v56 = vadd.f32 %v4279_v35, %v9523_v18  ;;  %v4312_v0 = vadd.f32 %v4280_v45, %v9527_v54  ;;  %v4313_v59 = vadd.f32 %v4281_v16, %v9535_v57  ;;  %v11114_v37 = vld [vmem:[#allocation89_spill] sm:$0xff]  ;;  %v11116_v9 = vld [vmem:[#allocation19_spill] sm:$0xff]  ;;  %v11118_v45 = vld [vmem:[#allocation20_spill] sm:$0xff] }
 0x526   : >> { %v4314_v47 = vadd.f32 %v4282_v38, %v9539_v43  ;;  %v4315_v29 = vadd.f32 %v4283_v8, %v9543_v3  ;;  %v4316_v63 = vadd.f32 %v4284_v28, %v9547_v12  ;;  %v4317_v36 = vadd.f32 %v4285_v11, %v9550_v23  ;;  %v11105_v8 = vld [vmem:[#allocation132_spill] sm:$0xff]  ;;  %v11106_v28 = vld [vmem:[#allocation135_spill] sm:$0xff]  ;;  %v11120_v38 = vld [vmem:[#allocation21_spill] sm:$0xff] }
 0x527   : >> { %v4318_v60 = vadd.f32 %v4286_v21, %v9553_v10  ;;  %v4319_v22 = vadd.f32 %v4287_v42, %v9556_v58  ;;  %v4320_v13 = vadd.f32 %v4288_v53, %v9559_v5  ;;  %v4321_v18 = vadd.f32 %v4289_v46, %v9562_v2  ;;  %v11111_v2 = vld [vmem:[#allocation144_spill] sm:$0xff]  ;;  %v11122_v21 = vld [vmem:[#allocation22_spill] sm:$0xff]  ;;  %v11124_v42 = vld [vmem:[#allocation23_spill] sm:$0xff] }
 0x528   : >> { %v4322_v54 = vadd.f32 %v4290_v4, %v9565_v31  ;;  %v4323_v57 = vadd.f32 %v4291_v55, %v11102_v39  ;;  %v4324_v43 = vadd.f32 %v4292_v15, %v11103_v40  ;;  %v4325_v3 = vadd.f32 %v4293_v61, %v11104_v19  ;;  %v11113_v31 = vld [vmem:[#allocation146_spill] sm:$0xff]  ;;  %v11126_v4 = vld [vmem:[#allocation24_spill] sm:$0xff]  ;;  %v11128_v15 = vld [vmem:[#allocation25_spill] sm:$0xff] }
 0x529   : >> { %v4326_v12 = vadd.f32 %v4294_v1, %v11105_v8  ;;  %v4327_v23 = vadd.f32 %v4295_v52, %v11106_v28  ;;  %v4328_v10 = vadd.f32 %v4296_v34, %v11107_v14  ;;  %v4329_v58 = vadd.f32 %v4297_v27, %v11108_v49  ;;  %v11134_v34 = vld [vmem:[#allocation28_spill] sm:$0xff]  ;;  %v9729_v7 = vld [vmem:[#allocation2 + $0x29] sm:$0xff]  ;;  %v9747_v19 = vld [vmem:[#allocation2 + $0x41] sm:$0xff] }
 0x52a   : >> { %v9685_v5 = vadd.f32 %v4298_v51, %v11109_v48  ;;  %v9688_v53 = vadd.f32 %v4299_v50, %v11111_v2  ;;  %v9692_v32 = vadd.f32 %v11114_v37, %v11113_v31  ;;  %v9695_v35 = vmul.f32 %v4301_v25, %v11116_v9  ;;  %v11130_v25 = vld [vmem:[#allocation26_spill] sm:$0xff]  ;;  %v9763_v2 = vld [vmem:[#allocation2 + $0x51] sm:$0xff]  ;;  %v9765_v31 = vld [vmem:[#allocation2 + $0x59] sm:$0xff] }
 0x52b   : >> { %v9698_v16 = vmul.f32 %v4302_v17, %v11118_v45  ;;  %v9701_v11 = vmul.f32 %v4303_v26, %v11120_v38  ;;  %v9704_v62 = vmul.f32 %v4304_v24, %v11122_v21  ;;  %v9707_v46 = vmul.f32 %v4305_v44, %v11124_v42  ;;  %v11132_v17 = vld [vmem:[#allocation27_spill] sm:$0xff]  ;;  %v11136_v24 = vld [vmem:[#allocation29_spill] sm:$0xff]  ;;  %v11138_v26 = vld [vmem:[#allocation30_spill] sm:$0xff]  ;;  %11155 = vst [vmem:[#allocation123_spill] sm:$0xff] %v9763_v2 }
 0x52c   : >> { %11110 = vst [vmem:[#allocation149_spill] sm:$0xff] %v9685_v5  ;;  %11112 = vst [vmem:[#allocation150_spill] sm:$0xff] %v9688_v53  ;;  %v9710_v55 = vmul.f32 %v4306_v30, %v11126_v4  ;;  %v9713_v61 = vmul.f32 %v4307_v6, %v11128_v15  ;;  %v9716_v1 = vmul.f32 %v4308_v20, %v11130_v25  ;;  %v9727_v50 = vld [vmem:[#allocation2 + $0x21] sm:$0xff]  ;;  %v11140_v6 = vld [vmem:[#allocation31_spill] sm:$0xff] }
 0x52d   : >> { %11115 = vst [vmem:[#allocation153_spill] sm:$0xff] %v9692_v32  ;;  %11117 = vst [vmem:[#allocation154_spill] sm:$0xff] %v9695_v35  ;;  %v9719_v52 = vmul.f32 %v4309_v33, %v11132_v17  ;;  %v9722_v27 = vmul.f32 %v4310_v41, %v11134_v34  ;;  %v9725_v51 = vmul.f32 %v4311_v56, %v11136_v24  ;;  %v11142_v20 = vld [vmem:[#allocation32_spill] sm:$0xff]  ;;  %v11144_v33 = vld [vmem:[#allocation33_spill] sm:$0xff] }
 0x52e   : >> { %11119 = vst [vmem:[#allocation105_spill] sm:$0xff] %v9698_v16  ;;  %11121 = vst [vmem:[#allocation87_spill] sm:$0xff] %v9701_v11  ;;  %v9732_v44 = vmul.f32 %v4312_v0, %v11138_v26  ;;  %v9735_v30 = vmul.f32 %v4313_v59, %v11140_v6  ;;  %v9738_v39 = vmul.f32 %v4314_v47, %v11142_v20  ;;  %v9743_v41 = vld [vmem:[#allocation2 + $0x31] sm:$0xff]  ;;  %v9745_v56 = vld [vmem:[#allocation2 + $0x39] sm:$0xff] }
 0x52f   : >> { %11123 = vst [vmem:[#allocation106_spill] sm:$0xff] %v9704_v62  ;;  %11125 = vst [vmem:[#allocation108_spill] sm:$0xff] %v9707_v46  ;;  %v9741_v40 = vmul.f32 %v4315_v29, %v11144_v33  ;;  %v11146_v8 = vld [vmem:[#allocation34_spill] sm:$0xff]  ;;  %v11148_v0 = vld [vmem:[#allocation35_spill] sm:$0xff] }
 0x530   : >> { %11127 = vst [vmem:[#allocation110_spill] sm:$0xff] %v9710_v55  ;;  %11129 = vst [vmem:[#allocation112_spill] sm:$0xff] %v9713_v61  ;;  %v9750_v28 = vmul.f32 %v4316_v63, %v11146_v8  ;;  %v9753_v14 = vmul.f32 %v4317_v36, %v11148_v0  ;;  %v11150_v59 = vld [vmem:[#allocation36_spill] sm:$0xff]  ;;  %v11152_v47 = vld [vmem:[#allocation37_spill] sm:$0xff] }
 0x531   : >> { %11131 = vst [vmem:[#allocation113_spill] sm:$0xff] %v9716_v1  ;;  %11133 = vst [vmem:[#allocation114_spill] sm:$0xff] %v9719_v52  ;;  %v9756_v49 = vmul.f32 %v4318_v60, %v11150_v59  ;;  %v9759_v48 = vmul.f32 %v4319_v22, %v11152_v47  ;;  %v9761_v29 = vld [vmem:[#allocation2 + $0x49] sm:$0xff]  ;;  %v11161_v36 = vld [vmem:[#allocation40_spill] sm:$0xff] }
 0x532   : >> { %11135 = vst [vmem:[#allocation117_spill] sm:$0xff] %v9722_v27  ;;  %11137 = vst [vmem:[#allocation119_spill] sm:$0xff] %v9725_v51  ;;  %v11157_v37 = vld [vmem:[#allocation38_spill] sm:$0xff]  ;;  %v11159_v63 = vld [vmem:[#allocation39_spill] sm:$0xff]  ;;  %v9774_v38 = vmul.f32 %v4322_v54, %v11161_v36 }
 0x533   : >> { %11139 = vst [vmem:[#allocation120_spill] sm:$0xff] %v9732_v44  ;;  %11141 = vst [vmem:[#allocation122_spill] sm:$0xff] %v9735_v30  ;;  %v9768_v9 = vmul.f32 %v4320_v13, %v11157_v37  ;;  %v9771_v45 = vmul.f32 %v4321_v18, %v11159_v63  ;;  %v11163_v60 = vld [vmem:[#allocation41_spill] sm:$0xff]  ;;  %v9781_v42 = vld [vmem:[#allocation2 + $0x69] sm:$0xff] }
 0x534   : >> { %11143 = vst [vmem:[#allocation127_spill] sm:$0xff] %v9738_v39  ;;  %11145 = vst [vmem:[#allocation130_spill] sm:$0xff] %v9741_v40  ;;  %v9777_v21 = vmul.f32 %v4323_v57, %v11163_v60  ;;  %v9779_v22 = vld [vmem:[#allocation2 + $0x61] sm:$0xff]  ;;  %v9783_v4 = vld [vmem:[#allocation2 + $0x71] sm:$0xff] }
 0x535   : >> { %11147 = vst [vmem:[#allocation131_spill] sm:$0xff] %v9750_v28  ;;  %11149 = vst [vmem:[#allocation134_spill] sm:$0xff] %v9753_v14  ;;  %v11168_v15 = vld [vmem:[#allocation42_spill] sm:$0xff]  ;;  %v11170_v13 = vld [vmem:[#allocation43_spill] sm:$0xff] }
 0x536   : >> { %11151 = vst [vmem:[#allocation139_spill] sm:$0xff] %v9756_v49  ;;  %11153 = vst [vmem:[#allocation99_spill] sm:$0xff] %v9759_v48  ;;  %v9786_v25 = vmul.f32 %v4324_v43, %v11168_v15  ;;  %v9789_v17 = vmul.f32 %v4325_v3, %v11170_v13  ;;  %v11172_v18 = vld [vmem:[#allocation44_spill] sm:$0xff]  ;;  %v11174_v54 = vld [vmem:[#allocation45_spill] sm:$0xff] }
 0x537   : >> { %11154 = vst [vmem:[#allocation100_spill] sm:$0xff] %v9761_v29  ;;  %11156 = vst [vmem:[#allocation125_spill] sm:$0xff] %v9765_v31  ;;  %v9792_v34 = vmul.f32 %v4326_v12, %v11172_v18  ;;  %v9795_v24 = vmul.f32 %v4327_v23, %v11174_v54  ;;  %v9797_v57 = vld [vmem:[#allocation2 + $0x79] sm:$0xff]  ;;  %v9799_v26 = vld [vmem:[#allocation2 + $0x81] sm:$0xff] }
 0x538   : >> { %11158 = vst [vmem:[#allocation128_spill] sm:$0xff] %v9768_v9  ;;  %11160 = vst [vmem:[#allocation132_spill] sm:$0xff] %v9771_v45  ;;  %v9801_v6 = vld [vmem:[#allocation2 + $0x89] sm:$0xff]  ;;  %v9809_v3 = vld [vmem:[#allocation2 + $0x91] sm:$0xff] }
 0x539   : >> { %11162 = vst [vmem:[#allocation135_spill] sm:$0xff] %v9774_v38  ;;  %11164 = vst [vmem:[#allocation137_spill] sm:$0xff] %v9777_v21  ;;  %v11179_v20 = vld [vmem:[#allocation46_spill] sm:$0xff]  ;;  %v11181_v43 = vld [vmem:[#allocation47_spill] sm:$0xff] }
 0x53a   : >> { %11165 = vst [vmem:[#allocation140_spill] sm:$0xff] %v9779_v22  ;;  %11166 = vst [vmem:[#allocation142_spill] sm:$0xff] %v9781_v42  ;;  %v9804_v33 = vmul.f32 %v4328_v10, %v11179_v20  ;;  %v9807_v8 = vmul.f32 %v4329_v58, %v11181_v43  ;;  %v9811_v0 = vld [vmem:[#allocation2 + $0x99] sm:$0xff]  ;;  %v9813_v12 = vld [vmem:[#allocation2 + $0xa1] sm:$0xff] }
 0x53b   : >> { %11167 = vst [vmem:[#allocation144_spill] sm:$0xff] %v9783_v4  ;;  %11169 = vst [vmem:[#allocation146_spill] sm:$0xff] %v9786_v25  ;;  %v11186_v23 = vld [vmem:[#allocation85_spill] sm:$0xff]  ;;  %v9823_v37 = vld [vmem:[#allocation2 + $0xa9] sm:$0xff] }
 0x53c   : >> { %11171 = vst [vmem:[#allocation89_spill] sm:$0xff] %v9789_v17  ;;  %11173 = vst [vmem:[#allocation162_spill] sm:$0xff] %v9792_v34  ;;  %v9817_v59 = vmul.f32 %v11186_v23, %v9727_v50  ;;  %v9821_v47 = vmul.f32 %v11186_v23, %v9729_v7  ;;  %v9825_v10 = vld [vmem:[#allocation2 + $0xb1] sm:$0xff]  ;;  %v9827_v58 = vld [vmem:[#allocation2 + $0xb9] sm:$0xff]  ;;  %v9831_v63 = vmul.f32 %v11186_v23, %v9743_v41 }
 0x53d   : >> { %11175 = vst [vmem:[#allocation163_spill] sm:$0xff] %v9795_v24  ;;  %11176 = vst [vmem:[#allocation164_spill] sm:$0xff] %v9797_v57  ;;  %v9835_v36 = vmul.f32 %v11186_v23, %v9745_v56  ;;  %v9839_v60 = vmul.f32 %v11186_v23, %v9747_v19  ;;  %v9843_v15 = vmul.f32 %v11186_v23, %v9761_v29  ;;  %v9845_v13 = vld [vmem:[#allocation2 + $0xc1] sm:$0xff]  ;;  %v9847_v18 = vld [vmem:[#allocation2 + $0xc9] sm:$0xff] }
 0x53e   : >> { %11177 = vst [vmem:[#allocation165_spill] sm:$0xff] %v9799_v26  ;;  %11178 = vst [vmem:[#allocation166_spill] sm:$0xff] %v9801_v6  ;;  %v9849_v54 = vld [vmem:[#allocation2 + $0xd1] sm:$0xff]  ;;  %v9853_v20 = vmul.f32 %v11186_v23, %v9763_v2  ;;  %v9857_v43 = vmul.f32 %v11186_v23, %v9765_v31  ;;  %v9861_v32 = vmul.f32 %v11186_v23, %v9779_v22  ;;  %v9871_v5 = vld [vmem:[#allocation2 + $0xe9] sm:$0xff] }
 0x53f   : >> { %11180 = vst [vmem:[#allocation167_spill] sm:$0xff] %v9804_v33  ;;  %11182 = vst [vmem:[#allocation168_spill] sm:$0xff] %v9807_v8  ;;  %v9865_v53 = vmul.f32 %v11186_v23, %v9781_v42  ;;  %v9867_v8 = vld [vmem:[#allocation2 + $0xd9] sm:$0xff]  ;;  %v9869_v33 = vld [vmem:[#allocation2 + $0xe1] sm:$0xff]  ;;  %v9875_v24 = vmul.f32 %v11186_v23, %v9783_v4  ;;  %v9879_v34 = vmul.f32 %v11186_v23, %v9797_v57 }
 0x540   : >> { %11183 = vst [vmem:[#allocation169_spill] sm:$0xff] %v9809_v3  ;;  %11184 = vst [vmem:[#allocation170_spill] sm:$0xff] %v9811_v0  ;;  %v9883_v17 = vmul.f32 %v11186_v23, %v9799_v26  ;;  %v9887_v25 = vmul.f32 %v11186_v23, %v9801_v6  ;;  %v9889_v21 = vld [vmem:[#allocation2 + $0xf1] sm:$0xff]  ;;  %v9891_v38 = vld [vmem:[#allocation2 + $0xf9] sm:$0xff]  ;;  %v9897_v9 = vmul.f32 %v11186_v23, %v9809_v3 }
 0x541   : >> { %11185 = vst [vmem:[#allocation171_spill] sm:$0xff] %v9813_v12  ;;  %11187 = vst [vmem:[#allocation85_spill] sm:$0xff] %v9823_v37  ;;  %v9893_v45 = vld [vmem:[#allocation2 + $0x101] sm:$0xff]  ;;  %v9901_v48 = vmul.f32 %v11186_v23, %v9811_v0  ;;  %v9905_v49 = vmul.f32 %v11186_v23, %v9813_v12  ;;  %v9909_v14 = vmul.f32 %v11186_v23, %v9823_v37  ;;  %v11209_v11 = vld [vmem:[#allocation84_spill] sm:$0xff] }
 0x542   : >> { %11188 = vst [vmem:[#allocation172_spill] sm:$0xff] %v9825_v10  ;;  %11189 = vst [vmem:[#allocation173_spill] sm:$0xff] %v9827_v58  ;;  %v9913_v28 = vmul.f32 %v11186_v23, %v9825_v10  ;;  %v9917_v40 = vmul.f32 %v11186_v23, %v9827_v58  ;;  %v9921_v39 = vmul.f32 %v11186_v23, %v9845_v13  ;;  %v11208_v46 = vld [vmem:[#allocation86_spill] sm:$0xff]  ;;  %v11212_v35 = vld [vmem:[#allocation83_spill] sm:$0xff] }
 0x543   : >> { %11190 = vst [vmem:[#allocation174_spill] sm:$0xff] %v9845_v13  ;;  %11191 = vst [vmem:[#allocation175_spill] sm:$0xff] %v9847_v18  ;;  %v9925_v30 = vmul.f32 %v11186_v23, %v9847_v18  ;;  %v9929_v44 = vmul.f32 %v11186_v23, %v9849_v54  ;;  %v9933_v51 = vmul.f32 %v11186_v23, %v9867_v8 }
 0x544   : >> { %11192 = vst [vmem:[#allocation176_spill] sm:$0xff] %v9849_v54  ;;  %11193 = vst [vmem:[#allocation177_spill] sm:$0xff] %v9867_v8  ;;  %v9937_v27 = vmul.f32 %v11186_v23, %v9869_v33  ;;  %v9941_v52 = vmul.f32 %v11186_v23, %v9871_v5  ;;  %v9945_v1 = vmul.f32 %v11186_v23, %v9889_v21 }
 0x545   : >> { %11194 = vst [vmem:[#allocation178_spill] sm:$0xff] %v9869_v33  ;;  %11195 = vst [vmem:[#allocation179_spill] sm:$0xff] %v9871_v5  ;;  %v9949_v61 = vmul.f32 %v11186_v23, %v9891_v38  ;;  %v9953_v55 = vmul.f32 %v11186_v23, %v9893_v45  ;;  %v4450_v62 = vmul.f32 %v11208_v46, %v9727_v50 }
 0x546   : >> { %11196 = vst [vmem:[#allocation180_spill] sm:$0xff] %v9889_v21  ;;  %11197 = vst [vmem:[#allocation181_spill] sm:$0xff] %v9891_v38  ;;  %v4452_v23 = vmul.f32 %v11208_v46, %v9743_v41  ;;  %v4453_v50 = vmul.f32 %v11208_v46, %v9745_v56 }
 0x547   : >> { %11198 = vst [vmem:[#allocation182_spill] sm:$0xff] %v9893_v45  ;;  %11199 = vst [vmem:[#allocation183_spill] sm:$0xff] %v9921_v39  ;;  %v11218_v39 = vld [vmem:[#allocation103_spill] sm:$0xff] }
 0x548   : >> { %11200 = vst [vmem:[#allocation184_spill] sm:$0xff] %v9925_v30  ;;  %11201 = vst [vmem:[#allocation185_spill] sm:$0xff] %v9929_v44  ;;  %v11215_v44 = vld [vmem:[#allocation102_spill] sm:$0xff] }
 0x549   : >> { %11202 = vst [vmem:[#allocation186_spill] sm:$0xff] %v9933_v51  ;;  %11203 = vst [vmem:[#allocation187_spill] sm:$0xff] %v9937_v27  ;;  %v4451_v27 = vmul.f32 %v11208_v46, %v9729_v7 }
 0x54a   : >> { %11204 = vst [vmem:[#allocation188_spill] sm:$0xff] %v9941_v52  ;;  %11205 = vst [vmem:[#allocation189_spill] sm:$0xff] %v9945_v1  ;;  %v11210_v52 = vld [vmem:[#allocation91_spill] sm:$0xff]  ;;  %v11213_v1 = vld [vmem:[#allocation94_spill] sm:$0xff] }
 0x54b   : >> { %11206 = vst [vmem:[#allocation190_spill] sm:$0xff] %v9949_v61  ;;  %11207 = vst [vmem:[#allocation191_spill] sm:$0xff] %v9953_v55  ;;  %v9961_v16 = vadd.f32 %v11210_v52, %v11209_v11  ;;  %v9965_v51 = vadd.f32 %v11213_v1, %v11212_v35  ;;  %v11216_v61 = vld [vmem:[#allocation96_spill] sm:$0xff]  ;;  %v4454_v55 = vmul.f32 %v11208_v46, %v9747_v19  ;;  %v11219_v11 = vld [vmem:[#allocation95_spill] sm:$0xff] }
 0x54c   : >> { %v9969_v30 = vadd.f32 %v11216_v61, %v11215_v44  ;;  %v9979_v52 = vadd.f32 %v11219_v11, %v11218_v39  ;;  %v4455_v35 = vmul.f32 %v11208_v46, %v9761_v29  ;;  %v4456_v61 = vmul.f32 %v11208_v46, %v9763_v2  ;;  %v11228_v29 = vld [vmem:[#allocation98_spill] sm:$0xff] }
 0x54d   : >> { %11211 = vst [vmem:[#allocation86_spill] sm:$0xff] %v9961_v16  ;;  %11214 = vst [vmem:[#allocation84_spill] sm:$0xff] %v9965_v51  ;;  %v4457_v1 = vmul.f32 %v11208_v46, %v9765_v31  ;;  %v4458_v44 = vmul.f32 %v11208_v46, %v9779_v22  ;;  %v4460_v51 = vmul.f32 %v11208_v46, %v9783_v4  ;;  %v10005_v31 = vld [vmem:[#allocation2 + $0x109] sm:$0xff]  ;;  %v10007_v4 = vld [vmem:[#allocation2 + $0x111] sm:$0xff] }
 0x54e   : >> { %11217 = vst [vmem:[#allocation91_spill] sm:$0xff] %v9969_v30  ;;  %11220 = vst [vmem:[#allocation83_spill] sm:$0xff] %v9979_v52  ;;  %v4459_v30 = vmul.f32 %v11208_v46, %v9781_v42  ;;  %v4461_v39 = vmul.f32 %v11208_v46, %v9797_v57  ;;  %v4462_v11 = vmul.f32 %v11208_v46, %v9799_v26 }
 0x54f   : >> { %v4463_v52 = vmul.f32 %v11208_v46, %v9801_v6  ;;  %v4464_v16 = vmul.f32 %v11208_v46, %v9809_v3  ;;  %v4465_v22 = vmul.f32 %v11208_v46, %v9811_v0  ;;  %v4466_v42 = vmul.f32 %v11208_v46, %v9813_v12  ;;  %11221 = vst [vmem:[#allocation94_spill] sm:$0xff] %v10005_v31 }
 0x550   : >> { %v4467_v57 = vmul.f32 %v11208_v46, %v9823_v37  ;;  %v4468_v26 = vmul.f32 %v11208_v46, %v9825_v10  ;;  %v4469_v6 = vmul.f32 %v11208_v46, %v9827_v58  ;;  %v4470_v3 = vmul.f32 %v11208_v46, %v9845_v13 }
 0x551   : >> { %v4471_v0 = vmul.f32 %v11208_v46, %v9847_v18  ;;  %v4472_v12 = vmul.f32 %v11208_v46, %v9849_v54  ;;  %v4473_v2 = vmul.f32 %v11208_v46, %v9867_v8  ;;  %v4474_v37 = vmul.f32 %v11208_v46, %v9869_v33 }
 0x552   : >> { %v4475_v10 = vmul.f32 %v11208_v46, %v9871_v5  ;;  %v10029_v58 = vmul.f32 %v11208_v46, %v9889_v21  ;;  %v10033_v13 = vmul.f32 %v11208_v46, %v9891_v38  ;;  %v10037_v54 = vmul.f32 %v11208_v46, %v9893_v45  ;;  %v11226_v5 = vld [vmem:[#allocation97_spill] sm:$0xff] }
 0x553   : >> { %v10041_v8 = vmul.f32 %v11208_v46, %v10005_v31  ;;  %v10045_v33 = vmul.f32 %v11208_v46, %v10007_v4  ;;  %v4482_v18 = vadd.f32 %v4450_v62, %v11226_v5  ;;  %v4483_v38 = vadd.f32 %v4451_v27, %v11228_v29 }
 0x554   : >> { %11222 = vst [vmem:[#allocation102_spill] sm:$0xff] %v10029_v58  ;;  %11223 = vst [vmem:[#allocation96_spill] sm:$0xff] %v10033_v13  ;;  %v11227_v58 = vld [vmem:[#allocation90_spill] sm:$0xff]  ;;  %v4484_v13 = vadd.f32 %v4452_v23, %v9817_v59  ;;  %v4485_v45 = vadd.f32 %v4453_v50, %v9821_v47  ;;  %v4487_v31 = vadd.f32 %v4455_v35, %v9835_v36  ;;  %v11242_v50 = vld [vmem:[#allocation87_spill] sm:$0xff] }
 0x555   : >> { %11224 = vst [vmem:[#allocation103_spill] sm:$0xff] %v10037_v54  ;;  %11225 = vst [vmem:[#allocation95_spill] sm:$0xff] %v10041_v8  ;;  %v4522_v21 = vmul.f32 %v11227_v58, %v9743_v41  ;;  %v4486_v54 = vadd.f32 %v4454_v55, %v9831_v63  ;;  %v4488_v8 = vadd.f32 %v4456_v61, %v9839_v60  ;;  %v11237_v60 = vld [vmem:[#allocation125_spill] sm:$0xff]  ;;  %v11244_v35 = vld [vmem:[#allocation140_spill] sm:$0xff] }
 0x556   : >> { %v10057_v46 = vadd.f32 %v4457_v1, %v9843_v15  ;;  %v10060_v5 = vadd.f32 %v4458_v44, %v9853_v20  ;;  %v10063_v62 = vadd.f32 %v4459_v30, %v9857_v43  ;;  %v10066_v27 = vadd.f32 %v4460_v51, %v9861_v32  ;;  %v11240_v43 = vld [vmem:[#allocation105_spill] sm:$0xff] }
 0x557   : >> { %v10069_v41 = vadd.f32 %v4461_v39, %v9865_v53  ;;  %v4521_v55 = vmul.f32 %v11227_v58, %v9729_v7  ;;  %v10074_v29 = vadd.f32 %v4462_v11, %v9875_v24  ;;  %v4523_v59 = vmul.f32 %v11227_v58, %v9745_v56  ;;  %v11245_v39 = vld [vmem:[#allocation51_spill] sm:$0xff] }
 0x558   : >> { %v4524_v47 = vmul.f32 %v11227_v58, %v9747_v19  ;;  %v4554_v30 = vadd.f32 %v4522_v21, %v4482_v18  ;;  %v10081_v63 = vadd.f32 %v4463_v52, %v9879_v34  ;;  %v10084_v32 = vadd.f32 %v4464_v16, %v9883_v17  ;;  %v11232_v34 = vld [vmem:[#allocation183_spill] sm:$0xff]  ;;  %v7390_v18 = vld [vmem:[#allocation2 + $0x38] sm:$0xff] }
 0x559   : >> { %v10087_v53 = vadd.f32 %v4465_v22, %v9887_v25  ;;  %v10090_v51 = vadd.f32 %v4466_v42, %v9897_v9  ;;  %v10093_v7 = vadd.f32 %v4467_v57, %v9901_v48  ;;  %v10096_v56 = vadd.f32 %v4468_v26, %v9905_v49  ;;  %v11229_v22 = vld [vmem:[#allocation100_spill] sm:$0xff]  ;;  %v11230_v9 = vld [vmem:[#allocation123_spill] sm:$0xff]  ;;  %v11231_v48 = vld [vmem:[#allocation101_spill] sm:$0xff] }
 0x55a   : >> { %v10099_v19 = vadd.f32 %v4469_v6, %v9909_v14  ;;  %v10102_v21 = vadd.f32 %v4470_v3, %v9913_v28  ;;  %v10105_v16 = vadd.f32 %v4471_v0, %v9917_v40  ;;  %v4525_v25 = vmul.f32 %v11227_v58, %v11229_v22  ;;  %v11233_v57 = vld [vmem:[#allocation52_spill] sm:$0xff]  ;;  %v11235_v40 = vld [vmem:[#allocation185_spill] sm:$0xff]  ;;  %v11236_v0 = vld [vmem:[#allocation186_spill] sm:$0xff] }
 0x55b   : >> { %v4526_v42 = vmul.f32 %v11227_v58, %v11230_v9  ;;  %v4553_v17 = vadd.f32 %v4521_v55, %v11231_v48  ;;  %v10113_v49 = vadd.f32 %v4472_v12, %v11232_v34  ;;  %v4555_v24 = vadd.f32 %v4523_v59, %v4483_v38  ;;  %v11234_v28 = vld [vmem:[#allocation184_spill] sm:$0xff]  ;;  %v10130_v38 = vld [vmem:[%s10981_s23] ss:$0 sm:$0xff]  ;;  %v11249_v34 = vld [vmem:[#allocation142_spill] sm:$0xff] }
 0x55c   : >> { %v4556_v14 = vadd.f32 %v4524_v47, %v4484_v13  ;;  %v4586_v26 = vmul.f32 %v4554_v30, %v11233_v57  ;;  %v10117_v6 = vadd.f32 %v4473_v2, %v11234_v28  ;;  %v10120_v3 = vadd.f32 %v4474_v37, %v11235_v40  ;;  %v11238_v13 = vld [vmem:[#allocation154_spill] sm:$0xff]  ;;  %v11241_v37 = vld [vmem:[#allocation84_spill] sm:$0xff]  ;;  %v11246_v55 = vld [vmem:[#allocation53_spill] sm:$0xff] }
 0x55d   : >> { %v10123_v36 = vadd.f32 %v4475_v10, %v11236_v0  ;;  %v4527_v15 = vmul.f32 %v11227_v58, %v11237_v60  ;;  %v4628_v12 = vadd.f32 %v10130_v38, %v7390_v18  ;;  %v11239_v2 = vld [vmem:[#allocation86_spill] sm:$0xff]  ;;  %v4689_v23 = vadd.f32 %v11241_v37, %v11240_v43  ;;  %v11243_v10 = vld [vmem:[#allocation91_spill] sm:$0xff]  ;;  %v11248_v22 = vld [vmem:[#allocation104_spill] sm:$0xff] }
 0x55e   : >> { %v4688_v20 = vadd.f32 %v11239_v2, %v11238_v13  ;;  %v4690_v52 = vadd.f32 %v11243_v10, %v11242_v50  ;;  %v10142_v58 = vld [vmem:[%s10653_s7 + $0x8] ss:$0 sm:$0xff]  ;;  %v4557_v1 = vadd.f32 %v4525_v25, %v4485_v45  ;;  %v4558_v44 = vadd.f32 %v4526_v42, %v4486_v54  ;;  %v11250_v28 = vld [vmem:[#allocation144_spill] sm:$0xff]  ;;  %v7393_v0 = vld [vmem:[#allocation2 + $0x40] sm:$0xff] }
 0x55f   : >> { %v4528_v61 = vmul.f32 %v10142_v58, %v11244_v35  ;;  %v4585_v11 = vmul.f32 %v4553_v17, %v11245_v39  ;;  %v4587_v59 = vmul.f32 %v4555_v24, %v11246_v55  ;;  %v11247_v47 = vld [vmem:[#allocation54_spill] sm:$0xff]  ;;  %v4660_v9 = vadd.f32 %v4628_v12, %v11248_v22  ;;  %v11252_v17 = vld [vmem:[#allocation83_spill] sm:$0xff]  ;;  %v11255_v37 = vld [vmem:[#allocation56_spill] sm:$0xff] }
 0x560   : >> { %v4588_v30 = vmul.f32 %v4556_v14, %v11247_v47  ;;  %v10150_v48 = vadd.f32 %v4689_v23, %v4586_v26  ;;  %v4529_v57 = vmul.f32 %v10142_v58, %v11249_v34  ;;  %v4530_v40 = vmul.f32 %v10142_v58, %v11250_v28  ;;  %v7394_v54 = vld [vmem:[#allocation2 + $0x48] sm:$0xff]  ;;  %v11253_v14 = vld [vmem:[#allocation108_spill] sm:$0xff]  ;;  %v11254_v2 = vld [vmem:[#allocation55_spill] sm:$0xff] }
 0x561   : >> { %v4629_v45 = vadd.f32 %v7393_v0, %v10130_v38  ;;  %v4630_v25 = vadd.f32 %v7394_v54, %v10130_v38  ;;  %v11251_v42 = vld [vmem:[#allocation106_spill] sm:$0xff]  ;;  %v4692_v60 = vadd.f32 %v4660_v9, %v11253_v14  ;;  %v10161_v18 = vadd.f32 %v4688_v20, %v4585_v11  ;;  %v11256_v50 = vld [vmem:[#allocation107_spill] sm:$0xff]  ;;  %v11258_v22 = vld [vmem:[#allocation164_spill] sm:$0xff] }
 0x562   : >> { %v4691_v24 = vadd.f32 %v11252_v17, %v11251_v42  ;;  %v10163_v26 = vadd.f32 %v4690_v52, %v4587_v59  ;;  %v4559_v12 = vadd.f32 %v4527_v15, %v4487_v31  ;;  %v4560_v13 = vadd.f32 %v4528_v61, %v4488_v8  ;;  %v11257_v35 = vld [vmem:[#allocation111_spill] sm:$0xff]  ;;  %v11259_v52 = vld [vmem:[#allocation165_spill] sm:$0xff]  ;;  %v7396_v61 = vld [vmem:[#allocation2 + $0x58] sm:$0xff] }
 0x563   : >> { %v4589_v43 = vmul.f32 %v4557_v1, %v11254_v2  ;;  %v4590_v23 = vmul.f32 %v4558_v44, %v11255_v37  ;;  %v4661_v10 = vadd.f32 %v4629_v45, %v11256_v50  ;;  %v4662_v39 = vadd.f32 %v4630_v25, %v11257_v35  ;;  %v7395_v8 = vld [vmem:[#allocation2 + $0x50] sm:$0xff]  ;;  %v11260_v44 = vld [vmem:[#allocation110_spill] sm:$0xff]  ;;  %v11261_v59 = vld [vmem:[#allocation112_spill] sm:$0xff] }
 0x564   : >> { %v10169_v55 = vadd.f32 %v4691_v24, %v4588_v30  ;;  %v4752_v47 = vadd.f32 %v10150_v48, %v10161_v18  ;;  %v4531_v20 = vmul.f32 %v10142_v58, %v11258_v22  ;;  %v4532_v31 = vmul.f32 %v10142_v58, %v11259_v52  ;;  %v11262_v45 = vld [vmem:[#allocation57_spill] sm:$0xff]  ;;  %v11263_v25 = vld [vmem:[#allocation58_spill] sm:$0xff]  ;;  %v11265_v14 = vld [vmem:[#allocation116_spill] sm:$0xff] }
 0x565   : >> { %v4631_v15 = vadd.f32 %v7395_v8, %v10130_v38  ;;  %v4632_v1 = vadd.f32 %v7396_v61, %v10130_v38  ;;  %v4693_v11 = vadd.f32 %v4661_v10, %v11260_v44  ;;  %v4694_v30 = vadd.f32 %v4662_v39, %v11261_v59  ;;  %v11264_v17 = vld [vmem:[#allocation109_spill] sm:$0xff]  ;;  %v11269_v39 = vld [vmem:[#allocation114_spill] sm:$0xff] }
 0x566   : >> { %v10181_v9 = vadd.f32 %v4692_v60, %v4589_v43  ;;  %v4753_v34 = vadd.f32 %v4752_v47, %v10163_v26  ;;  %v4561_v28 = vadd.f32 %v4529_v57, %v10057_v46  ;;  %v4562_v0 = vadd.f32 %v4530_v40, %v10060_v5  ;;  %v11266_v60 = vld [vmem:[#allocation166_spill] sm:$0xff]  ;;  %v11267_v10 = vld [vmem:[#allocation169_spill] sm:$0xff] }
 0x567   : >> { %v4591_v54 = vmul.f32 %v4559_v12, %v11262_v45  ;;  %v4592_v42 = vmul.f32 %v4560_v13, %v11263_v25  ;;  %v4663_v24 = vadd.f32 %v4631_v15, %v11264_v17  ;;  %v4664_v2 = vadd.f32 %v4632_v1, %v11265_v14  ;;  %v7397_v57 = vld [vmem:[#allocation2 + $0x60] sm:$0xff]  ;;  %v7398_v40 = vld [vmem:[#allocation2 + $0x68] sm:$0xff]  ;;  %v11270_v15 = vld [vmem:[#allocation59_spill] sm:$0xff] }
 0x568   : >> { %v10190_v37 = vadd.f32 %v4693_v11, %v4590_v23  ;;  %v4754_v50 = vadd.f32 %v4753_v34, %v10169_v55  ;;  %v4533_v43 = vmul.f32 %v10142_v58, %v11266_v60  ;;  %v4534_v46 = vmul.f32 %v10142_v58, %v11267_v10  ;;  %v11268_v13 = vld [vmem:[#allocation113_spill] sm:$0xff]  ;;  %v11271_v1 = vld [vmem:[#allocation60_spill] sm:$0xff]  ;;  %v11272_v11 = vld [vmem:[#allocation115_spill] sm:$0xff] }
 0x569   : >> { %v4633_v5 = vadd.f32 %v7397_v57, %v10130_v38  ;;  %v4634_v12 = vadd.f32 %v7398_v40, %v10130_v38  ;;  %v4695_v35 = vadd.f32 %v4663_v24, %v11268_v13  ;;  %v4696_v47 = vadd.f32 %v4664_v2, %v11269_v39  ;;  %v11273_v34 = vld [vmem:[#allocation121_spill] sm:$0xff]  ;;  %v11275_v24 = vld [vmem:[#allocation171_spill] sm:$0xff] }
 0x56a   : >> { %v10201_v23 = vadd.f32 %v4694_v30, %v4591_v54  ;;  %v4755_v22 = vadd.f32 %v4754_v50, %v10181_v9  ;;  %v4563_v52 = vadd.f32 %v4531_v20, %v10063_v62  ;;  %v4564_v8 = vadd.f32 %v4532_v31, %v10066_v27  ;;  %v11274_v30 = vld [vmem:[#allocation170_spill] sm:$0xff]  ;;  %v7399_v20 = vld [vmem:[#allocation2 + $0x70] sm:$0xff]  ;;  %v7400_v31 = vld [vmem:[#allocation2 + $0x78] sm:$0xff] }
 0x56b   : >> { %v4593_v61 = vmul.f32 %v4561_v28, %v11270_v15  ;;  %v4594_v44 = vmul.f32 %v4562_v0, %v11271_v1  ;;  %v4665_v59 = vadd.f32 %v4633_v5, %v11272_v11  ;;  %v4666_v45 = vadd.f32 %v4634_v12, %v11273_v34  ;;  %v11276_v0 = vld [vmem:[#allocation117_spill] sm:$0xff]  ;;  %v11277_v2 = vld [vmem:[#allocation119_spill] sm:$0xff]  ;;  %v11279_v12 = vld [vmem:[#allocation62_spill] sm:$0xff] }
 0x56c   : >> { %v10210_v25 = vadd.f32 %v4695_v35, %v4592_v42  ;;  %v4756_v17 = vadd.f32 %v4755_v22, %v10190_v37  ;;  %v4535_v54 = vmul.f32 %v10142_v58, %v11274_v30  ;;  %v4536_v62 = vmul.f32 %v10142_v58, %v11275_v24  ;;  %v11278_v5 = vld [vmem:[#allocation61_spill] sm:$0xff]  ;;  %v11280_v35 = vld [vmem:[#allocation118_spill] sm:$0xff] }
 0x56d   : >> { %v4635_v27 = vadd.f32 %v7399_v20, %v10130_v38  ;;  %v4636_v28 = vadd.f32 %v7400_v31, %v10130_v38  ;;  %v4697_v14 = vadd.f32 %v4665_v59, %v11276_v0  ;;  %v4698_v50 = vadd.f32 %v4666_v45, %v11277_v2  ;;  %v11281_v22 = vld [vmem:[#allocation126_spill] sm:$0xff]  ;;  %v11283_v59 = vld [vmem:[#allocation172_spill] sm:$0xff] }
 0x56e   : >> { %v10221_v42 = vadd.f32 %v4696_v47, %v4593_v61  ;;  %v4757_v60 = vadd.f32 %v4756_v17, %v10201_v23  ;;  %v4565_v10 = vadd.f32 %v4533_v43, %v10069_v41  ;;  %v4566_v57 = vadd.f32 %v4534_v46, %v10074_v29  ;;  %v11282_v47 = vld [vmem:[#allocation85_spill] sm:$0xff]  ;;  %v7402_v46 = vld [vmem:[#allocation2 + $0x88] sm:$0xff] }
 0x56f   : >> { %v4595_v40 = vmul.f32 %v4563_v52, %v11278_v5  ;;  %v4596_v13 = vmul.f32 %v4564_v8, %v11279_v12  ;;  %v4667_v39 = vadd.f32 %v4635_v27, %v11280_v35  ;;  %v4668_v15 = vadd.f32 %v4636_v28, %v11281_v22  ;;  %v7401_v43 = vld [vmem:[#allocation2 + $0x80] sm:$0xff]  ;;  %v11284_v8 = vld [vmem:[#allocation120_spill] sm:$0xff]  ;;  %v11285_v45 = vld [vmem:[#allocation122_spill] sm:$0xff] }
 0x570   : >> { %v10230_v1 = vadd.f32 %v4697_v14, %v4594_v44  ;;  %v4758_v11 = vadd.f32 %v4757_v60, %v10210_v25  ;;  %v4537_v61 = vmul.f32 %v10142_v58, %v11282_v47  ;;  %v4538_v41 = vmul.f32 %v10142_v58, %v11283_v59  ;;  %v11286_v27 = vld [vmem:[#allocation63_spill] sm:$0xff]  ;;  %v11287_v28 = vld [vmem:[#allocation64_spill] sm:$0xff]  ;;  %v11289_v60 = vld [vmem:[#allocation133_spill] sm:$0xff] }
 0x571   : >> { %v4637_v29 = vadd.f32 %v7401_v43, %v10130_v38  ;;  %v4638_v52 = vadd.f32 %v7402_v46, %v10130_v38  ;;  %v4699_v34 = vadd.f32 %v4667_v39, %v11284_v8  ;;  %v4700_v17 = vadd.f32 %v4668_v15, %v11285_v45  ;;  %v11288_v14 = vld [vmem:[#allocation124_spill] sm:$0xff]  ;;  %v11291_v39 = vld [vmem:[#allocation174_spill] sm:$0xff] }
 0x572   : >> { %v10241_v44 = vadd.f32 %v4698_v50, %v4595_v40  ;;  %v4759_v30 = vadd.f32 %v4758_v11, %v10221_v42  ;;  %v4567_v24 = vadd.f32 %v4535_v54, %v10081_v63  ;;  %v4568_v20 = vadd.f32 %v4536_v62, %v10084_v32  ;;  %v11290_v50 = vld [vmem:[#allocation173_spill] sm:$0xff]  ;;  %v7403_v54 = vld [vmem:[#allocation2 + $0x90] sm:$0xff]  ;;  %v7404_v62 = vld [vmem:[#allocation2 + $0x98] sm:$0xff] }
 0x573   : >> { %v4597_v31 = vmul.f32 %v4565_v10, %v11286_v27  ;;  %v4598_v0 = vmul.f32 %v4566_v57, %v11287_v28  ;;  %v4669_v2 = vadd.f32 %v4637_v29, %v11288_v14  ;;  %v4670_v5 = vadd.f32 %v4638_v52, %v11289_v60  ;;  %v11292_v57 = vld [vmem:[#allocation127_spill] sm:$0xff]  ;;  %v11293_v15 = vld [vmem:[#allocation130_spill] sm:$0xff]  ;;  %v11294_v29 = vld [vmem:[#allocation65_spill] sm:$0xff] }
 0x574   : >> { %v10250_v12 = vadd.f32 %v4699_v34, %v4596_v13  ;;  %v4760_v35 = vadd.f32 %v4759_v30, %v10230_v1  ;;  %v4539_v40 = vmul.f32 %v10142_v58, %v11290_v50  ;;  %v4540_v63 = vmul.f32 %v10142_v58, %v11291_v39  ;;  %v11295_v52 = vld [vmem:[#allocation66_spill] sm:$0xff]  ;;  %v11296_v34 = vld [vmem:[#allocation129_spill] sm:$0xff] }
 0x575   : >> { %v4639_v32 = vadd.f32 %v7403_v54, %v10130_v38  ;;  %v4640_v10 = vadd.f32 %v7404_v62, %v10130_v38  ;;  %v4701_v22 = vadd.f32 %v4669_v2, %v11292_v57  ;;  %v4702_v11 = vadd.f32 %v4670_v5, %v11293_v15  ;;  %v11297_v30 = vld [vmem:[#allocation138_spill] sm:$0xff]  ;;  %v11299_v2 = vld [vmem:[#allocation176_spill] sm:$0xff] }
 0x576   : >> { %v10261_v13 = vadd.f32 %v4700_v17, %v4597_v31  ;;  %v4761_v47 = vadd.f32 %v4760_v35, %v10241_v44  ;;  %v4569_v59 = vadd.f32 %v4537_v61, %v10087_v53  ;;  %v4570_v43 = vadd.f32 %v4538_v41, %v10090_v51  ;;  %v11298_v17 = vld [vmem:[#allocation175_spill] sm:$0xff]  ;;  %v7405_v61 = vld [vmem:[#allocation2 + $0xa0] sm:$0xff]  ;;  %v7406_v41 = vld [vmem:[#allocation2 + $0xa8] sm:$0xff] }
 0x577   : >> { %v4599_v46 = vmul.f32 %v4567_v24, %v11294_v29  ;;  %v4600_v8 = vmul.f32 %v4568_v20, %v11295_v52  ;;  %v4671_v45 = vadd.f32 %v4639_v32, %v11296_v34  ;;  %v4672_v27 = vadd.f32 %v4640_v10, %v11297_v30  ;;  %v11300_v20 = vld [vmem:[#allocation131_spill] sm:$0xff]  ;;  %v11301_v5 = vld [vmem:[#allocation134_spill] sm:$0xff]  ;;  %v11303_v10 = vld [vmem:[#allocation68_spill] sm:$0xff] }
 0x578   : >> { %v10270_v28 = vadd.f32 %v4701_v22, %v4598_v0  ;;  %v4762_v14 = vadd.f32 %v4761_v47, %v10250_v12  ;;  %v4541_v31 = vmul.f32 %v10142_v58, %v11298_v17  ;;  %v4542_v53 = vmul.f32 %v10142_v58, %v11299_v2  ;;  %v11302_v32 = vld [vmem:[#allocation67_spill] sm:$0xff]  ;;  %v11304_v22 = vld [vmem:[#allocation136_spill] sm:$0xff] }
 0x579   : >> { %v4641_v51 = vadd.f32 %v7405_v61, %v10130_v38  ;;  %v4642_v24 = vadd.f32 %v7406_v41, %v10130_v38  ;;  %v4703_v60 = vadd.f32 %v4671_v45, %v11300_v20  ;;  %v4704_v35 = vadd.f32 %v4672_v27, %v11301_v5  ;;  %v11305_v47 = vld [vmem:[#allocation143_spill] sm:$0xff]  ;;  %v11307_v45 = vld [vmem:[#allocation178_spill] sm:$0xff] }
 0x57a   : >> { %v10281_v0 = vadd.f32 %v4702_v11, %v4599_v46  ;;  %v4763_v50 = vadd.f32 %v4762_v14, %v10261_v13  ;;  %v4571_v39 = vadd.f32 %v4539_v40, %v10093_v7  ;;  %v4572_v54 = vadd.f32 %v4540_v63, %v10096_v56  ;;  %v11306_v11 = vld [vmem:[#allocation177_spill] sm:$0xff]  ;;  %v7407_v40 = vld [vmem:[#allocation2 + $0xb0] sm:$0xff]  ;;  %v7408_v63 = vld [vmem:[#allocation2 + $0xb8] sm:$0xff] }
 0x57b   : >> { %v4601_v62 = vmul.f32 %v4569_v59, %v11302_v32  ;;  %v4602_v57 = vmul.f32 %v4570_v43, %v11303_v10  ;;  %v4673_v15 = vadd.f32 %v4641_v51, %v11304_v22  ;;  %v4674_v29 = vadd.f32 %v4642_v24, %v11305_v47  ;;  %v11308_v43 = vld [vmem:[#allocation139_spill] sm:$0xff]  ;;  %v11310_v51 = vld [vmem:[#allocation69_spill] sm:$0xff]  ;;  %v11311_v24 = vld [vmem:[#allocation70_spill] sm:$0xff] }
 0x57c   : >> { %v10290_v52 = vadd.f32 %v4703_v60, %v4600_v8  ;;  %v4764_v34 = vadd.f32 %v4763_v50, %v10270_v28  ;;  %v4543_v46 = vmul.f32 %v10142_v58, %v11306_v11  ;;  %v4544_v7 = vmul.f32 %v10142_v58, %v11307_v45  ;;  %v11309_v27 = vld [vmem:[#allocation99_spill] sm:$0xff]  ;;  %v11312_v60 = vld [vmem:[#allocation141_spill] sm:$0xff] }
 0x57d   : >> { %v4643_v56 = vadd.f32 %v7407_v40, %v10130_v38  ;;  %v4644_v59 = vadd.f32 %v7408_v63, %v10130_v38  ;;  %v4705_v30 = vadd.f32 %v4673_v15, %v11308_v43  ;;  %v4706_v14 = vadd.f32 %v4674_v29, %v11309_v27  ;;  %v11313_v50 = vld [vmem:[#allocation147_spill] sm:$0xff]  ;;  %v11315_v15 = vld [vmem:[#allocation180_spill] sm:$0xff] }
 0x57e   : >> { %v10301_v8 = vadd.f32 %v4704_v35, %v4601_v62  ;;  %v4765_v17 = vadd.f32 %v4764_v34, %v10281_v0  ;;  %v4573_v2 = vadd.f32 %v4541_v31, %v10099_v19  ;;  %v4574_v61 = vadd.f32 %v4542_v53, %v10102_v21  ;;  %v11314_v35 = vld [vmem:[#allocation179_spill] sm:$0xff]  ;;  %v7409_v31 = vld [vmem:[#allocation2 + $0xc0] sm:$0xff]  ;;  %v7410_v53 = vld [vmem:[#allocation2 + $0xc8] sm:$0xff] }
 0x57f   : >> { %v4603_v41 = vmul.f32 %v4571_v39, %v11310_v51  ;;  %v4604_v20 = vmul.f32 %v4572_v54, %v11311_v24  ;;  %v4675_v5 = vadd.f32 %v4643_v56, %v11312_v60  ;;  %v4676_v32 = vadd.f32 %v4644_v59, %v11313_v50  ;;  %v11316_v54 = vld [vmem:[#allocation128_spill] sm:$0xff]  ;;  %v11318_v56 = vld [vmem:[#allocation71_spill] sm:$0xff] }
 0x580   : >> { %v10310_v10 = vadd.f32 %v4705_v30, %v4602_v57  ;;  %v4766_v22 = vadd.f32 %v4765_v17, %v10290_v52  ;;  %v4545_v62 = vmul.f32 %v10142_v58, %v11314_v35  ;;  %v4546_v19 = vmul.f32 %v10142_v58, %v11315_v15  ;;  %v11317_v29 = vld [vmem:[#allocation132_spill] sm:$0xff]  ;;  %v11320_v30 = vld [vmem:[#allocation145_spill] sm:$0xff]  ;;  %v11321_v17 = vld [vmem:[#allocation151_spill] sm:$0xff] }
 0x581   : >> { %v4645_v21 = vadd.f32 %v7409_v31, %v10130_v38  ;;  %v4646_v39 = vadd.f32 %v7410_v53, %v10130_v38  ;;  %v4707_v47 = vadd.f32 %v4675_v5, %v11316_v54  ;;  %v4708_v34 = vadd.f32 %v4676_v32, %v11317_v29  ;;  %v11319_v59 = vld [vmem:[#allocation72_spill] sm:$0xff]  ;;  %v11323_v5 = vld [vmem:[#allocation182_spill] sm:$0xff]  ;;  %v11325_v32 = vld [vmem:[#allocation137_spill] sm:$0xff] }
 0x582   : >> { %v10321_v57 = vadd.f32 %v4706_v14, %v4603_v41  ;;  %v4767_v11 = vadd.f32 %v4766_v22, %v10301_v8  ;;  %v4575_v45 = vadd.f32 %v4543_v46, %v10105_v16  ;;  %v4576_v40 = vadd.f32 %v4544_v7, %v10113_v49  ;;  %v11322_v14 = vld [vmem:[#allocation181_spill] sm:$0xff]  ;;  %v7411_v46 = vld [vmem:[#allocation2 + $0xd0] sm:$0xff]  ;;  %v7412_v7 = vld [vmem:[#allocation2 + $0xd8] sm:$0xff] }
 0x583   : >> { %v4605_v63 = vmul.f32 %v4573_v2, %v11318_v56  ;;  %v4606_v43 = vmul.f32 %v4574_v61, %v11319_v59  ;;  %v4677_v27 = vadd.f32 %v4645_v21, %v11320_v30  ;;  %v4678_v51 = vadd.f32 %v4646_v39, %v11321_v17  ;;  %v11324_v61 = vld [vmem:[#allocation135_spill] sm:$0xff]  ;;  %v11326_v21 = vld [vmem:[#allocation73_spill] sm:$0xff]  ;;  %v11327_v39 = vld [vmem:[#allocation74_spill] sm:$0xff] }
 0x584   : >> { %v10330_v24 = vadd.f32 %v4707_v47, %v4604_v20  ;;  %v4768_v60 = vadd.f32 %v4767_v11, %v10310_v10  ;;  %v4547_v41 = vmul.f32 %v10142_v58, %v11322_v14  ;;  %v4548_v16 = vmul.f32 %v10142_v58, %v11323_v5  ;;  %v11328_v47 = vld [vmem:[#allocation148_spill] sm:$0xff]  ;;  %v11329_v11 = vld [vmem:[#allocation155_spill] sm:$0xff]  ;;  %v11332_v17 = vld [vmem:[#allocation94_spill] sm:$0xff] }
 0x585   : >> { %v4647_v49 = vadd.f32 %v7411_v46, %v10130_v38  ;;  %v4648_v2 = vadd.f32 %v7412_v7, %v10130_v38  ;;  %v4709_v50 = vadd.f32 %v4677_v27, %v11324_v61  ;;  %v4710_v22 = vadd.f32 %v4678_v51, %v11325_v32  ;;  %v11335_v7 = vld [vmem:[#allocation75_spill] sm:$0xff]  ;;  %v11336_v61 = vld [vmem:[#allocation76_spill] sm:$0xff] }
 0x586   : >> { %v10341_v20 = vadd.f32 %v4708_v34, %v4605_v63  ;;  %v4769_v35 = vadd.f32 %v4768_v60, %v10321_v57  ;;  %v4577_v15 = vadd.f32 %v4545_v62, %v10117_v6  ;;  %v4578_v31 = vadd.f32 %v4546_v19, %v10120_v3  ;;  %v11330_v34 = vld [vmem:[#allocation187_spill] sm:$0xff]  ;;  %v11331_v63 = vld [vmem:[#allocation102_spill] sm:$0xff]  ;;  %v7413_v62 = vld [vmem:[#allocation2 + $0xe0] sm:$0xff] }
 0x587   : >> { %v4607_v53 = vmul.f32 %v4575_v45, %v11326_v21  ;;  %v4608_v54 = vmul.f32 %v4576_v40, %v11327_v39  ;;  %v4679_v29 = vadd.f32 %v4647_v49, %v11328_v47  ;;  %v4680_v56 = vadd.f32 %v4648_v2, %v11329_v11  ;;  %v7414_v19 = vld [vmem:[#allocation2 + $0xe8] sm:$0xff]  ;;  %v11334_v60 = vld [vmem:[#allocation89_spill] sm:$0xff]  ;;  %v11337_v32 = vld [vmem:[#allocation152_spill] sm:$0xff] }
 0x588   : >> { %v10350_v59 = vadd.f32 %v4709_v50, %v4606_v43  ;;  %v4770_v30 = vadd.f32 %v4769_v35, %v10330_v24  ;;  %v4508_v27 = vadd.f32 %v11331_v63, %v11330_v34  ;;  %v4549_v6 = vmul.f32 %v10142_v58, %v11332_v17  ;;  %v11333_v40 = vld [vmem:[#allocation146_spill] sm:$0xff]  ;;  %v11338_v21 = vld [vmem:[#allocation157_spill] sm:$0xff]  ;;  %v11339_v11 = vld [vmem:[#allocation188_spill] sm:$0xff] }
 0x589   : >> { %v4649_v3 = vadd.f32 %v7413_v62, %v10130_v38  ;;  %v4650_v45 = vadd.f32 %v7414_v19, %v10130_v38  ;;  %v4711_v51 = vadd.f32 %v4679_v29, %v11333_v40  ;;  %v4712_v14 = vadd.f32 %v4680_v56, %v11334_v60  ;;  %v11341_v56 = vld [vmem:[#allocation189_spill] sm:$0xff] }
 0x58a   : >> { %v10361_v43 = vadd.f32 %v4710_v22, %v4607_v53  ;;  %v4771_v5 = vadd.f32 %v4770_v30, %v10341_v20  ;;  %v4579_v46 = vadd.f32 %v4547_v41, %v10123_v36  ;;  %v4580_v49 = vadd.f32 %v4548_v16, %v4508_v27  ;;  %v11340_v22 = vld [vmem:[#allocation96_spill] sm:$0xff]  ;;  %v11342_v30 = vld [vmem:[#allocation103_spill] sm:$0xff] }
 0x58b   : >> { %v4609_v2 = vmul.f32 %v4577_v15, %v11335_v7  ;;  %v4610_v50 = vmul.f32 %v4578_v31, %v11336_v61  ;;  %v4681_v35 = vadd.f32 %v4649_v3, %v11337_v32  ;;  %v4682_v39 = vadd.f32 %v4650_v45, %v11338_v21  ;;  %v7415_v36 = vld [vmem:[#allocation2 + $0xf0] sm:$0xff]  ;;  %v7416_v16 = vld [vmem:[#allocation2 + $0xf8] sm:$0xff]  ;;  %v11343_v31 = vld [vmem:[#allocation162_spill] sm:$0xff] }
 0x58c   : >> { %v10369_v47 = vadd.f32 %v4711_v51, %v4608_v54  ;;  %v4772_v29 = vadd.f32 %v4771_v5, %v10350_v59  ;;  %v4509_v53 = vadd.f32 %v11340_v22, %v11339_v11  ;;  %v4510_v34 = vadd.f32 %v11342_v30, %v11341_v56  ;;  %v11344_v27 = vld [vmem:[#allocation163_spill] sm:$0xff]  ;;  %v11345_v45 = vld [vmem:[#allocation77_spill] sm:$0xff]  ;;  %v11346_v51 = vld [vmem:[#allocation78_spill] sm:$0xff] }
 0x58d   : >> { %v4651_v41 = vadd.f32 %v7415_v36, %v10130_v38  ;;  %v4652_v15 = vadd.f32 %v7416_v16, %v10130_v38  ;;  %v4713_v63 = vadd.f32 %v4681_v35, %v11343_v31  ;;  %v4714_v17 = vadd.f32 %v4682_v39, %v11344_v27  ;;  %v11347_v5 = vld [vmem:[#allocation156_spill] sm:$0xff]  ;;  %v11348_v61 = vld [vmem:[#allocation159_spill] sm:$0xff]  ;;  %v11355_v36 = vld [vmem:[#allocation158_spill] sm:$0xff] }
 0x58e   : >> { %v10380_v54 = vadd.f32 %v4712_v14, %v4609_v2  ;;  %v4773_v62 = vadd.f32 %v4772_v29, %v10361_v43  ;;  %v4550_v3 = vmul.f32 %v10142_v58, %v10007_v4  ;;  %v4581_v19 = vadd.f32 %v4549_v6, %v4509_v53  ;;  %v11349_v14 = vld [vmem:[#allocation48_spill] sm:$0xff]  ;;  %v11350_v2 = vld [vmem:[#allocation149_spill] sm:$0xff]  ;;  %v11351_v29 = vld [vmem:[#allocation190_spill] sm:$0xff] }
 0x58f   : >> { %v4611_v40 = vmul.f32 %v4579_v46, %v11345_v45  ;;  %v4612_v60 = vmul.f32 %v4580_v49, %v11346_v51  ;;  %v4683_v7 = vadd.f32 %v4651_v41, %v11347_v5  ;;  %v4684_v32 = vadd.f32 %v4652_v15, %v11348_v61  ;;  %v11352_v11 = vld [vmem:[#allocation95_spill] sm:$0xff]  ;;  %v7417_v58 = vld [vmem:[#allocation2 + $0x100] sm:$0xff]  ;;  %v11354_v53 = vld [vmem:[#allocation168_spill] sm:$0xff] }
 0x590   : >> { %v10389_v21 = vadd.f32 %v4713_v63, %v4610_v50  ;;  %v4774_v35 = vadd.f32 %v4773_v62, %v10369_v47  ;;  %v4362_v39 = vmul.f32 %v11350_v2, %v11349_v14  ;;  %v4511_v22 = vadd.f32 %v11352_v11, %v11351_v29  ;;  %v11353_v46 = vld [vmem:[#allocation167_spill] sm:$0xff]  ;;  %v11356_v41 = vld [vmem:[#allocation88_spill] sm:$0xff]  ;;  %v11357_v15 = vld [vmem:[#allocation49_spill] sm:$0xff] }
 0x591   : >> { %v4582_v4 = vadd.f32 %v4550_v3, %v4510_v34  ;;  %v4653_v6 = vadd.f32 %v7417_v58, %v10130_v38  ;;  %v4715_v49 = vadd.f32 %v4683_v7, %v11353_v46  ;;  %v4716_v56 = vadd.f32 %v4684_v32, %v11354_v53  ;;  %v11358_v31 = vld [vmem:[#allocation150_spill] sm:$0xff]  ;;  %v11359_v27 = vld [vmem:[#allocation191_spill] sm:$0xff]  ;;  %v11361_v5 = vld [vmem:[#allocation160_spill] sm:$0xff] }
 0x592   : >> { %v10399_v30 = vadd.f32 %v4714_v17, %v4611_v40  ;;  %v4775_v50 = vadd.f32 %v4774_v35, %v10380_v54  ;;  %v4113_v16 = vadd.f32 %v11356_v41, %v11355_v36  ;;  %v4363_v63 = vmul.f32 %v11358_v31, %v11357_v15  ;;  %v11360_v62 = vld [vmem:[#allocation79_spill] sm:$0xff]  ;;  %v7418_v45 = vld [vmem:[#allocation2 + $0x108] sm:$0xff]  ;;  %v11363_v32 = vld [vmem:[#allocation153_spill] sm:$0xff] }
 0x593   : >> { %v4512_v34 = vadd.f32 %v10045_v33, %v11359_v27  ;;  %v4613_v3 = vmul.f32 %v4581_v19, %v11360_v62  ;;  %v4654_v51 = vadd.f32 %v7418_v45, %v10130_v38  ;;  %v4685_v7 = vadd.f32 %v4653_v6, %v11361_v5  ;;  %v11362_v61 = vld [vmem:[#allocation50_spill] sm:$0xff]  ;;  %v11364_v14 = vld [vmem:[#allocation92_spill] sm:$0xff]  ;;  %v7419_v58 = vld [vmem:[#allocation2 + $0x110] sm:$0xff] }
 0x594   : >> { %v10411_v17 = vadd.f32 %v4715_v49, %v4612_v60  ;;  %v4776_v40 = vadd.f32 %v4775_v50, %v10389_v21  ;;  %v4364_v35 = vmul.f32 %v11363_v32, %v11362_v61  ;;  %v4583_v2 = vadd.f32 %v11364_v14, %v4511_v22  ;;  %v11365_v29 = vld [vmem:[#allocation80_spill] sm:$0xff]  ;;  %v11366_v19 = vld [vmem:[#allocation161_spill] sm:$0xff]  ;;  %v11369_v62 = vld [vmem:[#allocation82_spill] sm:$0xff] }
 0x595   : >> { %v4614_v11 = vmul.f32 %v4582_v4, %v11365_v29  ;;  %v4655_v33 = vadd.f32 %v7419_v58, %v10130_v38  ;;  %v4686_v46 = vadd.f32 %v4654_v51, %v11366_v19  ;;  %v4717_v53 = vadd.f32 %v4685_v7, %v4362_v39  ;;  %v11367_v6 = vld [vmem:[#allocation93_spill] sm:$0xff] }
 0x596   : >> { %v10420_v36 = vadd.f32 %v4716_v56, %v4613_v3  ;;  %v4777_v60 = vadd.f32 %v4776_v40, %v10399_v30  ;;  %v4584_v49 = vadd.f32 %v11367_v6, %v4512_v34  ;;  %v11368_v31 = vld [vmem:[#allocation81_spill] sm:$0xff] }
 0x597   : >> { %v4687_v50 = vadd.f32 %v4655_v33, %v4113_v16  ;;  %v4718_v41 = vadd.f32 %v4686_v46, %v4363_v63  ;;  %v4615_v22 = vmul.f32 %v4583_v2, %v11368_v31  ;;  %v10426_v4 = vadd.f32 %v4717_v53, %v4614_v11  ;;  %v4881_v33 = vld [vmem:[%s11371_s19] sm:$0x1]  ;;  %s5096_s19 = scalar_lea.sflag (%p592_p3), [#allocation5], %s7956_s10 }
 0x598   : >> { %v4778_v15 = vadd.f32 %v4777_v60, %v10411_v17  ;;  %v4616_v45 = vmul.f32 %v4584_v49, %v11369_v62 }
 0x599   : >> { %v4719_v27 = vadd.f32 %v4687_v50, %v4364_v35  ;;  %v10430_v39 = vadd.f32 %v4718_v41, %v4615_v22  ;;  %v4806_v35 = vld [vmem:[%s11370_s22] sm:$0x1]  ;;  %v4994_v41 = vlaneseq  ;;  %s11376_s22 = smov (%p592_p3), %s11375_s25 }
 0x59a   : >> { %v4779_v38 = vadd.f32 %v4778_v15, %v10420_v36 }
 0x59b   : >> { %v10433_v3 = vadd.f32 %v4719_v27, %v4616_v45  ;;  %v4995_v15 = vshrl.u32 %v4994_v41, 7 }
 0x59c   : >> { %v4780_v56 = vadd.f32 %v4779_v38, %v10426_v4 }
 0x59d   : >> { %v4996_v31 = vsub.s32 0, %v4995_v15 }
 0x59e   : >> { %v4781_v16 = vadd.f32 %v4780_v56, %v10430_v39 }
 0x5a0   : >> { %v4782_v63 = vadd.f32 %v4781_v16, %v10433_v3 }
 0x5a2   : >> { %v4783_v34 = vrot.slane %v4782_v63, 4 }
 0x5a4   : >> { %v4784_v51 = vadd.f32 %v4783_v34, %v4782_v63 }
 0x5a6   : >> { %v4785_v5 = vrot.slane %v4784_v51, 2 }
 0x5a8   : >> { %v4786_v7 = vadd.f32 %v4785_v5, %v4784_v51  ;;  %v4962_v5 = vld [vmem:[%s8117_s24] sm:$0xff] }
 0x5aa   : >> { %v4787_v40 = vrot.slane %v4786_v7, 1 }
 0x5ac   : >> { %v4788_v61 = vadd.f32 %v4787_v40, %v4786_v7  ;;  %v4965_v7 = vld [vmem:[%s8117_s24 + $0x18] sm:$0xff] }
 0x5ae   : >> { %v4789_v32 = vmul.f32 0.00390625, %v4788_v61  ;;  %v4969_v61 = vld [vmem:[%s8117_s24 + $0x38] sm:$0xff] }
 0x5b0   : >> { %6612 = vmatmul.mubr.f32.vlgmr.msra.gmra.mrb[32].mxu0 %v4789_v32 }
 0x683   : >> { %v4873_v14 = vpop.f32.mrb[32].mxu0 }
 0x684   : >> { %v4874_v2 = vadd.f32 %v4873_v14, %v4806_v35  ;;  %v6613_v29 = vpop.f32.mrb[33].mxu0  ;;  %v4972_v14 = vld [vmem:[%s8117_s24 + $0x50] sm:$0xff] }
 0x685   : >> { %v4974_v29 = vld [vmem:[%s8117_s24 + $0x60] sm:$0xff] }
 0x686   : >> { %vm4877_vm1 = vcmp.gt.f32.partialorder %v4874_v2, 0.0  ;;  %v4878_v11 = vmul.f32 0.01, %v4874_v2 }
 0x688   : >> { %v4879_v58 = vsel %vm4877_vm1, %v4874_v2, %v4878_v11  ;;  %v4975_v11 = vld [vmem:[%s8117_s24 + $0x68] sm:$0xff] }
 0x689   : >> { %6617 = vmatmul.mubr.msk.f32.vlgmr.msra.gmra.mrb[32].mxu1 %vm4882_vm2, %v4879_v58 }
 0x75c   : >> { %v4952_v19 = vpop.f32.mrb[32].mxu1 }
 0x75d   : >> { %v4953_v46 = vadd.f32 %v4952_v19, %v4881_v33  ;;  %v6618_v53 = vpop.f32.mrb[33].mxu1  ;;  %v4977_v33 = vld [vmem:[%s8117_s24 + $0x78] sm:$0xff]  ;;  %v4978_v19 = vld [vmem:[%s8117_s24 + $0x80] sm:$0xff] }
 0x75e   : >> { %v4980_v53 = vld [vmem:[%s8117_s24 + $0x90] sm:$0xff] }
 0x75f   : >> { %v4956_v60 = vsub.f32 0.0, %v4953_v46 }
 0x761   : >> { %v4957_v6 = vmul.f32 1.442695, %v4956_v60  ;;  %v4981_v60 = vld [vmem:[%s8117_s24 + $0x98] sm:$0xff] }
 0x763   : >> { %7386 = vpow2.f32 %v4957_v6 }
 0x76d   : >> { %v7387_v49 = vpop.eup %7386 }
 0x76e   : >> { %v4959_v50 = vadd.f32 1.0, %v7387_v49 }
 0x770   : >> { %7388 = vrcp.f32 %v4959_v50  ;;  %v4983_v50 = vld [vmem:[%s8117_s24 + $0xa8] sm:$0xff] }
 0x77a   : >> { %v7389_v22 = vpop.eup %7388 }
 0x77b   : >> { %v4997_v27 = vrot.slane %v7389_v22, %v4996_v31 }
 0x77d   : >> { %v4998_v38 = vmul.f32 %v4997_v27, %v10161_v18  ;;  %v4999_v62 = vmul.f32 %v4997_v27, %v10150_v48  ;;  %v5000_v45 = vmul.f32 %v4997_v27, %v10163_v26  ;;  %v5001_v56 = vmul.f32 %v4997_v27, %v10169_v55 }
 0x77e   : >> { %v5002_v16 = vmul.f32 %v4997_v27, %v10181_v9  ;;  %v5003_v63 = vmul.f32 %v4997_v27, %v10190_v37  ;;  %v5004_v34 = vmul.f32 %v4997_v27, %v10201_v23  ;;  %v5005_v51 = vmul.f32 %v4997_v27, %v10210_v25  ;;  %v4963_v9 = vld [vmem:[%s8117_s24 + $0x8] sm:$0xff]  ;;  %v4964_v37 = vld [vmem:[%s8117_s24 + $0x10] sm:$0xff] }
 0x77f   : >> { %v5006_v18 = vmul.f32 %v4997_v27, %v10221_v42  ;;  %v5007_v48 = vmul.f32 %v4997_v27, %v10230_v1  ;;  %v5008_v26 = vmul.f32 %v4997_v27, %v10241_v44  ;;  %v5009_v55 = vmul.f32 %v4997_v27, %v10250_v12  ;;  %v4966_v1 = vld [vmem:[%s8117_s24 + $0x20] sm:$0xff]  ;;  %v4967_v44 = vld [vmem:[%s8117_s24 + $0x28] sm:$0xff]  ;;  %v4968_v12 = vld [vmem:[%s8117_s24 + $0x30] sm:$0xff] }
 0x780   : >> { %v5010_v23 = vmul.f32 %v4997_v27, %v10261_v13  ;;  %v5011_v25 = vmul.f32 %v4997_v27, %v10270_v28  ;;  %v5012_v40 = vmul.f32 %v4997_v27, %v10281_v0  ;;  %v5013_v42 = vmul.f32 %v4997_v27, %v10290_v52  ;;  %v4970_v0 = vld [vmem:[%s8117_s24 + $0x40] sm:$0xff]  ;;  %v4971_v52 = vld [vmem:[%s8117_s24 + $0x48] sm:$0xff] }
 0x781   : >> { %v10468_v32 = vmul.f32 %v4997_v27, %v10301_v8  ;;  %v10471_v35 = vmul.f32 %v4997_v27, %v10310_v10  ;;  %v10474_v13 = vmul.f32 %v4997_v27, %v10321_v57  ;;  %v10477_v28 = vmul.f32 %v4997_v27, %v10330_v24  ;;  %v4973_v24 = vld [vmem:[%s8117_s24 + $0x58] sm:$0xff] }
 0x782   : >> { %v10483_v2 = vmul.f32 %v4997_v27, %v10341_v20  ;;  %v10486_v8 = vmul.f32 %v4997_v27, %v10350_v59  ;;  %v10489_v10 = vmul.f32 %v4997_v27, %v10361_v43  ;;  %v10492_v57 = vmul.f32 %v4997_v27, %v10369_v47  ;;  %v4976_v47 = vld [vmem:[%s8117_s24 + $0x70] sm:$0xff] }
 0x783   : >> { %v10498_v20 = vmul.f32 %v4997_v27, %v10380_v54  ;;  %v10501_v59 = vmul.f32 %v4997_v27, %v10389_v21  ;;  %v10504_v43 = vmul.f32 %v4997_v27, %v10399_v30  ;;  %v10507_v58 = vmul.f32 %v4997_v27, %v10411_v17  ;;  %v4979_v17 = vld [vmem:[%s8117_s24 + $0x88] sm:$0xff] }
 0x784   : >> { %v10513_v46 = vmul.f32 %v4997_v27, %v10420_v36  ;;  %v10516_v54 = vmul.f32 %v4997_v27, %v10426_v4  ;;  %v10519_v21 = vmul.f32 %v4997_v27, %v10430_v39  ;;  %v10522_v30 = vmul.f32 %v4997_v27, %v10433_v3  ;;  %v4982_v39 = vld [vmem:[%s8117_s24 + $0xa0] sm:$0xff]  ;;  %v4984_v3 = vld [vmem:[%s8117_s24 + $0xb0] sm:$0xff]  ;;  %v4985_v27 = vld [vmem:[%s8117_s24 + $0xb8] sm:$0xff] }
 0x785   : >> { %v5030_v36 = vadd.f32 %v4998_v38, %v4962_v5  ;;  %v5031_v6 = vadd.f32 %v4999_v62, %v4963_v9  ;;  %v5032_v49 = vadd.f32 %v5000_v45, %v4964_v37  ;;  %v5033_v4 = vadd.f32 %v5001_v56, %v4965_v7  ;;  %v4987_v38 = vld [vmem:[%s8117_s24 + $0xc8] sm:$0xff]  ;;  %v4992_v9 = vld [vmem:[%s8117_s24 + $0xf0] sm:$0xff]  ;;  %v4993_v37 = vld [vmem:[%s8117_s24 + $0xf8] sm:$0xff] }
 0x786   : >> { %11372 = vst [vmem:[#allocation97_spill] sm:$0xff] %v10522_v30  ;;  %v5034_v41 = vadd.f32 %v5002_v16, %v4966_v1  ;;  %v5035_v15 = vadd.f32 %v5003_v63, %v4967_v44  ;;  %v5036_v31 = vadd.f32 %v5004_v34, %v4968_v12  ;;  %v5037_v22 = vadd.f32 %v5005_v51, %v4969_v61  ;;  %v4986_v30 = vld [vmem:[%s8117_s24 + $0xc0] sm:$0xff]  ;;  %v4988_v16 = vld [vmem:[%s8117_s24 + $0xd0] sm:$0xff]  ;;  %v4989_v63 = vld [vmem:[%s8117_s24 + $0xd8] sm:$0xff] }
 0x787   : >> { %v5038_v62 = vadd.f32 %v5006_v18, %v4970_v0  ;;  %v5039_v45 = vadd.f32 %v5007_v48, %v4971_v52  ;;  %v5040_v56 = vadd.f32 %v5008_v26, %v4972_v14  ;;  %v5041_v5 = vadd.f32 %v5009_v55, %v4973_v24  ;;  %5063 = vst [vmem:[%s10527_s20] sm:$0xff] %v5030_v36  ;;  %v4990_v34 = vld [vmem:[%s8117_s24 + $0xe0] sm:$0xff]  ;;  %v4991_v55 = vld [vmem:[%s8117_s24 + $0xe8] sm:$0xff]  ;;  %s5279_s24 = sshll.u32 (%p592_p3), %s7751_s29, 13  ;;  %s7568_s29 = scalar_lea.vmem (%p592_p3), %s7567_s16, 16384 }
 0x788   : >> { %5064 = vst [vmem:[%s10527_s20 + $0x8] sm:$0xff] %v5031_v6  ;;  %5065 = vst [vmem:[%s10527_s20 + $0x10] sm:$0xff] %v5032_v49  ;;  %v5042_v51 = vadd.f32 %v5010_v23, %v4974_v29  ;;  %v5043_v18 = vadd.f32 %v5011_v25, %v4975_v11  ;;  %v5044_v48 = vadd.f32 %v5012_v40, %v4976_v47  ;;  %s10599_s18 = scalar_lea.hbm (%p592_p3), %s11375_s25, %s5279_s24  ;;  %p7570_p2 = scmp.lt.s32.totalorder (%p592_p3), %s7568_s29, %s7562_s17 }
 0x789   : >> { %5066 = vst [vmem:[%s10527_s20 + $0x18] sm:$0xff] %v5033_v4  ;;  %v5045_v26 = vadd.f32 %v5013_v42, %v4977_v33  ;;  %5067 = vst [vmem:[%s10527_s20 + $0x20] sm:$0xff] %v5034_v41  ;;  %v5046_v7 = vadd.f32 %v10468_v32, %v4978_v19  ;;  %v5047_v23 = vadd.f32 %v10471_v35, %v4979_v17 }
 0x78a   : >> { %5068 = vst [vmem:[%s10527_s20 + $0x28] sm:$0xff] %v5035_v15  ;;  %5069 = vst [vmem:[%s10527_s20 + $0x30] sm:$0xff] %v5036_v31  ;;  %v5048_v25 = vadd.f32 %v10474_v13, %v4980_v53  ;;  %v5049_v40 = vadd.f32 %v10477_v28, %v4981_v60  ;;  %v5050_v42 = vadd.f32 %v10483_v2, %v4982_v39  ;;  %p7571_p13 = por (%p592_p3), %p7570_p2, %p7569_p1 }
 0x78b   : >> { %5070 = vst [vmem:[%s10527_s20 + $0x38] sm:$0xff] %v5037_v22  ;;  %5071 = vst [vmem:[%s10527_s20 + $0x40] sm:$0xff] %v5038_v62  ;;  %v5051_v1 = vadd.f32 %v10486_v8, %v4983_v50  ;;  %v5052_v44 = vadd.f32 %v10489_v10, %v4984_v3  ;;  %v5053_v12 = vadd.f32 %v10492_v57, %v4985_v27 }
 0x78c   : >> { %5072 = vst [vmem:[%s10527_s20 + $0x48] sm:$0xff] %v5039_v45  ;;  %5073 = vst [vmem:[%s10527_s20 + $0x50] sm:$0xff] %v5040_v56  ;;  %v5054_v61 = vadd.f32 %v10498_v20, %v4986_v30  ;;  %v5055_v32 = vadd.f32 %v10501_v59, %v4987_v38  ;;  %v5056_v35 = vadd.f32 %v10504_v43, %v4988_v16  ;;  %p7572_p9 = pnand (%p592_p3), %p7571_p13, %p7565_p12 }
 0x78d   : >> { %5074 = vst [vmem:[%s10527_s20 + $0x58] sm:$0xff] %v5041_v5  ;;  %5075 = vst [vmem:[%s10527_s20 + $0x60] sm:$0xff] %v5042_v51  ;;  %v5057_v13 = vadd.f32 %v10507_v58, %v4989_v63  ;;  %v5058_v28 = vadd.f32 %v10513_v46, %v4990_v34  ;;  %v5059_v0 = vadd.f32 %v10516_v54, %v4991_v55  ;;  %v11374_v14 = vld [vmem:[#allocation97_spill] sm:$0xff] }
 0x78e   : >> { %5076 = vst [vmem:[%s10527_s20 + $0x68] sm:$0xff] %v5043_v18  ;;  %5077 = vst [vmem:[%s10527_s20 + $0x70] sm:$0xff] %v5044_v48  ;;  %v5060_v52 = vadd.f32 %v10519_v21, %v4992_v9  ;;  %v5061_v2 = vadd.f32 %v11374_v14, %v4993_v37 }
 0x78f   : >> { %5078 = vst [vmem:[%s10527_s20 + $0x78] sm:$0xff] %v5045_v26  ;;  %5079 = vst [vmem:[%s10527_s20 + $0x80] sm:$0xff] %v5046_v7 }
 0x790   : >> { %5080 = vst [vmem:[%s10527_s20 + $0x88] sm:$0xff] %v5047_v23  ;;  %5081 = vst [vmem:[%s10527_s20 + $0x90] sm:$0xff] %v5048_v25 }
 0x791   : >> { %5082 = vst [vmem:[%s10527_s20 + $0x98] sm:$0xff] %v5049_v40  ;;  %5083 = vst [vmem:[%s10527_s20 + $0xa0] sm:$0xff] %v5050_v42  ;;  %594 = sbr.rel (!%p592_p3) target bundleno = 199 (0xc7), region = 158 }
 0x792   : >> { %5084 = vst [vmem:[%s10527_s20 + $0xa8] sm:$0xff] %v5051_v1  ;;  %5085 = vst [vmem:[%s10527_s20 + $0xb0] sm:$0xff] %v5052_v44 }
 0x793   : >> { %5086 = vst [vmem:[%s10527_s20 + $0xb8] sm:$0xff] %v5053_v12  ;;  %5087 = vst [vmem:[%s10527_s20 + $0xc0] sm:$0xff] %v5054_v61 }
 0x794   : >> { %5088 = vst [vmem:[%s10527_s20 + $0xc8] sm:$0xff] %v5055_v32  ;;  %5089 = vst [vmem:[%s10527_s20 + $0xd0] sm:$0xff] %v5056_v35 }
 0x795   : >> { %5090 = vst [vmem:[%s10527_s20 + $0xd8] sm:$0xff] %v5057_v13  ;;  %5091 = vst [vmem:[%s10527_s20 + $0xe0] sm:$0xff] %v5058_v28 }
 0x796   : >> { %5092 = vst [vmem:[%s10527_s20 + $0xe8] sm:$0xff] %v5059_v0  ;;  %5093 = vst [vmem:[%s10527_s20 + $0xf0] sm:$0xff] %v5060_v52 }
 0x797   : >> { %5094 = vst [vmem:[%s10527_s20 + $0xf8] sm:$0xff] %v5061_v2 }
 0x798   : > { %7575 = shalt.err (!%p7572_p9)
}
 0x799   : > { %s7576_s14 = scalar_lea.hbm %s10599_s18, 8192  ;;  %s7580_s11 = scalar_lea.hbm %s11376_s22, 16384 }
 0x79a   : > { %p7577_p0 = scmp.ne.s32.totalorder %s10599_s18, %s7576_s14  ;;  %p7581_p8 = scmp.lt.u32.totalorder %s10599_s18, %s11376_s22 }
 0x79b   : > { %p7582_p6 = scmp.lt.u32.totalorder %s7580_s11, %s7576_s14  ;;  %p7584_p5 = scmp.lt.u32.totalorder %s7576_s14, %s10599_s18 }
 0x79c   : > { %p7578_p11 = pnand %p7577_p0, %p7901_p10 }
 0x79d   : > { %p7583_p3 = por %p7582_p6, %p7581_p8 }
 0x79e   : > { %p7579_p4 = pneg %p7578_p11 }
 0x79f   : > { %p7585_p7 = por %p7584_p5, %p7583_p3 }
 0x7a1   : > { %p7586_p12 = pnand %p7585_p7, %p7579_p4 }
 0x7a3   : > { %7589 = shalt.err (!%p7586_p12)
}
 0x7a4   : > { %s7658_s17 = smov 128   ;;  %s7659_s8 = smov 8  }
 0x7a5   : > { %7301 = dma.vmem_to_hbm [thread:$0]  (%p7901_p10), %s10602_s21, 8192, %s10599_s18, %s5096_s19, %s7658_s17, %s7658_s17, %s7659_s8  }
 0x7a6 PF: > { %s11377_s16 = sld [smem:[#allocation17_spill]]  ;;  %s11378_s29 = sld [smem:[#allocation18_spill]] }
 0x7a7   : > { %p11380_p2 = scmp.ge.s32.totalorder %s7640_s28, 2 }
 0x7ac   : > { %s5125_s20 = sand.u32 1, %s11377_s16   ;;  %p11379_p1 = scmp.ne.s32.totalorder %s11378_s29, 0 }
 0x7ad   : > { %s5126_s14 = scalar_lea.sflag [#allocation5], %s5125_s20 }
 0x7ae   : > { %p7321_p13 = pnand %p11380_p2, %p11379_p1 }
 0x7b0   : > { %7623 = dma.done.wait (!%p7321_p13), %s5126_s14, 8192  }
 0x7b1   : > { %7625 = vsyncadd (!%p7321_p13), %s5126_s14, 4294959104  ;;  %p28_p9 = scmp.ge.s32.totalorder %s7891_s13, 4   ;;  %s11381_s25 = smov %s7632_s26 }
 0x7b2   : > { %s11382_s26 = smov %s7636_s27  ;;  %s11383_s27 = smov %s7907_s30 }
 0x7b3   : > { %s11384_s28 = smov %s7891_s13  ;;  %30 = sbr.rel (!%p28_p9) target bundleno = 13 (0xd), region = 169 }
 0x7ba   :  { %5131 = vsyncpa [#allocation4], 1 }
 0x7bb   :  { %5133 = vsyncpa [#allocation4 + $0x1], 1 }
 0x7bc   :  { %5134 = vsyncpa [#allocation7], 1 }
 0x7bd   :  { %5135 = vsyncpa [#allocation10], 1 }
 0x7be   :  { %5136 = vsyncpa [#allocation5], 1 }
 0x7bf   :  { %5138 = vsyncpa [#allocation5 + $0x1], 1 }

</bundles_post_ra>
